<compile_context>
chip_gen: v7x
topology: tpu7x:2x2x1
jax: 0.10.0
libtpu: 0.0.40
codegen_flags: <defaults>
</compile_context>

<pallas_src>
import functools
import numpy as np
import jax
import jax.numpy as jnp
from jax.experimental import pallas as pl
from jax.experimental.pallas import tpu as pltpu

HP_PAD = 128   # lane-aligned gate block width (H zero-padded up to this)
CP_PAD = 128   # padded num_classes for a lane-dense output store


# ------------------------------ Pallas kernel --------------------------------

def _make_fused_kernel(T, B, Hp, num_layers):
    """Fused forward kernel for fixed (T, B, padded hidden Hp, num_layers)."""

    def kernel(*refs):
        # refs = [x2d, (wih_T, whh_T, bias) * L, fc_w_T, fc_b, out, xproj_scratch]
        x2d_ref = refs[0]
        layer_refs = refs[1:1 + 3 * num_layers]
        fcw_ref = refs[1 + 3 * num_layers]
        fcb_ref = refs[2 + 3 * num_layers]
        out_ref = refs[3 + 3 * num_layers]
        xp_ref = refs[4 + 3 * num_layers]

        # Layer-0 input projection for ALL timesteps in one MXU matmul, bias
        # folded in; parked in VMEM scratch and sliced per step (time-major:
        # row t*B + b is (time t, batch b)).
        xp_ref[...] = (
            jnp.dot(x2d_ref[...], layer_refs[0][...],
                    preferred_element_type=jnp.float32)
            + layer_refs[2][...])

        # Hoisted (1,4Hp)->(B,4Hp) bias broadcasts for layers > 0 (kept off the
        # per-step critical path; JAX does not CSE broadcast_in_dim).
        bias_b = [None] + [
            jnp.broadcast_to(layer_refs[3 * l + 2][...], (B, 4 * Hp))
            for l in range(1, num_layers)]

        def cell(gates, c):
            i_g = jax.nn.sigmoid(gates[:, 0 * Hp:1 * Hp])
            f_g = jax.nn.sigmoid(gates[:, 1 * Hp:2 * Hp])
            g_g = jnp.tanh(gates[:, 2 * Hp:3 * Hp])
            o_g = jax.nn.sigmoid(gates[:, 3 * Hp:4 * Hp])
            c_new = f_g * c + i_g * g_g
            h_new = o_g * jnp.tanh(c_new)
            return h_new, c_new

        zeros = jnp.zeros((B, Hp), jnp.float32)
        h = [zeros] * num_layers       # h[l]: layer l hidden at its latest time
        c = [zeros] * num_layers

        # Wavefront over (layer, time): cells within a step are mutually
        # independent.  Layers are emitted in descending order so h[l-1] still
        # holds the step s-1 (time t) value when layer l consumes it.
        for s in range(T + num_layers - 1):
            for l in range(num_layers - 1, -1, -1):
                t = s - l
                if t < 0 or t >= T:
                    continue
                whh = layer_refs[3 * l + 1][...]             # (Hp, 4Hp)
                if l == 0:
                    gates = xp_ref[t * B:(t + 1) * B, :]     # precomputed proj
                else:
                    wih = layer_refs[3 * l][...]             # (Hp, 4Hp)
                    gates = jnp.dot(h[l - 1].astype(wih.dtype), wih,
                                    preferred_element_type=jnp.float32)
                    gates = gates + bias_b[l]
                gates = gates + jnp.dot(h[l].astype(whh.dtype), whh,
                                        preferred_element_type=jnp.float32)
                h[l], c[l] = cell(gates, c[l])

        # Fused fc on the last layer's last-timestep hidden state (tiny, f32).
        out_ref[...] = (
            jnp.dot(h[num_layers - 1], fcw_ref[...],
                    preferred_element_type=jnp.float32)
            + fcb_ref[...]).astype(out_ref.dtype)

    return kernel


# --------------------------------- wrapper ------------------------------------

@functools.partial(jax.jit, static_argnames=("num_classes",))
def lstm_model_forward(x_btd, kparams, *, num_classes):
    """Matches LSTM.forward: x (B, T, input_size) -> logits (B, num_classes)."""
    B, T, Din = x_btd.shape
    layers = kparams["layers"]
    num_layers = len(layers)
    Hp = layers[0][1].shape[0]                 # padded hidden size
    Cp = kparams["fc_w_T"].shape[1]            # padded class count
    cdt = layers[0][0].dtype                   # matmul operand dtype

    # batch-first -> time-major 2D rows (layout plumbing outside the kernel).
    x2d = jnp.transpose(x_btd, (1, 0, 2)).reshape(T * B, Din).astype(cdt)

    flat_inputs = [x2d]
    in_specs = [pl.BlockSpec((T * B, Din), lambda: (0, 0))]
    for (wih_T, whh_T, bias) in layers:
        flat_inputs += [wih_T, whh_T, bias]
        in_specs += [pl.BlockSpec(wih_T.shape, lambda: (0, 0)),
                     pl.BlockSpec(whh_T.shape, lambda: (0, 0)),
                     pl.BlockSpec(bias.shape, lambda: (0, 0))]
    flat_inputs += [kparams["fc_w_T"], kparams["fc_b"]]
    in_specs += [pl.BlockSpec(kparams["fc_w_T"].shape, lambda: (0, 0)),
                 pl.BlockSpec(kparams["fc_b"].shape, lambda: (0, 0))]

    kernel = _make_fused_kernel(T, B, Hp, num_layers)
    out_padded = pl.pallas_call(
        kernel,
        out_shape=jax.ShapeDtypeStruct((B, Cp), jnp.float32),
        in_specs=in_specs,
        out_specs=pl.BlockSpec((B, Cp), lambda: (0, 0)),
        scratch_shapes=[pltpu.VMEM((T * B, 4 * Hp), jnp.float32)],
        compiler_params=pltpu.CompilerParams(
            vmem_limit_bytes=32 * 1024 * 1024),
    )(*flat_inputs)
    # Lane-dense (B, 128) store inside the kernel; slice to the real classes.
    return out_padded[:, :num_classes]


# ------------------------- deterministic param init ---------------------------

def init_params(key, input_size, hidden_size, num_layers, num_classes):
    """PyTorch-equivalent parameters (unpadded, f32, pre-transposed)."""
    k = 1.0 / np.sqrt(hidden_size)
    layers = []
    for l in range(num_layers):
        din = input_size if l == 0 else hidden_size
        key, k1, k2, k3, k4 = jax.random.split(key, 5)
        w_ih = jax.random.uniform(k1, (4 * hidden_size, din), jnp.float32, -k, k)
        w_hh = jax.random.uniform(k2, (4 * hidden_size, hidden_size), jnp.float32, -k, k)
        b_ih = jax.random.uniform(k3, (4 * hidden_size,), jnp.float32, -k, k)
        b_hh = jax.random.uniform(k4, (4 * hidden_size,), jnp.float32, -k, k)
        # Pre-transposed weights, combined bias (PyTorch adds b_ih + b_hh).
        layers.append((w_ih.T, w_hh.T, (b_ih + b_hh).reshape(1, -1)))
    key, k5, k6 = jax.random.split(key, 3)
    fc_w = jax.random.uniform(k5, (num_classes, hidden_size), jnp.float32, -k, k)
    fc_b = jax.random.uniform(k6, (num_classes,), jnp.float32, -k, k)
    return {"layers": layers, "fc_w_T": fc_w.T, "fc_b": fc_b.reshape(1, -1)}


def _pad_gate_cols(w, H, Hp):
    """(rows, 4H) -> (rows, 4Hp): gate k's columns moved to [k*Hp, k*Hp+H)."""
    out = jnp.zeros((w.shape[0], 4 * Hp), w.dtype)
    for k in range(4):
        out = out.at[:, k * Hp:k * Hp + H].set(w[:, k * H:(k + 1) * H])
    return out


def _pad_rows(w, rows_p):
    return jnp.pad(w, ((0, rows_p - w.shape[0]), (0, 0)))


def prepare_kernel_params(params, Hp, Cp, matmul_dtype):
    """Padded / dtype-cast weights for the kernel (zero-padding is exact)."""
    H = params["layers"][0][1].shape[0]
    layers = []
    for li, (wih_T, whh_T, bias) in enumerate(params["layers"]):
        wih_p = _pad_gate_cols(wih_T, H, Hp)
        if li > 0:
            wih_p = _pad_rows(wih_p, Hp)              # inputs arrive Hp-padded
        whh_p = _pad_rows(_pad_gate_cols(whh_T, H, Hp), Hp)
        bias_p = _pad_gate_cols(bias, H, Hp).astype(jnp.float32)
        layers.append((wih_p.astype(matmul_dtype),
                       whh_p.astype(matmul_dtype),
                       bias_p))
    C = params["fc_w_T"].shape[1]
    fc_w_p = jnp.zeros((Hp, Cp), jnp.float32).at[:H, :C].set(params["fc_w_T"])
    fc_b_p = jnp.zeros((1, Cp), jnp.float32).at[:, :C].set(params["fc_b"])
    return {"layers": layers, "fc_w_T": fc_w_p, "fc_b": fc_b_p}


# ------------------------------ pure-JAX reference -----------------------------

def reference_forward(x_btd, params):
    B = x_btd.shape[0]
    x = x_btd
    for (wih_T, whh_T, bias) in params["layers"]:
        H = whh_T.shape[0]
        h = jnp.zeros((B, H), jnp.float32)
        c = jnp.zeros((B, H), jnp.float32)
        outs = []
        for t in range(x.shape[1]):
            g = x[:, t, :] @ wih_T + h @ whh_T + bias
            i_g = jax.nn.sigmoid(g[:, 0 * H:1 * H])
            f_g = jax.nn.sigmoid(g[:, 1 * H:2 * H])
            g_g = jnp.tanh(g[:, 2 * H:3 * H])
            o_g = jax.nn.sigmoid(g[:, 3 * H:4 * H])
            c = f_g * c + i_g * g_g
            h = o_g * jnp.tanh(c)
            outs.append(h)
        x = jnp.stack(outs, axis=1)
    return x[:, -1, :] @ params["fc_w_T"] + params["fc_b"]


# ----------------------------------- main --------------------------------------

if __name__ == "__main__":
    input_size, hidden_size, num_layers, num_classes = 16, 32, 2, 8
    batch, seq_len = 8, 8

    key = jax.random.PRNGKey(0)
    key, kx, kp = jax.random.split(key, 3)
    x = jax.random.normal(kx, (batch, seq_len, input_size), jnp.float32)
    params = init_params(kp, input_size, hidden_size, num_layers, num_classes)
    ref = reference_forward(x, params)

    # f32 path: pins the exact PyTorch semantics of wavefront + padding at 1e-5.
    kp_f32 = prepare_kernel_params(params, HP_PAD, CP_PAD, jnp.float32)
    out_f32 = jax.block_until_ready(
        lstm_model_forward(x, kp_f32, num_classes=num_classes))
    np.testing.assert_allclose(np.asarray(out_f32), np.asarray(ref),
                               rtol=1e-5, atol=1e-5)

    # bf16-weight path (v6e/v7x MXU fast path, f32 accumulation); tolerance
    # relaxed per the review's correctness note on bf16 rounding.
    kp_bf16 = prepare_kernel_params(params, HP_PAD, CP_PAD, jnp.bfloat16)
    out_bf16 = jax.block_until_ready(
        lstm_model_forward(x, kp_bf16, num_classes=num_classes))
    np.testing.assert_allclose(np.asarray(out_bf16), np.asarray(ref),
                               rtol=5e-2, atol=5e-2)

    print("KERNEL_OK")
</pallas_src>

<mosaic_0001>
module attributes {stable_mosaic.version = 11 : i64} {
  func.func @kernel(%arg0: memref<64x16xf32, #tpu.memory_space<vmem>>, %arg1: memref<16x512xf32, #tpu.memory_space<vmem>>, %arg2: memref<128x512xf32, #tpu.memory_space<vmem>>, %arg3: memref<1x512xf32, #tpu.memory_space<vmem>>, %arg4: memref<128x512xf32, #tpu.memory_space<vmem>>, %arg5: memref<128x512xf32, #tpu.memory_space<vmem>>, %arg6: memref<1x512xf32, #tpu.memory_space<vmem>>, %arg7: memref<128x128xf32, #tpu.memory_space<vmem>>, %arg8: memref<1x128xf32, #tpu.memory_space<vmem>>, %arg9: memref<8x128xf32, #tpu.memory_space<vmem>>, %arg10: memref<64x512xf32, #tpu.memory_space<vmem>>) attributes {dimension_semantics = [], scalar_prefetch = 0 : i64, scratch_operands = 1 : i64, tpu.core_type = #tpu.core_type<tc>} {
    %c0 = arith.constant 0 : index
    %c0_0 = arith.constant 0 : index
    %0 = vector.load %arg0[%c0, %c0_0] : memref<64x16xf32, #tpu.memory_space<vmem>>, vector<64x16xf32>
    %c0_1 = arith.constant 0 : index
    %c0_2 = arith.constant 0 : index
    %1 = vector.load %arg1[%c0_1, %c0_2] : memref<16x512xf32, #tpu.memory_space<vmem>>, vector<16x512xf32>
    %cst = arith.constant dense<0.000000e+00> : vector<64x512xf32>
    %2 = tpu.matmul %0, %1, %cst {dimension_numbers = #tpu.dot_dimension_numbers<[1], [0], [0], [1], [0, 0, 1, 1], [], []>} : vector<64x16xf32>, vector<16x512xf32>, vector<64x512xf32> -> vector<64x512xf32>
    %c0_3 = arith.constant 0 : index
    %c0_4 = arith.constant 0 : index
    %3 = vector.load %arg3[%c0_3, %c0_4] : memref<1x512xf32, #tpu.memory_space<vmem>>, vector<1x512xf32>
    %4 = vector.broadcast %3 : vector<1x512xf32> to vector<64x512xf32>
    %5 = arith.addf %2, %4 : vector<64x512xf32>
    %c0_5 = arith.constant 0 : index
    %c0_6 = arith.constant 0 : index
    %6 = vector.load %arg10[%c0_5, %c0_6] : memref<64x512xf32, #tpu.memory_space<vmem>>, vector<64x512xf32>
    tpu.vector_store %arg10[%c0_5, %c0_6], %5 {strides = array<i32>} : memref<64x512xf32, #tpu.memory_space<vmem>>, vector<64x512xf32>,
    %c0_7 = arith.constant 0 : index
    %c0_8 = arith.constant 0 : index
    %7 = vector.load %arg6[%c0_7, %c0_8] : memref<1x512xf32, #tpu.memory_space<vmem>>, vector<1x512xf32>
    %8 = vector.shape_cast %7 : vector<1x512xf32> to vector<1x512xf32>
    %9 = vector.broadcast %8 : vector<1x512xf32> to vector<8x512xf32>
    %cst_9 = arith.constant 0.000000e+00 : f32
    %10 = vector.broadcast %cst_9 : f32 to vector<8x128xf32>
    %c0_10 = arith.constant 0 : index
    %c0_11 = arith.constant 0 : index
    %11 = vector.load %arg2[%c0_10, %c0_11] : memref<128x512xf32, #tpu.memory_space<vmem>>, vector<128x512xf32>
    %c0_12 = arith.constant 0 : index
    %c0_13 = arith.constant 0 : index
    %12 = vector.load %arg10[%c0_12, %c0_13] : memref<64x512xf32, #tpu.memory_space<vmem>>, vector<8x512xf32>
    %cst_14 = arith.constant dense<0.000000e+00> : vector<8x512xf32>
    %13 = tpu.matmul %10, %11, %cst_14 {dimension_numbers = #tpu.dot_dimension_numbers<[1], [0], [0], [1], [0, 0, 1, 1], [], []>} : vector<8x128xf32>, vector<128x512xf32>, vector<8x512xf32> -> vector<8x512xf32>
    %14 = arith.addf %12, %13 : vector<8x512xf32>
    %15 = vector.extract_strided_slice %14 {offsets = [0, 0], sizes = [8, 128], strides = [1, 1]} : vector<8x512xf32> to vector<8x128xf32>
    %16 = arith.negf %15 : vector<8x128xf32>
    %17 = math.exp %16 : vector<8x128xf32>
    %cst_15 = arith.constant 1.000000e+00 : f32
    %18 = vector.broadcast %cst_15 : f32 to vector<8x128xf32>
    %19 = arith.addf %18, %17 : vector<8x128xf32>
    %20 = arith.divf %18, %19 : vector<8x128xf32>
    %21 = vector.extract_strided_slice %14 {offsets = [0, 128], sizes = [8, 128], strides = [1, 1]} : vector<8x512xf32> to vector<8x128xf32>
    %22 = arith.negf %21 : vector<8x128xf32>
    %23 = math.exp %22 : vector<8x128xf32>
    %cst_16 = arith.constant 1.000000e+00 : f32
    %24 = vector.broadcast %cst_16 : f32 to vector<8x128xf32>
    %25 = arith.addf %24, %23 : vector<8x128xf32>
    %26 = arith.divf %24, %25 : vector<8x128xf32>
    %27 = vector.extract_strided_slice %14 {offsets = [0, 256], sizes = [8, 128], strides = [1, 1]} : vector<8x512xf32> to vector<8x128xf32>
    %28 = math.tanh %27 : vector<8x128xf32>
    %29 = vector.extract_strided_slice %14 {offsets = [0, 384], sizes = [8, 128], strides = [1, 1]} : vector<8x512xf32> to vector<8x128xf32>
    %30 = arith.negf %29 : vector<8x128xf32>
    %31 = math.exp %30 : vector<8x128xf32>
    %cst_17 = arith.constant 1.000000e+00 : f32
    %32 = vector.broadcast %cst_17 : f32 to vector<8x128xf32>
    %33 = arith.addf %32, %31 : vector<8x128xf32>
    %34 = arith.divf %32, %33 : vector<8x128xf32>
    %35 = arith.mulf %26, %10 : vector<8x128xf32>
    %36 = arith.mulf %20, %28 : vector<8x128xf32>
    %37 = arith.addf %35, %36 : vector<8x128xf32>
    %38 = math.tanh %37 : vector<8x128xf32>
    %39 = arith.mulf %34, %38 : vector<8x128xf32>
    %c0_18 = arith.constant 0 : index
    %c0_19 = arith.constant 0 : index
    %40 = vector.load %arg5[%c0_18, %c0_19] : memref<128x512xf32, #tpu.memory_space<vmem>>, vector<128x512xf32>
    %c0_20 = arith.constant 0 : index
    %c0_21 = arith.constant 0 : index
    %41 = vector.load %arg4[%c0_20, %c0_21] : memref<128x512xf32, #tpu.memory_space<vmem>>, vector<128x512xf32>
    %cst_22 = arith.constant dense<0.000000e+00> : vector<8x512xf32>
    %42 = tpu.matmul %39, %41, %cst_22 {dimension_numbers = #tpu.dot_dimension_numbers<[1], [0], [0], [1], [0, 0, 1, 1], [], []>} : vector<8x128xf32>, vector<128x512xf32>, vector<8x512xf32> -> vector<8x512xf32>
    %43 = arith.addf %42, %9 : vector<8x512xf32>
    %cst_23 = arith.constant dense<0.000000e+00> : vector<8x512xf32>
    %44 = tpu.matmul %10, %40, %cst_23 {dimension_numbers = #tpu.dot_dimension_numbers<[1], [0], [0], [1], [0, 0, 1, 1], [], []>} : vector<8x128xf32>, vector<128x512xf32>, vector<8x512xf32> -> vector<8x512xf32>
    %45 = arith.addf %43, %44 : vector<8x512xf32>
    %46 = vector.extract_strided_slice %45 {offsets = [0, 0], sizes = [8, 128], strides = [1, 1]} : vector<8x512xf32> to vector<8x128xf32>
    %47 = arith.negf %46 : vector<8x128xf32>
    %48 = math.exp %47 : vector<8x128xf32>
    %cst_24 = arith.constant 1.000000e+00 : f32
    %49 = vector.broadcast %cst_24 : f32 to vector<8x128xf32>
    %50 = arith.addf %49, %48 : vector<8x128xf32>
    %51 = arith.divf %49, %50 : vector<8x128xf32>
    %52 = vector.extract_strided_slice %45 {offsets = [0, 128], sizes = [8, 128], strides = [1, 1]} : vector<8x512xf32> to vector<8x128xf32>
    %53 = arith.negf %52 : vector<8x128xf32>
    %54 = math.exp %53 : vector<8x128xf32>
    %cst_25 = arith.constant 1.000000e+00 : f32
    %55 = vector.broadcast %cst_25 : f32 to vector<8x128xf32>
    %56 = arith.addf %55, %54 : vector<8x128xf32>
    %57 = arith.divf %55, %56 : vector<8x128xf32>
    %58 = vector.extract_strided_slice %45 {offsets = [0, 256], sizes = [8, 128], strides = [1, 1]} : vector<8x512xf32> to vector<8x128xf32>
    %59 = math.tanh %58 : vector<8x128xf32>
    %60 = vector.extract_strided_slice %45 {offsets = [0, 384], sizes = [8, 128], strides = [1, 1]} : vector<8x512xf32> to vector<8x128xf32>
    %61 = arith.negf %60 : vector<8x128xf32>
    %62 = math.exp %61 : vector<8x128xf32>
    %cst_26 = arith.constant 1.000000e+00 : f32
    %63 = vector.broadcast %cst_26 : f32 to vector<8x128xf32>
    %64 = arith.addf %63, %62 : vector<8x128xf32>
    %65 = arith.divf %63, %64 : vector<8x128xf32>
    %66 = arith.mulf %57, %10 : vector<8x128xf32>
    %67 = arith.mulf %51, %59 : vector<8x128xf32>
    %68 = arith.addf %66, %67 : vector<8x128xf32>
    %69 = math.tanh %68 : vector<8x128xf32>
    %70 = arith.mulf %65, %69 : vector<8x128xf32>
    %c0_27 = arith.constant 0 : index
    %c0_28 = arith.constant 0 : index
    %71 = vector.load %arg2[%c0_27, %c0_28] : memref<128x512xf32, #tpu.memory_space<vmem>>, vector<128x512xf32>
    %c8 = arith.constant 8 : index
    %c0_29 = arith.constant 0 : index
    %72 = vector.load %arg10[%c8, %c0_29] : memref<64x512xf32, #tpu.memory_space<vmem>>, vector<8x512xf32>
    %cst_30 = arith.constant dense<0.000000e+00> : vector<8x512xf32>
    %73 = tpu.matmul %39, %71, %cst_30 {dimension_numbers = #tpu.dot_dimension_numbers<[1], [0], [0], [1], [0, 0, 1, 1], [], []>} : vector<8x128xf32>, vector<128x512xf32>, vector<8x512xf32> -> vector<8x512xf32>
    %74 = arith.addf %72, %73 : vector<8x512xf32>
    %75 = vector.extract_strided_slice %74 {offsets = [0, 0], sizes = [8, 128], strides = [1, 1]} : vector<8x512xf32> to vector<8x128xf32>
    %76 = arith.negf %75 : vector<8x128xf32>
    %77 = math.exp %76 : vector<8x128xf32>
    %cst_31 = arith.constant 1.000000e+00 : f32
    %78 = vector.broadcast %cst_31 : f32 to vector<8x128xf32>
    %79 = arith.addf %78, %77 : vector<8x128xf32>
    %80 = arith.divf %78, %79 : vector<8x128xf32>
    %81 = vector.extract_strided_slice %74 {offsets = [0, 128], sizes = [8, 128], strides = [1, 1]} : vector<8x512xf32> to vector<8x128xf32>
    %82 = arith.negf %81 : vector<8x128xf32>
    %83 = math.exp %82 : vector<8x128xf32>
    %cst_32 = arith.constant 1.000000e+00 : f32
    %84 = vector.broadcast %cst_32 : f32 to vector<8x128xf32>
    %85 = arith.addf %84, %83 : vector<8x128xf32>
    %86 = arith.divf %84, %85 : vector<8x128xf32>
    %87 = vector.extract_strided_slice %74 {offsets = [0, 256], sizes = [8, 128], strides = [1, 1]} : vector<8x512xf32> to vector<8x128xf32>
    %88 = math.tanh %87 : vector<8x128xf32>
    %89 = vector.extract_strided_slice %74 {offsets = [0, 384], sizes = [8, 128], strides = [1, 1]} : vector<8x512xf32> to vector<8x128xf32>
    %90 = arith.negf %89 : vector<8x128xf32>
    %91 = math.exp %90 : vector<8x128xf32>
    %cst_33 = arith.constant 1.000000e+00 : f32
    %92 = vector.broadcast %cst_33 : f32 to vector<8x128xf32>
    %93 = arith.addf %92, %91 : vector<8x128xf32>
    %94 = arith.divf %92, %93 : vector<8x128xf32>
    %95 = arith.mulf %86, %37 : vector<8x128xf32>
    %96 = arith.mulf %80, %88 : vector<8x128xf32>
    %97 = arith.addf %95, %96 : vector<8x128xf32>
    %98 = math.tanh %97 : vector<8x128xf32>
    %99 = arith.mulf %94, %98 : vector<8x128xf32>
    %c0_34 = arith.constant 0 : index
    %c0_35 = arith.constant 0 : index
    %100 = vector.load %arg5[%c0_34, %c0_35] : memref<128x512xf32, #tpu.memory_space<vmem>>, vector<128x512xf32>
    %c0_36 = arith.constant 0 : index
    %c0_37 = arith.constant 0 : index
    %101 = vector.load %arg4[%c0_36, %c0_37] : memref<128x512xf32, #tpu.memory_space<vmem>>, vector<128x512xf32>
    %cst_38 = arith.constant dense<0.000000e+00> : vector<8x512xf32>
    %102 = tpu.matmul %99, %101, %cst_38 {dimension_numbers = #tpu.dot_dimension_numbers<[1], [0], [0], [1], [0, 0, 1, 1], [], []>} : vector<8x128xf32>, vector<128x512xf32>, vector<8x512xf32> -> vector<8x512xf32>
    %103 = arith.addf %102, %9 : vector<8x512xf32>
    %cst_39 = arith.constant dense<0.000000e+00> : vector<8x512xf32>
    %104 = tpu.matmul %70, %100, %cst_39 {dimension_numbers = #tpu.dot_dimension_numbers<[1], [0], [0], [1], [0, 0, 1, 1], [], []>} : vector<8x128xf32>, vector<128x512xf32>, vector<8x512xf32> -> vector<8x512xf32>
    %105 = arith.addf %103, %104 : vector<8x512xf32>
    %106 = vector.extract_strided_slice %105 {offsets = [0, 0], sizes = [8, 128], strides = [1, 1]} : vector<8x512xf32> to vector<8x128xf32>
    %107 = arith.negf %106 : vector<8x128xf32>
    %108 = math.exp %107 : vector<8x128xf32>
    %cst_40 = arith.constant 1.000000e+00 : f32
    %109 = vector.broadcast %cst_40 : f32 to vector<8x128xf32>
    %110 = arith.addf %109, %108 : vector<8x128xf32>
    %111 = arith.divf %109, %110 : vector<8x128xf32>
    %112 = vector.extract_strided_slice %105 {offsets = [0, 128], sizes = [8, 128], strides = [1, 1]} : vector<8x512xf32> to vector<8x128xf32>
    %113 = arith.negf %112 : vector<8x128xf32>
    %114 = math.exp %113 : vector<8x128xf32>
    %cst_41 = arith.constant 1.000000e+00 : f32
    %115 = vector.broadcast %cst_41 : f32 to vector<8x128xf32>
    %116 = arith.addf %115, %114 : vector<8x128xf32>
    %117 = arith.divf %115, %116 : vector<8x128xf32>
    %118 = vector.extract_strided_slice %105 {offsets = [0, 256], sizes = [8, 128], strides = [1, 1]} : vector<8x512xf32> to vector<8x128xf32>
    %119 = math.tanh %118 : vector<8x128xf32>
    %120 = vector.extract_strided_slice %105 {offsets = [0, 384], sizes = [8, 128], strides = [1, 1]} : vector<8x512xf32> to vector<8x128xf32>
    %121 = arith.negf %120 : vector<8x128xf32>
    %122 = math.exp %121 : vector<8x128xf32>
    %cst_42 = arith.constant 1.000000e+00 : f32
    %123 = vector.broadcast %cst_42 : f32 to vector<8x128xf32>
    %124 = arith.addf %123, %122 : vector<8x128xf32>
    %125 = arith.divf %123, %124 : vector<8x128xf32>
    %126 = arith.mulf %117, %68 : vector<8x128xf32>
    %127 = arith.mulf %111, %119 : vector<8x128xf32>
    %128 = arith.addf %126, %127 : vector<8x128xf32>
    %129 = math.tanh %128 : vector<8x128xf32>
    %130 = arith.mulf %125, %129 : vector<8x128xf32>
    %c0_43 = arith.constant 0 : index
    %c0_44 = arith.constant 0 : index
    %131 = vector.load %arg2[%c0_43, %c0_44] : memref<128x512xf32, #tpu.memory_space<vmem>>, vector<128x512xf32>
    %c16 = arith.constant 16 : index
    %c0_45 = arith.constant 0 : index
    %132 = vector.load %arg10[%c16, %c0_45] : memref<64x512xf32, #tpu.memory_space<vmem>>, vector<8x512xf32>
    %cst_46 = arith.constant dense<0.000000e+00> : vector<8x512xf32>
    %133 = tpu.matmul %99, %131, %cst_46 {dimension_numbers = #tpu.dot_dimension_numbers<[1], [0], [0], [1], [0, 0, 1, 1], [], []>} : vector<8x128xf32>, vector<128x512xf32>, vector<8x512xf32> -> vector<8x512xf32>
    %134 = arith.addf %132, %133 : vector<8x512xf32>
    %135 = vector.extract_strided_slice %134 {offsets = [0, 0], sizes = [8, 128], strides = [1, 1]} : vector<8x512xf32> to vector<8x128xf32>
    %136 = arith.negf %135 : vector<8x128xf32>
    %137 = math.exp %136 : vector<8x128xf32>
    %cst_47 = arith.constant 1.000000e+00 : f32
    %138 = vector.broadcast %cst_47 : f32 to vector<8x128xf32>
    %139 = arith.addf %138, %137 : vector<8x128xf32>
    %140 = arith.divf %138, %139 : vector<8x128xf32>
    %141 = vector.extract_strided_slice %134 {offsets = [0, 128], sizes = [8, 128], strides = [1, 1]} : vector<8x512xf32> to vector<8x128xf32>
    %142 = arith.negf %141 : vector<8x128xf32>
    %143 = math.exp %142 : vector<8x128xf32>
    %cst_48 = arith.constant 1.000000e+00 : f32
    %144 = vector.broadcast %cst_48 : f32 to vector<8x128xf32>
    %145 = arith.addf %144, %143 : vector<8x128xf32>
    %146 = arith.divf %144, %145 : vector<8x128xf32>
    %147 = vector.extract_strided_slice %134 {offsets = [0, 256], sizes = [8, 128], strides = [1, 1]} : vector<8x512xf32> to vector<8x128xf32>
    %148 = math.tanh %147 : vector<8x128xf32>
    %149 = vector.extract_strided_slice %134 {offsets = [0, 384], sizes = [8, 128], strides = [1, 1]} : vector<8x512xf32> to vector<8x128xf32>
    %150 = arith.negf %149 : vector<8x128xf32>
    %151 = math.exp %150 : vector<8x128xf32>
    %cst_49 = arith.constant 1.000000e+00 : f32
    %152 = vector.broadcast %cst_49 : f32 to vector<8x128xf32>
    %153 = arith.addf %152, %151 : vector<8x128xf32>
    %154 = arith.divf %152, %153 : vector<8x128xf32>
    %155 = arith.mulf %146, %97 : vector<8x128xf32>
    %156 = arith.mulf %140, %148 : vector<8x128xf32>
    %157 = arith.addf %155, %156 : vector<8x128xf32>
    %158 = math.tanh %157 : vector<8x128xf32>
    %159 = arith.mulf %154, %158 : vector<8x128xf32>
    %c0_50 = arith.constant 0 : index
    %c0_51 = arith.constant 0 : index
    %160 = vector.load %arg5[%c0_50, %c0_51] : memref<128x512xf32, #tpu.memory_space<vmem>>, vector<128x512xf32>
    %c0_52 = arith.constant 0 : index
    %c0_53 = arith.constant 0 : index
    %161 = vector.load %arg4[%c0_52, %c0_53] : memref<128x512xf32, #tpu.memory_space<vmem>>, vector<128x512xf32>
    %cst_54 = arith.constant dense<0.000000e+00> : vector<8x512xf32>
    %162 = tpu.matmul %159, %161, %cst_54 {dimension_numbers = #tpu.dot_dimension_numbers<[1], [0], [0], [1], [0, 0, 1, 1], [], []>} : vector<8x128xf32>, vector<128x512xf32>, vector<8x512xf32> -> vector<8x512xf32>
    %163 = arith.addf %162, %9 : vector<8x512xf32>
    %cst_55 = arith.constant dense<0.000000e+00> : vector<8x512xf32>
    %164 = tpu.matmul %130, %160, %cst_55 {dimension_numbers = #tpu.dot_dimension_numbers<[1], [0], [0], [1], [0, 0, 1, 1], [], []>} : vector<8x128xf32>, vector<128x512xf32>, vector<8x512xf32> -> vector<8x512xf32>
    %165 = arith.addf %163, %164 : vector<8x512xf32>
    %166 = vector.extract_strided_slice %165 {offsets = [0, 0], sizes = [8, 128], strides = [1, 1]} : vector<8x512xf32> to vector<8x128xf32>
    %167 = arith.negf %166 : vector<8x128xf32>
    %168 = math.exp %167 : vector<8x128xf32>
    %cst_56 = arith.constant 1.000000e+00 : f32
    %169 = vector.broadcast %cst_56 : f32 to vector<8x128xf32>
    %170 = arith.addf %169, %168 : vector<8x128xf32>
    %171 = arith.divf %169, %170 : vector<8x128xf32>
    %172 = vector.extract_strided_slice %165 {offsets = [0, 128], sizes = [8, 128], strides = [1, 1]} : vector<8x512xf32> to vector<8x128xf32>
    %173 = arith.negf %172 : vector<8x128xf32>
    %174 = math.exp %173 : vector<8x128xf32>
    %cst_57 = arith.constant 1.000000e+00 : f32
    %175 = vector.broadcast %cst_57 : f32 to vector<8x128xf32>
    %176 = arith.addf %175, %174 : vector<8x128xf32>
    %177 = arith.divf %175, %176 : vector<8x128xf32>
    %178 = vector.extract_strided_slice %165 {offsets = [0, 256], sizes = [8, 128], strides = [1, 1]} : vector<8x512xf32> to vector<8x128xf32>
    %179 = math.tanh %178 : vector<8x128xf32>
    %180 = vector.extract_strided_slice %165 {offsets = [0, 384], sizes = [8, 128], strides = [1, 1]} : vector<8x512xf32> to vector<8x128xf32>
    %181 = arith.negf %180 : vector<8x128xf32>
    %182 = math.exp %181 : vector<8x128xf32>
    %cst_58 = arith.constant 1.000000e+00 : f32
    %183 = vector.broadcast %cst_58 : f32 to vector<8x128xf32>
    %184 = arith.addf %183, %182 : vector<8x128xf32>
    %185 = arith.divf %183, %184 : vector<8x128xf32>
    %186 = arith.mulf %177, %128 : vector<8x128xf32>
    %187 = arith.mulf %171, %179 : vector<8x128xf32>
    %188 = arith.addf %186, %187 : vector<8x128xf32>
    %189 = math.tanh %188 : vector<8x128xf32>
    %190 = arith.mulf %185, %189 : vector<8x128xf32>
    %c0_59 = arith.constant 0 : index
    %c0_60 = arith.constant 0 : index
    %191 = vector.load %arg2[%c0_59, %c0_60] : memref<128x512xf32, #tpu.memory_space<vmem>>, vector<128x512xf32>
    %c24 = arith.constant 24 : index
    %c0_61 = arith.constant 0 : index
    %192 = vector.load %arg10[%c24, %c0_61] : memref<64x512xf32, #tpu.memory_space<vmem>>, vector<8x512xf32>
    %cst_62 = arith.constant dense<0.000000e+00> : vector<8x512xf32>
    %193 = tpu.matmul %159, %191, %cst_62 {dimension_numbers = #tpu.dot_dimension_numbers<[1], [0], [0], [1], [0, 0, 1, 1], [], []>} : vector<8x128xf32>, vector<128x512xf32>, vector<8x512xf32> -> vector<8x512xf32>
    %194 = arith.addf %192, %193 : vector<8x512xf32>
    %195 = vector.extract_strided_slice %194 {offsets = [0, 0], sizes = [8, 128], strides = [1, 1]} : vector<8x512xf32> to vector<8x128xf32>
    %196 = arith.negf %195 : vector<8x128xf32>
    %197 = math.exp %196 : vector<8x128xf32>
    %cst_63 = arith.constant 1.000000e+00 : f32
    %198 = vector.broadcast %cst_63 : f32 to vector<8x128xf32>
    %199 = arith.addf %198, %197 : vector<8x128xf32>
    %200 = arith.divf %198, %199 : vector<8x128xf32>
    %201 = vector.extract_strided_slice %194 {offsets = [0, 128], sizes = [8, 128], strides = [1, 1]} : vector<8x512xf32> to vector<8x128xf32>
    %202 = arith.negf %201 : vector<8x128xf32>
    %203 = math.exp %202 : vector<8x128xf32>
    %cst_64 = arith.constant 1.000000e+00 : f32
    %204 = vector.broadcast %cst_64 : f32 to vector<8x128xf32>
    %205 = arith.addf %204, %203 : vector<8x128xf32>
    %206 = arith.divf %204, %205 : vector<8x128xf32>
    %207 = vector.extract_strided_slice %194 {offsets = [0, 256], sizes = [8, 128], strides = [1, 1]} : vector<8x512xf32> to vector<8x128xf32>
    %208 = math.tanh %207 : vector<8x128xf32>
    %209 = vector.extract_strided_slice %194 {offsets = [0, 384], sizes = [8, 128], strides = [1, 1]} : vector<8x512xf32> to vector<8x128xf32>
    %210 = arith.negf %209 : vector<8x128xf32>
    %211 = math.exp %210 : vector<8x128xf32>
    %cst_65 = arith.constant 1.000000e+00 : f32
    %212 = vector.broadcast %cst_65 : f32 to vector<8x128xf32>
    %213 = arith.addf %212, %211 : vector<8x128xf32>
    %214 = arith.divf %212, %213 : vector<8x128xf32>
    %215 = arith.mulf %206, %157 : vector<8x128xf32>
    %216 = arith.mulf %200, %208 : vector<8x128xf32>
    %217 = arith.addf %215, %216 : vector<8x128xf32>
    %218 = math.tanh %217 : vector<8x128xf32>
    %219 = arith.mulf %214, %218 : vector<8x128xf32>
    %c0_66 = arith.constant 0 : index
    %c0_67 = arith.constant 0 : index
    %220 = vector.load %arg5[%c0_66, %c0_67] : memref<128x512xf32, #tpu.memory_space<vmem>>, vector<128x512xf32>
    %c0_68 = arith.constant 0 : index
    %c0_69 = arith.constant 0 : index
    %221 = vector.load %arg4[%c0_68, %c0_69] : memref<128x512xf32, #tpu.memory_space<vmem>>, vector<128x512xf32>
    %cst_70 = arith.constant dense<0.000000e+00> : vector<8x512xf32>
    %222 = tpu.matmul %219, %221, %cst_70 {dimension_numbers = #tpu.dot_dimension_numbers<[1], [0], [0], [1], [0, 0, 1, 1], [], []>} : vector<8x128xf32>, vector<128x512xf32>, vector<8x512xf32> -> vector<8x512xf32>
    %223 = arith.addf %222, %9 : vector<8x512xf32>
    %cst_71 = arith.constant dense<0.000000e+00> : vector<8x512xf32>
    %224 = tpu.matmul %190, %220, %cst_71 {dimension_numbers = #tpu.dot_dimension_numbers<[1], [0], [0], [1], [0, 0, 1, 1], [], []>} : vector<8x128xf32>, vector<128x512xf32>, vector<8x512xf32> -> vector<8x512xf32>
    %225 = arith.addf %223, %224 : vector<8x512xf32>
    %226 = vector.extract_strided_slice %225 {offsets = [0, 0], sizes = [8, 128], strides = [1, 1]} : vector<8x512xf32> to vector<8x128xf32>
    %227 = arith.negf %226 : vector<8x128xf32>
    %228 = math.exp %227 : vector<8x128xf32>
    %cst_72 = arith.constant 1.000000e+00 : f32
    %229 = vector.broadcast %cst_72 : f32 to vector<8x128xf32>
    %230 = arith.addf %229, %228 : vector<8x128xf32>
    %231 = arith.divf %229, %230 : vector<8x128xf32>
    %232 = vector.extract_strided_slice %225 {offsets = [0, 128], sizes = [8, 128], strides = [1, 1]} : vector<8x512xf32> to vector<8x128xf32>
    %233 = arith.negf %232 : vector<8x128xf32>
    %234 = math.exp %233 : vector<8x128xf32>
    %cst_73 = arith.constant 1.000000e+00 : f32
    %235 = vector.broadcast %cst_73 : f32 to vector<8x128xf32>
    %236 = arith.addf %235, %234 : vector<8x128xf32>
    %237 = arith.divf %235, %236 : vector<8x128xf32>
    %238 = vector.extract_strided_slice %225 {offsets = [0, 256], sizes = [8, 128], strides = [1, 1]} : vector<8x512xf32> to vector<8x128xf32>
    %239 = math.tanh %238 : vector<8x128xf32>
    %240 = vector.extract_strided_slice %225 {offsets = [0, 384], sizes = [8, 128], strides = [1, 1]} : vector<8x512xf32> to vector<8x128xf32>
    %241 = arith.negf %240 : vector<8x128xf32>
    %242 = math.exp %241 : vector<8x128xf32>
    %cst_74 = arith.constant 1.000000e+00 : f32
    %243 = vector.broadcast %cst_74 : f32 to vector<8x128xf32>
    %244 = arith.addf %243, %242 : vector<8x128xf32>
    %245 = arith.divf %243, %244 : vector<8x128xf32>
    %246 = arith.mulf %237, %188 : vector<8x128xf32>
    %247 = arith.mulf %231, %239 : vector<8x128xf32>
    %248 = arith.addf %246, %247 : vector<8x128xf32>
    %249 = math.tanh %248 : vector<8x128xf32>
    %250 = arith.mulf %245, %249 : vector<8x128xf32>
    %c0_75 = arith.constant 0 : index
    %c0_76 = arith.constant 0 : index
    %251 = vector.load %arg2[%c0_75, %c0_76] : memref<128x512xf32, #tpu.memory_space<vmem>>, vector<128x512xf32>
    %c32 = arith.constant 32 : index
    %c0_77 = arith.constant 0 : index
    %252 = vector.load %arg10[%c32, %c0_77] : memref<64x512xf32, #tpu.memory_space<vmem>>, vector<8x512xf32>
    %cst_78 = arith.constant dense<0.000000e+00> : vector<8x512xf32>
    %253 = tpu.matmul %219, %251, %cst_78 {dimension_numbers = #tpu.dot_dimension_numbers<[1], [0], [0], [1], [0, 0, 1, 1], [], []>} : vector<8x128xf32>, vector<128x512xf32>, vector<8x512xf32> -> vector<8x512xf32>
    %254 = arith.addf %252, %253 : vector<8x512xf32>
    %255 = vector.extract_strided_slice %254 {offsets = [0, 0], sizes = [8, 128], strides = [1, 1]} : vector<8x512xf32> to vector<8x128xf32>
    %256 = arith.negf %255 : vector<8x128xf32>
    %257 = math.exp %256 : vector<8x128xf32>
    %cst_79 = arith.constant 1.000000e+00 : f32
    %258 = vector.broadcast %cst_79 : f32 to vector<8x128xf32>
    %259 = arith.addf %258, %257 : vector<8x128xf32>
    %260 = arith.divf %258, %259 : vector<8x128xf32>
    %261 = vector.extract_strided_slice %254 {offsets = [0, 128], sizes = [8, 128], strides = [1, 1]} : vector<8x512xf32> to vector<8x128xf32>
    %262 = arith.negf %261 : vector<8x128xf32>
    %263 = math.exp %262 : vector<8x128xf32>
    %cst_80 = arith.constant 1.000000e+00 : f32
    %264 = vector.broadcast %cst_80 : f32 to vector<8x128xf32>
    %265 = arith.addf %264, %263 : vector<8x128xf32>
    %266 = arith.divf %264, %265 : vector<8x128xf32>
    %267 = vector.extract_strided_slice %254 {offsets = [0, 256], sizes = [8, 128], strides = [1, 1]} : vector<8x512xf32> to vector<8x128xf32>
    %268 = math.tanh %267 : vector<8x128xf32>
    %269 = vector.extract_strided_slice %254 {offsets = [0, 384], sizes = [8, 128], strides = [1, 1]} : vector<8x512xf32> to vector<8x128xf32>
    %270 = arith.negf %269 : vector<8x128xf32>
    %271 = math.exp %270 : vector<8x128xf32>
    %cst_81 = arith.constant 1.000000e+00 : f32
    %272 = vector.broadcast %cst_81 : f32 to vector<8x128xf32>
    %273 = arith.addf %272, %271 : vector<8x128xf32>
    %274 = arith.divf %272, %273 : vector<8x128xf32>
    %275 = arith.mulf %266, %217 : vector<8x128xf32>
    %276 = arith.mulf %260, %268 : vector<8x128xf32>
    %277 = arith.addf %275, %276 : vector<8x128xf32>
    %278 = math.tanh %277 : vector<8x128xf32>
    %279 = arith.mulf %274, %278 : vector<8x128xf32>
    %c0_82 = arith.constant 0 : index
    %c0_83 = arith.constant 0 : index
    %280 = vector.load %arg5[%c0_82, %c0_83] : memref<128x512xf32, #tpu.memory_space<vmem>>, vector<128x512xf32>
    %c0_84 = arith.constant 0 : index
    %c0_85 = arith.constant 0 : index
    %281 = vector.load %arg4[%c0_84, %c0_85] : memref<128x512xf32, #tpu.memory_space<vmem>>, vector<128x512xf32>
    %cst_86 = arith.constant dense<0.000000e+00> : vector<8x512xf32>
    %282 = tpu.matmul %279, %281, %cst_86 {dimension_numbers = #tpu.dot_dimension_numbers<[1], [0], [0], [1], [0, 0, 1, 1], [], []>} : vector<8x128xf32>, vector<128x512xf32>, vector<8x512xf32> -> vector<8x512xf32>
    %283 = arith.addf %282, %9 : vector<8x512xf32>
    %cst_87 = arith.constant dense<0.000000e+00> : vector<8x512xf32>
    %284 = tpu.matmul %250, %280, %cst_87 {dimension_numbers = #tpu.dot_dimension_numbers<[1], [0], [0], [1], [0, 0, 1, 1], [], []>} : vector<8x128xf32>, vector<128x512xf32>, vector<8x512xf32> -> vector<8x512xf32>
    %285 = arith.addf %283, %284 : vector<8x512xf32>
    %286 = vector.extract_strided_slice %285 {offsets = [0, 0], sizes = [8, 128], strides = [1, 1]} : vector<8x512xf32> to vector<8x128xf32>
    %287 = arith.negf %286 : vector<8x128xf32>
    %288 = math.exp %287 : vector<8x128xf32>
    %cst_88 = arith.constant 1.000000e+00 : f32
    %289 = vector.broadcast %cst_88 : f32 to vector<8x128xf32>
    %290 = arith.addf %289, %288 : vector<8x128xf32>
    %291 = arith.divf %289, %290 : vector<8x128xf32>
    %292 = vector.extract_strided_slice %285 {offsets = [0, 128], sizes = [8, 128], strides = [1, 1]} : vector<8x512xf32> to vector<8x128xf32>
    %293 = arith.negf %292 : vector<8x128xf32>
    %294 = math.exp %293 : vector<8x128xf32>
    %cst_89 = arith.constant 1.000000e+00 : f32
    %295 = vector.broadcast %cst_89 : f32 to vector<8x128xf32>
    %296 = arith.addf %295, %294 : vector<8x128xf32>
    %297 = arith.divf %295, %296 : vector<8x128xf32>
    %298 = vector.extract_strided_slice %285 {offsets = [0, 256], sizes = [8, 128], strides = [1, 1]} : vector<8x512xf32> to vector<8x128xf32>
    %299 = math.tanh %298 : vector<8x128xf32>
    %300 = vector.extract_strided_slice %285 {offsets = [0, 384], sizes = [8, 128], strides = [1, 1]} : vector<8x512xf32> to vector<8x128xf32>
    %301 = arith.negf %300 : vector<8x128xf32>
    %302 = math.exp %301 : vector<8x128xf32>
    %cst_90 = arith.constant 1.000000e+00 : f32
    %303 = vector.broadcast %cst_90 : f32 to vector<8x128xf32>
    %304 = arith.addf %303, %302 : vector<8x128xf32>
    %305 = arith.divf %303, %304 : vector<8x128xf32>
    %306 = arith.mulf %297, %248 : vector<8x128xf32>
    %307 = arith.mulf %291, %299 : vector<8x128xf32>
    %308 = arith.addf %306, %307 : vector<8x128xf32>
    %309 = math.tanh %308 : vector<8x128xf32>
    %310 = arith.mulf %305, %309 : vector<8x128xf32>
    %c0_91 = arith.constant 0 : index
    %c0_92 = arith.constant 0 : index
    %311 = vector.load %arg2[%c0_91, %c0_92] : memref<128x512xf32, #tpu.memory_space<vmem>>, vector<128x512xf32>
    %c40 = arith.constant 40 : index
    %c0_93 = arith.constant 0 : index
    %312 = vector.load %arg10[%c40, %c0_93] : memref<64x512xf32, #tpu.memory_space<vmem>>, vector<8x512xf32>
    %cst_94 = arith.constant dense<0.000000e+00> : vector<8x512xf32>
    %313 = tpu.matmul %279, %311, %cst_94 {dimension_numbers = #tpu.dot_dimension_numbers<[1], [0], [0], [1], [0, 0, 1, 1], [], []>} : vector<8x128xf32>, vector<128x512xf32>, vector<8x512xf32> -> vector<8x512xf32>
    %314 = arith.addf %312, %313 : vector<8x512xf32>
    %315 = vector.extract_strided_slice %314 {offsets = [0, 0], sizes = [8, 128], strides = [1, 1]} : vector<8x512xf32> to vector<8x128xf32>
    %316 = arith.negf %315 : vector<8x128xf32>
    %317 = math.exp %316 : vector<8x128xf32>
    %cst_95 = arith.constant 1.000000e+00 : f32
    %318 = vector.broadcast %cst_95 : f32 to vector<8x128xf32>
    %319 = arith.addf %318, %317 : vector<8x128xf32>
    %320 = arith.divf %318, %319 : vector<8x128xf32>
    %321 = vector.extract_strided_slice %314 {offsets = [0, 128], sizes = [8, 128], strides = [1, 1]} : vector<8x512xf32> to vector<8x128xf32>
    %322 = arith.negf %321 : vector<8x128xf32>
    %323 = math.exp %322 : vector<8x128xf32>
    %cst_96 = arith.constant 1.000000e+00 : f32
    %324 = vector.broadcast %cst_96 : f32 to vector<8x128xf32>
    %325 = arith.addf %324, %323 : vector<8x128xf32>
    %326 = arith.divf %324, %325 : vector<8x128xf32>
    %327 = vector.extract_strided_slice %314 {offsets = [0, 256], sizes = [8, 128], strides = [1, 1]} : vector<8x512xf32> to vector<8x128xf32>
    %328 = math.tanh %327 : vector<8x128xf32>
    %329 = vector.extract_strided_slice %314 {offsets = [0, 384], sizes = [8, 128], strides = [1, 1]} : vector<8x512xf32> to vector<8x128xf32>
    %330 = arith.negf %329 : vector<8x128xf32>
    %331 = math.exp %330 : vector<8x128xf32>
    %cst_97 = arith.constant 1.000000e+00 : f32
    %332 = vector.broadcast %cst_97 : f32 to vector<8x128xf32>
    %333 = arith.addf %332, %331 : vector<8x128xf32>
    %334 = arith.divf %332, %333 : vector<8x128xf32>
    %335 = arith.mulf %326, %277 : vector<8x128xf32>
    %336 = arith.mulf %320, %328 : vector<8x128xf32>
    %337 = arith.addf %335, %336 : vector<8x128xf32>
    %338 = math.tanh %337 : vector<8x128xf32>
    %339 = arith.mulf %334, %338 : vector<8x128xf32>
    %c0_98 = arith.constant 0 : index
    %c0_99 = arith.constant 0 : index
    %340 = vector.load %arg5[%c0_98, %c0_99] : memref<128x512xf32, #tpu.memory_space<vmem>>, vector<128x512xf32>
    %c0_100 = arith.constant 0 : index
    %c0_101 = arith.constant 0 : index
    %341 = vector.load %arg4[%c0_100, %c0_101] : memref<128x512xf32, #tpu.memory_space<vmem>>, vector<128x512xf32>
    %cst_102 = arith.constant dense<0.000000e+00> : vector<8x512xf32>
    %342 = tpu.matmul %339, %341, %cst_102 {dimension_numbers = #tpu.dot_dimension_numbers<[1], [0], [0], [1], [0, 0, 1, 1], [], []>} : vector<8x128xf32>, vector<128x512xf32>, vector<8x512xf32> -> vector<8x512xf32>
    %343 = arith.addf %342, %9 : vector<8x512xf32>
    %cst_103 = arith.constant dense<0.000000e+00> : vector<8x512xf32>
    %344 = tpu.matmul %310, %340, %cst_103 {dimension_numbers = #tpu.dot_dimension_numbers<[1], [0], [0], [1], [0, 0, 1, 1], [], []>} : vector<8x128xf32>, vector<128x512xf32>, vector<8x512xf32> -> vector<8x512xf32>
    %345 = arith.addf %343, %344 : vector<8x512xf32>
    %346 = vector.extract_strided_slice %345 {offsets = [0, 0], sizes = [8, 128], strides = [1, 1]} : vector<8x512xf32> to vector<8x128xf32>
    %347 = arith.negf %346 : vector<8x128xf32>
    %348 = math.exp %347 : vector<8x128xf32>
    %cst_104 = arith.constant 1.000000e+00 : f32
    %349 = vector.broadcast %cst_104 : f32 to vector<8x128xf32>
    %350 = arith.addf %349, %348 : vector<8x128xf32>
    %351 = arith.divf %349, %350 : vector<8x128xf32>
    %352 = vector.extract_strided_slice %345 {offsets = [0, 128], sizes = [8, 128], strides = [1, 1]} : vector<8x512xf32> to vector<8x128xf32>
    %353 = arith.negf %352 : vector<8x128xf32>
    %354 = math.exp %353 : vector<8x128xf32>
    %cst_105 = arith.constant 1.000000e+00 : f32
    %355 = vector.broadcast %cst_105 : f32 to vector<8x128xf32>
    %356 = arith.addf %355, %354 : vector<8x128xf32>
    %357 = arith.divf %355, %356 : vector<8x128xf32>
    %358 = vector.extract_strided_slice %345 {offsets = [0, 256], sizes = [8, 128], strides = [1, 1]} : vector<8x512xf32> to vector<8x128xf32>
    %359 = math.tanh %358 : vector<8x128xf32>
    %360 = vector.extract_strided_slice %345 {offsets = [0, 384], sizes = [8, 128], strides = [1, 1]} : vector<8x512xf32> to vector<8x128xf32>
    %361 = arith.negf %360 : vector<8x128xf32>
    %362 = math.exp %361 : vector<8x128xf32>
    %cst_106 = arith.constant 1.000000e+00 : f32
    %363 = vector.broadcast %cst_106 : f32 to vector<8x128xf32>
    %364 = arith.addf %363, %362 : vector<8x128xf32>
    %365 = arith.divf %363, %364 : vector<8x128xf32>
    %366 = arith.mulf %357, %308 : vector<8x128xf32>
    %367 = arith.mulf %351, %359 : vector<8x128xf32>
    %368 = arith.addf %366, %367 : vector<8x128xf32>
    %369 = math.tanh %368 : vector<8x128xf32>
    %370 = arith.mulf %365, %369 : vector<8x128xf32>
    %c0_107 = arith.constant 0 : index
    %c0_108 = arith.constant 0 : index
    %371 = vector.load %arg2[%c0_107, %c0_108] : memref<128x512xf32, #tpu.memory_space<vmem>>, vector<128x512xf32>
    %c48 = arith.constant 48 : index
    %c0_109 = arith.constant 0 : index
    %372 = vector.load %arg10[%c48, %c0_109] : memref<64x512xf32, #tpu.memory_space<vmem>>, vector<8x512xf32>
    %cst_110 = arith.constant dense<0.000000e+00> : vector<8x512xf32>
    %373 = tpu.matmul %339, %371, %cst_110 {dimension_numbers = #tpu.dot_dimension_numbers<[1], [0], [0], [1], [0, 0, 1, 1], [], []>} : vector<8x128xf32>, vector<128x512xf32>, vector<8x512xf32> -> vector<8x512xf32>
    %374 = arith.addf %372, %373 : vector<8x512xf32>
    %375 = vector.extract_strided_slice %374 {offsets = [0, 0], sizes = [8, 128], strides = [1, 1]} : vector<8x512xf32> to vector<8x128xf32>
    %376 = arith.negf %375 : vector<8x128xf32>
    %377 = math.exp %376 : vector<8x128xf32>
    %cst_111 = arith.constant 1.000000e+00 : f32
    %378 = vector.broadcast %cst_111 : f32 to vector<8x128xf32>
    %379 = arith.addf %378, %377 : vector<8x128xf32>
    %380 = arith.divf %378, %379 : vector<8x128xf32>
    %381 = vector.extract_strided_slice %374 {offsets = [0, 128], sizes = [8, 128], strides = [1, 1]} : vector<8x512xf32> to vector<8x128xf32>
    %382 = arith.negf %381 : vector<8x128xf32>
    %383 = math.exp %382 : vector<8x128xf32>
    %cst_112 = arith.constant 1.000000e+00 : f32
    %384 = vector.broadcast %cst_112 : f32 to vector<8x128xf32>
    %385 = arith.addf %384, %383 : vector<8x128xf32>
    %386 = arith.divf %384, %385 : vector<8x128xf32>
    %387 = vector.extract_strided_slice %374 {offsets = [0, 256], sizes = [8, 128], strides = [1, 1]} : vector<8x512xf32> to vector<8x128xf32>
    %388 = math.tanh %387 : vector<8x128xf32>
    %389 = vector.extract_strided_slice %374 {offsets = [0, 384], sizes = [8, 128], strides = [1, 1]} : vector<8x512xf32> to vector<8x128xf32>
    %390 = arith.negf %389 : vector<8x128xf32>
    %391 = math.exp %390 : vector<8x128xf32>
    %cst_113 = arith.constant 1.000000e+00 : f32
    %392 = vector.broadcast %cst_113 : f32 to vector<8x128xf32>
    %393 = arith.addf %392, %391 : vector<8x128xf32>
    %394 = arith.divf %392, %393 : vector<8x128xf32>
    %395 = arith.mulf %386, %337 : vector<8x128xf32>
    %396 = arith.mulf %380, %388 : vector<8x128xf32>
    %397 = arith.addf %395, %396 : vector<8x128xf32>
    %398 = math.tanh %397 : vector<8x128xf32>
    %399 = arith.mulf %394, %398 : vector<8x128xf32>
    %c0_114 = arith.constant 0 : index
    %c0_115 = arith.constant 0 : index
    %400 = vector.load %arg5[%c0_114, %c0_115] : memref<128x512xf32, #tpu.memory_space<vmem>>, vector<128x512xf32>
    %c0_116 = arith.constant 0 : index
    %c0_117 = arith.constant 0 : index
    %401 = vector.load %arg4[%c0_116, %c0_117] : memref<128x512xf32, #tpu.memory_space<vmem>>, vector<128x512xf32>
    %cst_118 = arith.constant dense<0.000000e+00> : vector<8x512xf32>
    %402 = tpu.matmul %399, %401, %cst_118 {dimension_numbers = #tpu.dot_dimension_numbers<[1], [0], [0], [1], [0, 0, 1, 1], [], []>} : vector<8x128xf32>, vector<128x512xf32>, vector<8x512xf32> -> vector<8x512xf32>
    %403 = arith.addf %402, %9 : vector<8x512xf32>
    %cst_119 = arith.constant dense<0.000000e+00> : vector<8x512xf32>
    %404 = tpu.matmul %370, %400, %cst_119 {dimension_numbers = #tpu.dot_dimension_numbers<[1], [0], [0], [1], [0, 0, 1, 1], [], []>} : vector<8x128xf32>, vector<128x512xf32>, vector<8x512xf32> -> vector<8x512xf32>
    %405 = arith.addf %403, %404 : vector<8x512xf32>
    %406 = vector.extract_strided_slice %405 {offsets = [0, 0], sizes = [8, 128], strides = [1, 1]} : vector<8x512xf32> to vector<8x128xf32>
    %407 = arith.negf %406 : vector<8x128xf32>
    %408 = math.exp %407 : vector<8x128xf32>
    %cst_120 = arith.constant 1.000000e+00 : f32
    %409 = vector.broadcast %cst_120 : f32 to vector<8x128xf32>
    %410 = arith.addf %409, %408 : vector<8x128xf32>
    %411 = arith.divf %409, %410 : vector<8x128xf32>
    %412 = vector.extract_strided_slice %405 {offsets = [0, 128], sizes = [8, 128], strides = [1, 1]} : vector<8x512xf32> to vector<8x128xf32>
    %413 = arith.negf %412 : vector<8x128xf32>
    %414 = math.exp %413 : vector<8x128xf32>
    %cst_121 = arith.constant 1.000000e+00 : f32
    %415 = vector.broadcast %cst_121 : f32 to vector<8x128xf32>
    %416 = arith.addf %415, %414 : vector<8x128xf32>
    %417 = arith.divf %415, %416 : vector<8x128xf32>
    %418 = vector.extract_strided_slice %405 {offsets = [0, 256], sizes = [8, 128], strides = [1, 1]} : vector<8x512xf32> to vector<8x128xf32>
    %419 = math.tanh %418 : vector<8x128xf32>
    %420 = vector.extract_strided_slice %405 {offsets = [0, 384], sizes = [8, 128], strides = [1, 1]} : vector<8x512xf32> to vector<8x128xf32>
    %421 = arith.negf %420 : vector<8x128xf32>
    %422 = math.exp %421 : vector<8x128xf32>
    %cst_122 = arith.constant 1.000000e+00 : f32
    %423 = vector.broadcast %cst_122 : f32 to vector<8x128xf32>
    %424 = arith.addf %423, %422 : vector<8x128xf32>
    %425 = arith.divf %423, %424 : vector<8x128xf32>
    %426 = arith.mulf %417, %368 : vector<8x128xf32>
    %427 = arith.mulf %411, %419 : vector<8x128xf32>
    %428 = arith.addf %426, %427 : vector<8x128xf32>
    %429 = math.tanh %428 : vector<8x128xf32>
    %430 = arith.mulf %425, %429 : vector<8x128xf32>
    %c0_123 = arith.constant 0 : index
    %c0_124 = arith.constant 0 : index
    %431 = vector.load %arg2[%c0_123, %c0_124] : memref<128x512xf32, #tpu.memory_space<vmem>>, vector<128x512xf32>
    %c56 = arith.constant 56 : index
    %c0_125 = arith.constant 0 : index
    %432 = vector.load %arg10[%c56, %c0_125] : memref<64x512xf32, #tpu.memory_space<vmem>>, vector<8x512xf32>
    %cst_126 = arith.constant dense<0.000000e+00> : vector<8x512xf32>
    %433 = tpu.matmul %399, %431, %cst_126 {dimension_numbers = #tpu.dot_dimension_numbers<[1], [0], [0], [1], [0, 0, 1, 1], [], []>} : vector<8x128xf32>, vector<128x512xf32>, vector<8x512xf32> -> vector<8x512xf32>
    %434 = arith.addf %432, %433 : vector<8x512xf32>
    %435 = vector.extract_strided_slice %434 {offsets = [0, 0], sizes = [8, 128], strides = [1, 1]} : vector<8x512xf32> to vector<8x128xf32>
    %436 = arith.negf %435 : vector<8x128xf32>
    %437 = math.exp %436 : vector<8x128xf32>
    %cst_127 = arith.constant 1.000000e+00 : f32
    %438 = vector.broadcast %cst_127 : f32 to vector<8x128xf32>
    %439 = arith.addf %438, %437 : vector<8x128xf32>
    %440 = arith.divf %438, %439 : vector<8x128xf32>
    %441 = vector.extract_strided_slice %434 {offsets = [0, 128], sizes = [8, 128], strides = [1, 1]} : vector<8x512xf32> to vector<8x128xf32>
    %442 = arith.negf %441 : vector<8x128xf32>
    %443 = math.exp %442 : vector<8x128xf32>
    %cst_128 = arith.constant 1.000000e+00 : f32
    %444 = vector.broadcast %cst_128 : f32 to vector<8x128xf32>
    %445 = arith.addf %444, %443 : vector<8x128xf32>
    %446 = arith.divf %444, %445 : vector<8x128xf32>
    %447 = vector.extract_strided_slice %434 {offsets = [0, 256], sizes = [8, 128], strides = [1, 1]} : vector<8x512xf32> to vector<8x128xf32>
    %448 = math.tanh %447 : vector<8x128xf32>
    %449 = vector.extract_strided_slice %434 {offsets = [0, 384], sizes = [8, 128], strides = [1, 1]} : vector<8x512xf32> to vector<8x128xf32>
    %450 = arith.negf %449 : vector<8x128xf32>
    %451 = math.exp %450 : vector<8x128xf32>
    %cst_129 = arith.constant 1.000000e+00 : f32
    %452 = vector.broadcast %cst_129 : f32 to vector<8x128xf32>
    %453 = arith.addf %452, %451 : vector<8x128xf32>
    %454 = arith.divf %452, %453 : vector<8x128xf32>
    %455 = arith.mulf %446, %397 : vector<8x128xf32>
    %456 = arith.mulf %440, %448 : vector<8x128xf32>
    %457 = arith.addf %455, %456 : vector<8x128xf32>
    %458 = math.tanh %457 : vector<8x128xf32>
    %459 = arith.mulf %454, %458 : vector<8x128xf32>
    %c0_130 = arith.constant 0 : index
    %c0_131 = arith.constant 0 : index
    %460 = vector.load %arg5[%c0_130, %c0_131] : memref<128x512xf32, #tpu.memory_space<vmem>>, vector<128x512xf32>
    %c0_132 = arith.constant 0 : index
    %c0_133 = arith.constant 0 : index
    %461 = vector.load %arg4[%c0_132, %c0_133] : memref<128x512xf32, #tpu.memory_space<vmem>>, vector<128x512xf32>
    %cst_134 = arith.constant dense<0.000000e+00> : vector<8x512xf32>
    %462 = tpu.matmul %459, %461, %cst_134 {dimension_numbers = #tpu.dot_dimension_numbers<[1], [0], [0], [1], [0, 0, 1, 1], [], []>} : vector<8x128xf32>, vector<128x512xf32>, vector<8x512xf32> -> vector<8x512xf32>
    %463 = arith.addf %462, %9 : vector<8x512xf32>
    %cst_135 = arith.constant dense<0.000000e+00> : vector<8x512xf32>
    %464 = tpu.matmul %430, %460, %cst_135 {dimension_numbers = #tpu.dot_dimension_numbers<[1], [0], [0], [1], [0, 0, 1, 1], [], []>} : vector<8x128xf32>, vector<128x512xf32>, vector<8x512xf32> -> vector<8x512xf32>
    %465 = arith.addf %463, %464 : vector<8x512xf32>
    %466 = vector.extract_strided_slice %465 {offsets = [0, 0], sizes = [8, 128], strides = [1, 1]} : vector<8x512xf32> to vector<8x128xf32>
    %467 = arith.negf %466 : vector<8x128xf32>
    %468 = math.exp %467 : vector<8x128xf32>
    %cst_136 = arith.constant 1.000000e+00 : f32
    %469 = vector.broadcast %cst_136 : f32 to vector<8x128xf32>
    %470 = arith.addf %469, %468 : vector<8x128xf32>
    %471 = arith.divf %469, %470 : vector<8x128xf32>
    %472 = vector.extract_strided_slice %465 {offsets = [0, 128], sizes = [8, 128], strides = [1, 1]} : vector<8x512xf32> to vector<8x128xf32>
    %473 = arith.negf %472 : vector<8x128xf32>
    %474 = math.exp %473 : vector<8x128xf32>
    %cst_137 = arith.constant 1.000000e+00 : f32
    %475 = vector.broadcast %cst_137 : f32 to vector<8x128xf32>
    %476 = arith.addf %475, %474 : vector<8x128xf32>
    %477 = arith.divf %475, %476 : vector<8x128xf32>
    %478 = vector.extract_strided_slice %465 {offsets = [0, 256], sizes = [8, 128], strides = [1, 1]} : vector<8x512xf32> to vector<8x128xf32>
    %479 = math.tanh %478 : vector<8x128xf32>
    %480 = vector.extract_strided_slice %465 {offsets = [0, 384], sizes = [8, 128], strides = [1, 1]} : vector<8x512xf32> to vector<8x128xf32>
    %481 = arith.negf %480 : vector<8x128xf32>
    %482 = math.exp %481 : vector<8x128xf32>
    %cst_138 = arith.constant 1.000000e+00 : f32
    %483 = vector.broadcast %cst_138 : f32 to vector<8x128xf32>
    %484 = arith.addf %483, %482 : vector<8x128xf32>
    %485 = arith.divf %483, %484 : vector<8x128xf32>
    %486 = arith.mulf %477, %428 : vector<8x128xf32>
    %487 = arith.mulf %471, %479 : vector<8x128xf32>
    %488 = arith.addf %486, %487 : vector<8x128xf32>
    %489 = math.tanh %488 : vector<8x128xf32>
    %490 = arith.mulf %485, %489 : vector<8x128xf32>
    %c0_139 = arith.constant 0 : index
    %c0_140 = arith.constant 0 : index
    %491 = vector.load %arg7[%c0_139, %c0_140] : memref<128x128xf32, #tpu.memory_space<vmem>>, vector<128x128xf32>
    %cst_141 = arith.constant dense<0.000000e+00> : vector<8x128xf32>
    %492 = tpu.matmul %490, %491, %cst_141 {dimension_numbers = #tpu.dot_dimension_numbers<[1], [0], [0], [1], [0, 0, 1, 1], [], []>} : vector<8x128xf32>, vector<128x128xf32>, vector<8x128xf32> -> vector<8x128xf32>
    %c0_142 = arith.constant 0 : index
    %c0_143 = arith.constant 0 : index
    %493 = vector.load %arg8[%c0_142, %c0_143] : memref<1x128xf32, #tpu.memory_space<vmem>>, vector<1x128xf32>
    %494 = vector.broadcast %493 : vector<1x128xf32> to vector<8x128xf32>
    %495 = arith.addf %492, %494 : vector<8x128xf32>
    %c0_144 = arith.constant 0 : index
    %c0_145 = arith.constant 0 : index
    %496 = vector.load %arg9[%c0_144, %c0_145] : memref<8x128xf32, #tpu.memory_space<vmem>>, vector<8x128xf32>
    tpu.vector_store %arg9[%c0_144, %c0_145], %495 {strides = array<i32>} : memref<8x128xf32, #tpu.memory_space<vmem>>, vector<8x128xf32>,
    return
  }
}

</mosaic_0001>

<bundles_post_ra>
// kernel: lstm_model_forward.1
= control target key start
LH: loop header
LB: loop body
LE: loop exit
PB: predicated region body
PF: predicated region fallthrough
CT: control target
= control target key end

     0   :  { %14 = vsyncpa [#allocation4], 0  ;;  %s8291_s0 = inlined_call_operand.vmem [shape: f32[64,16], index: 0, kind: input, shape index: {}]   ;;  %s8292_s1 = inlined_call_operand.hbm [shape: f32[16,512], index: 1, kind: input, shape index: {}]   ;;  %s8293_s2 = inlined_call_operand.hbm [shape: f32[128,512], index: 2, kind: input, shape index: {}]   ;;  %s8294_s3 = inlined_call_operand.vmem [shape: f32[1,512], index: 3, kind: input, shape index: {}]   ;;  %s8295_s4 = inlined_call_operand.hbm [shape: f32[128,512], index: 4, kind: input, shape index: {}]   ;;  %s8296_s5 = inlined_call_operand.hbm [shape: f32[128,512], index: 5, kind: input, shape index: {}]   ;;  %s8297_s6 = inlined_call_operand.vmem [shape: f32[1,512], index: 6, kind: input, shape index: {}]   ;;  %s8298_s7 = inlined_call_operand.vmem [shape: f32[128,128], index: 7, kind: input, shape index: {}]   ;;  %s8299_s8 = inlined_call_operand.vmem [shape: f32[1,128], index: 8, kind: input, shape index: {}]   ;;  %s8300_s9 = inlined_call_operand.hbm [shape: f32[8,128], index: 9, kind: output, shape index: {}]  }
   0x1   :  { %15 = vsyncpa [#allocation7], 0 }
   0x2   :  { %16 = vsyncpa [#allocation10], 0 }
   0x3   :  { %17 = vsyncpa [#allocation5], 0  ;;  %s6819_s30 = smov [#allocation6]   ;;  %s6820_s11 = smov [#allocation3]  }
   0x4   :  { %s37_s10 = sshll.u32 %s6819_s30, 4  ;;  %s25_s12 = sshll.u32 %s6820_s11, 4  ;;  %s38_s10 = int_to_ptr.vmem [resolvable:$true] %s37_s10  ;;  %s6879_s12 = int_to_ptr.vmem [resolvable:$true] %s25_s12 }
   0x5   :  { %s6701_s15 = scalar_lea.hbm %s8293_s2, 8192 }
   0x6   :  { %p6702_p0 = scmp.ne.s32.totalorder %s8293_s2, %s6701_s15  ;;  %p6705_p1 = scmp.lt.u32.totalorder %s6701_s15, %s8293_s2 }
   0x8   :  { %p6707_p2 = pnand %p6705_p1, %p6702_p0 }
   0xa   :  { %6710 = shalt.err (!%p6707_p2)
}
   0xb   :  { %s6711_s20 = scalar_lea.vmem %s38_s10, 8192  ;;  %p6716_p4 = scmp.lt.s32.totalorder %s38_s10, %s38_s10 }
   0xc   :  { %p6712_p3 = scmp.ne.s32.totalorder %s38_s10, %s6711_s20  ;;  %p6717_p5 = scmp.lt.s32.totalorder %s6711_s20, %s6711_s20 }
   0xe   :  { %p6718_p6 = por %p6717_p5, %p6716_p4 }
  0x10   :  { %p6719_p7 = pnand %p6718_p6, %p6712_p3 }
  0x12   :  { %6722 = shalt.err (!%p6719_p7)
}
  0x13   :  { %s6821_s21 = smov 512   ;;  %s6822_s22 = smov 32  }
  0x14   :  { %43 = dma.hbm_to_vmem [thread:$0]  %s8293_s2, 8192, %s38_s10, [#allocation7], %s6821_s21, %s6821_s21, %s6822_s22  }
  0x15   :  { %s6723_s27 = scalar_lea.hbm %s8292_s1, 1024 }
  0x16   :  { %p6724_p8 = scmp.ne.s32.totalorder %s8292_s1, %s6723_s27  ;;  %p6727_p9 = scmp.lt.u32.totalorder %s6723_s27, %s8292_s1 }
  0x18   :  { %p6729_p10 = pnand %p6727_p9, %p6724_p8 }
  0x1a   :  { %6732 = shalt.err (!%p6729_p10)
}
  0x1b   :  { %s6733_s13 = scalar_lea.vmem %s6879_s12, 1024  ;;  %p6738_p12 = scmp.lt.s32.totalorder %s6879_s12, %s6879_s12 }
  0x1c   :  { %p6734_p11 = scmp.ne.s32.totalorder %s6879_s12, %s6733_s13  ;;  %p6739_p13 = scmp.lt.s32.totalorder %s6733_s13, %s6733_s13 }
  0x1e   :  { %p6740_p0 = por %p6739_p13, %p6738_p12 }
  0x20   :  { %p6741_p1 = pnand %p6740_p0, %p6734_p11 }
  0x22   :  { %6744 = shalt.err (!%p6741_p1)
}
  0x23   :  { %31 = dma.hbm_to_vmem [thread:$0]  %s8292_s1, 1024, %s6879_s12, [#allocation4], %s6821_s21, %s6821_s21, %s6822_s22  }
  0x24   :  { %s6823_s14 = smov [#allocation8]   ;;  %s6824_s16 = smov [#allocation9]  }
  0x25   :  { %s51_s15 = sshll.u32 %s6823_s14, 4  ;;  %s63_s17 = sshll.u32 %s6824_s16, 4  ;;  %s52_s15 = int_to_ptr.vmem [resolvable:$true] %s51_s15  ;;  %s6916_s17 = int_to_ptr.vmem [resolvable:$true] %s63_s17 }
  0x26   :  { %s6745_s20 = scalar_lea.hbm %s8295_s4, 8192 }
  0x27   :  { %p6746_p2 = scmp.ne.s32.totalorder %s8295_s4, %s6745_s20  ;;  %p6749_p3 = scmp.lt.u32.totalorder %s6745_s20, %s8295_s4 }
  0x29   :  { %p6751_p4 = pnand %p6749_p3, %p6746_p2 }
  0x2b   :  { %6754 = shalt.err (!%p6751_p4)
}
  0x2c   :  { %s6755_s1 = scalar_lea.vmem %s52_s15, 8192  ;;  %p6760_p6 = scmp.lt.s32.totalorder %s52_s15, %s52_s15 }
  0x2d   :  { %p6756_p5 = scmp.ne.s32.totalorder %s52_s15, %s6755_s1  ;;  %p6761_p7 = scmp.lt.s32.totalorder %s6755_s1, %s6755_s1 }
  0x2f   :  { %p6762_p8 = por %p6761_p7, %p6760_p6 }
  0x31   :  { %p6763_p9 = pnand %p6762_p8, %p6756_p5 }
  0x33   :  { %6766 = shalt.err (!%p6763_p9)
}
  0x34   :  { %57 = dma.hbm_to_vmem [thread:$0]  %s8295_s4, 8192, %s52_s15, [#allocation7], %s6821_s21, %s6821_s21, %s6822_s22  }
  0x35   :  { %s6767_s30 = scalar_lea.hbm %s8296_s5, 8192 }
  0x36   :  { %p6768_p10 = scmp.ne.s32.totalorder %s8296_s5, %s6767_s30  ;;  %p6771_p11 = scmp.lt.u32.totalorder %s6767_s30, %s8296_s5 }
  0x38   :  { %p6773_p12 = pnand %p6771_p11, %p6768_p10 }
  0x3a   :  { %6776 = shalt.err (!%p6773_p12)
}
  0x3b   :  { %s6777_s14 = scalar_lea.vmem %s6916_s17, 8192  ;;  %p6782_p0 = scmp.lt.s32.totalorder %s6916_s17, %s6916_s17 }
  0x3c   :  { %p6778_p13 = scmp.ne.s32.totalorder %s6916_s17, %s6777_s14  ;;  %p6783_p1 = scmp.lt.s32.totalorder %s6777_s14, %s6777_s14 }
  0x3e   :  { %p6784_p2 = por %p6783_p1, %p6782_p0 }
  0x40   :  { %p6785_p3 = pnand %p6784_p2, %p6778_p13 }
  0x42   :  { %6788 = shalt.err (!%p6785_p3)
}
  0x43   :  { %69 = dma.hbm_to_vmem [thread:$0]  %s8296_s5, 8192, %s6916_s17, [#allocation10], %s6821_s21, %s6821_s21, %s6822_s22  }
  0x44   :  { %6811 = dma.done.wait [#allocation4], 1024  }
  0x45   :  { %6812 = vsyncadd [#allocation4], 4294966272 }
  0x46   :  { %6813 = dma.done.wait [#allocation7], 16384  }
  0x47   :  { %6814 = vsyncadd [#allocation7], 4294950912 }
  0x48   :  { %6815 = dma.done.wait [#allocation10], 8192  }
  0x49   :  { %6816 = vsyncadd [#allocation10], 4294959104  ;;  %v8301_v0 = vmov 0.0   ;;  %v97_v1 = vld [vmem:[#allocation3 + $0x8] sm:$0xff]  ;;  %v99_v3 = vld [vmem:[#allocation3 + $0x18] sm:$0xff]  ;;  %vm126_vm0 = vcmask 130048  }
  0x4a   :  { %215 = vmatprep.mubr.f32.mxu0 %v8301_v0  ;;  %328 = vmatprep.mubr.f32.mxu1 %v8301_v0  ;;  %v101_v2 = vld [vmem:[#allocation3 + $0x28] sm:$0xff]  ;;  %v103_v5 = vld [vmem:[#allocation3 + $0x38] sm:$0xff]  ;;  %v96_v6 = vld [vmem:[#allocation3] sm:$0xff]  ;;  %vm6827_vm1 = vmmov 0   ;;  %s6828_s14 = smov [#allocation11]  }
  0x4b   :  { %v4739_v4 = vpack.c.bf16 %v101_v2, %v97_v1  ;;  %v100_v7 = vld [vmem:[#allocation3 + $0x20] sm:$0xff]  ;;  %v4743_v8 = vpack.c.bf16 %v103_v5, %v99_v3  ;;  %v98_v10 = vld [vmem:[#allocation3 + $0x10] sm:$0xff]  ;;  %v432_v14 = vld [vmem:[#allocation6 + $0x8] sm:$0xff]  ;;  %s4611_s4 = sshll.u32 %s6828_s14, 4  ;;  %s4612_s4 = int_to_ptr.vmem [resolvable:$true] %s4611_s4 }
  0x4c   :  { %v4741_v9 = vpack.c.bf16 %v100_v7, %v96_v6  ;;  %v102_v11 = vld [vmem:[#allocation3 + $0x30] sm:$0xff]  ;;  %v88_v12 = vld [vmem:[%s8291_s0] sm:$0xff]  ;;  %v436_v15 = vld [vmem:[#allocation6 + $0x28] sm:$0xff]  ;;  %s6789_s15 = scalar_lea.vmem %s4612_s4, 128  ;;  %p6794_p5 = scmp.lt.s32.totalorder %s4612_s4, %s4612_s4 }
  0x4d   :  { %4740 = vmatprep.subr.bf16.mxu0 %v4739_v4  ;;  %v4745_v13 = vpack.c.bf16 %v102_v11, %v98_v10  ;;  %v434_v16 = vld [vmem:[#allocation6 + $0x18] sm:$0xff]  ;;  %4744 = vmatprep.subr.bf16.mxu1 %v4743_v8  ;;  %v6958_v17 = vpack.c.bf16 %v436_v15, %v432_v14  ;;  %v431_v19 = vld [vmem:[#allocation6] sm:$0xff]  ;;  %v433_v23 = vld [vmem:[#allocation6 + $0x10] sm:$0xff]  ;;  %p6790_p4 = scmp.ne.s32.totalorder %s4612_s4, %s6789_s15  ;;  %p6795_p6 = scmp.lt.s32.totalorder %s6789_s15, %s6789_s15 }
  0x4e   :  { %4742 = vmatpush1.bf16.msra.mxu0 %v4741_v9  ;;  %v438_v18 = vld [vmem:[#allocation6 + $0x38] sm:$0xff]  ;;  %v435_v20 = vld [vmem:[#allocation6 + $0x20] sm:$0xff]  ;;  %v437_v24 = vld [vmem:[#allocation6 + $0x30] sm:$0xff] }
  0x4f   :  { %4746 = vmatpush1.bf16.msra.mxu1 %v4745_v13  ;;  %v6960_v21 = vpack.c.bf16 %v438_v18, %v434_v16  ;;  %v6962_v22 = vpack.c.bf16 %v435_v20, %v431_v19  ;;  %4748 = vmatprep.subr.bf16.mxu0 %v6958_v17  ;;  %v6965_v25 = vpack.c.bf16 %v437_v24, %v433_v23  ;;  %v440_v26 = vld [vmem:[#allocation6 + $0x48] sm:$0xff]  ;;  %v442_v28 = vld [vmem:[#allocation6 + $0x58] sm:$0xff]  ;;  %v439_v31 = vld [vmem:[#allocation6 + $0x40] sm:$0xff]  ;;  %p6796_p7 = por %p6795_p6, %p6794_p5 }
  0x50   :  { %v444_v27 = vld [vmem:[#allocation6 + $0x68] sm:$0xff]  ;;  %v446_v30 = vld [vmem:[#allocation6 + $0x78] sm:$0xff]  ;;  %v443_v32 = vld [vmem:[#allocation6 + $0x60] sm:$0xff] }
  0x51   :  { %4622 = vmatmul.mubr.msk.f32.vlgmr.msra.gmra.mrb[0].mxu0 %vm126_vm0, %v88_v12  ;;  %4780 = vmatprep.subr.bf16.mxu1 %v6960_v21  ;;  %v6969_v29 = vpack.c.bf16 %v444_v27, %v440_v26  ;;  %v89_v33 = vld [vmem:[%s8291_s0 + $0x8] sm:$0xff]  ;;  %v6976_v34 = vpack.c.bf16 %v446_v30, %v442_v28  ;;  %v6978_v35 = vpack.c.bf16 %v443_v32, %v439_v31  ;;  %v441_v36 = vld [vmem:[#allocation6 + $0x50] sm:$0xff]  ;;  %v450_v41 = vld [vmem:[#allocation6 + $0x98] sm:$0xff]  ;;  %p6797_p8 = pnand %p6796_p7, %p6790_p4 }
  0x52   :  { %4630 = vmatmul.mubr.msk.f32.vlgmr.msra.gmra.mrb[0].mxu1 %vm126_vm0, %v88_v12  ;;  %4750 = vmatpush1.bf16.msra.mxu0 %v6962_v22  ;;  %v445_v37 = vld [vmem:[#allocation6 + $0x70] sm:$0xff]  ;;  %v448_v39 = vld [vmem:[#allocation6 + $0x88] sm:$0xff]  ;;  %v454_v43 = vld [vmem:[#allocation6 + $0xb8] sm:$0xff] }
  0x53   :  { %4782 = vmatpush1.bf16.msra.mxu1 %v6965_v25  ;;  %221 = vmatprep.mubr.f32.mxu0 %v8301_v0  ;;  %v6982_v38 = vpack.c.bf16 %v445_v37, %v441_v36  ;;  %v452_v40 = vld [vmem:[#allocation6 + $0xa8] sm:$0xff]  ;;  %v447_v44 = vld [vmem:[#allocation6 + $0x80] sm:$0xff]  ;;  %v90_v46 = vld [vmem:[%s8291_s0 + $0x10] sm:$0xff]  ;;  %v6993_v47 = vpack.c.bf16 %v454_v43, %v450_v41 }
  0x54   :  { %334 = vmatprep.mubr.f32.mxu1 %v8301_v0  ;;  %4752 = vmatprep.subr.bf16.mxu0 %v6969_v29  ;;  %v6986_v42 = vpack.c.bf16 %v452_v40, %v448_v39  ;;  %v451_v45 = vld [vmem:[#allocation6 + $0xa0] sm:$0xff]  ;;  %v449_v48 = vld [vmem:[#allocation6 + $0x90] sm:$0xff]  ;;  %v456_v51 = vld [vmem:[#allocation6 + $0xc8] sm:$0xff] }
  0x55   :  { %8480 = vst [vmem:[#allocation16_spill] sm:$0xff] %v6982_v38  ;;  %4623 = vmatmul.mubr.msk.f32.gmra.mrb[2].mxu0 %vm126_vm0, %v89_v33  ;;  %4784 = vmatprep.subr.bf16.mxu1 %v6976_v34  ;;  %8482 = vst [vmem:[#allocation18_spill] sm:$0xff] %v6993_v47  ;;  %v453_v49 = vld [vmem:[#allocation6 + $0xb0] sm:$0xff]  ;;  %v6997_v50 = vpack.c.bf16 %v451_v45, %v447_v44  ;;  %v460_v52 = vld [vmem:[#allocation6 + $0xe8] sm:$0xff] }
  0x56   :  { %8481 = vst [vmem:[#allocation17_spill] sm:$0xff] %v6986_v42  ;;  %4631 = vmatmul.mubr.msk.f32.gmra.mrb[2].mxu1 %vm126_vm0, %v89_v33  ;;  %4754 = vmatpush1.bf16.msra.mxu0 %v6978_v35  ;;  %v458_v53 = vld [vmem:[#allocation6 + $0xd8] sm:$0xff]  ;;  %v7001_v54 = vpack.c.bf16 %v453_v49, %v449_v48  ;;  %v455_v56 = vld [vmem:[#allocation6 + $0xc0] sm:$0xff]  ;;  %v7005_v58 = vpack.c.bf16 %v460_v52, %v456_v51  ;;  %v457_v59 = vld [vmem:[#allocation6 + $0xd0] sm:$0xff] }
  0x57   :  { %8483 = vst [vmem:[#allocation19_spill] sm:$0xff] %v6997_v50  ;;  %4786 = vmatpush1.bf16.msra.mxu1 %v6982_v38  ;;  %227 = vmatprep.mubr.f32.mxu0 %v8301_v0  ;;  %v462_v55 = vld [vmem:[#allocation6 + $0xf8] sm:$0xff]  ;;  %v459_v57 = vld [vmem:[#allocation6 + $0xe0] sm:$0xff]  ;;  %v461_v60 = vld [vmem:[#allocation6 + $0xf0] sm:$0xff] }
  0x58   :  { %8484 = vst [vmem:[#allocation20_spill] sm:$0xff] %v7001_v54  ;;  %340 = vmatprep.mubr.f32.mxu1 %v8301_v0  ;;  %4756 = vmatprep.subr.bf16.mxu0 %v6986_v42  ;;  %8485 = vst [vmem:[#allocation21_spill] sm:$0xff] %v7005_v58  ;;  %v7009_v61 = vpack.c.bf16 %v462_v55, %v458_v53  ;;  %v464_v62 = vld [vmem:[#allocation6 + $0x108] sm:$0xff]  ;;  %v91_v1 = vld [vmem:[%s8291_s0 + $0x18] sm:$0xff]  ;;  %v7016_v2 = vpack.c.bf16 %v459_v57, %v455_v56 }
  0x59   :  { %4624 = vmatmul.mubr.msk.f32.gmra.mrb[4].mxu0 %vm126_vm0, %v90_v46  ;;  %4788 = vmatprep.subr.bf16.mxu1 %v6993_v47  ;;  %v468_v63 = vld [vmem:[#allocation6 + $0x128] sm:$0xff]  ;;  %v466_v3 = vld [vmem:[#allocation6 + $0x118] sm:$0xff]  ;;  %v7020_v5 = vpack.c.bf16 %v461_v60, %v457_v59  ;;  %v463_v6 = vld [vmem:[#allocation6 + $0x100] sm:$0xff] }
  0x5a   :  { %8486 = vst [vmem:[#allocation22_spill] sm:$0xff] %v7009_v61  ;;  %4632 = vmatmul.mubr.msk.f32.gmra.mrb[4].mxu1 %vm126_vm0, %v90_v46  ;;  %4758 = vmatpush1.bf16.msra.mxu0 %v6997_v50  ;;  %8487 = vst [vmem:[#allocation23_spill] sm:$0xff] %v7016_v2  ;;  %v470_v4 = vld [vmem:[#allocation6 + $0x138] sm:$0xff]  ;;  %v467_v7 = vld [vmem:[#allocation6 + $0x120] sm:$0xff]  ;;  %v7024_v8 = vpack.c.bf16 %v468_v63, %v464_v62 }
  0x5b   :  { %4790 = vmatpush1.bf16.msra.mxu1 %v7001_v54  ;;  %233 = vmatprep.mubr.f32.mxu0 %v8301_v0  ;;  %8488 = vst [vmem:[#allocation24_spill] sm:$0xff] %v7020_v5  ;;  %v465_v9 = vld [vmem:[#allocation6 + $0x110] sm:$0xff]  ;;  %v7028_v11 = vpack.c.bf16 %v470_v4, %v466_v3  ;;  %v472_v12 = vld [vmem:[#allocation6 + $0x148] sm:$0xff]  ;;  %v92_v14 = vld [vmem:[%s8291_s0 + $0x20] sm:$0xff]  ;;  %v7035_v15 = vpack.c.bf16 %v467_v7, %v463_v6 }
  0x5c   :  { %346 = vmatprep.mubr.f32.mxu1 %v8301_v0  ;;  %4760 = vmatprep.subr.bf16.mxu0 %v7005_v58  ;;  %8489 = vst [vmem:[#allocation25_spill] sm:$0xff] %v7024_v8  ;;  %v469_v10 = vld [vmem:[#allocation6 + $0x130] sm:$0xff]  ;;  %v476_v13 = vld [vmem:[#allocation6 + $0x168] sm:$0xff]  ;;  %v474_v16 = vld [vmem:[#allocation6 + $0x158] sm:$0xff] }
  0x5d   :  { %4625 = vmatmul.mubr.msk.f32.gmra.mrb[6].mxu0 %vm126_vm0, %v91_v1  ;;  %4792 = vmatprep.subr.bf16.mxu1 %v7009_v61  ;;  %8490 = vst [vmem:[#allocation26_spill] sm:$0xff] %v7028_v11  ;;  %8491 = vst [vmem:[#allocation27_spill] sm:$0xff] %v7035_v15  ;;  %v478_v18 = vld [vmem:[#allocation6 + $0x178] sm:$0xff]  ;;  %v7039_v19 = vpack.c.bf16 %v469_v10, %v465_v9  ;;  %v471_v20 = vld [vmem:[#allocation6 + $0x140] sm:$0xff]  ;;  %v7043_v24 = vpack.c.bf16 %v476_v13, %v472_v12 }
  0x5e   :  { %4633 = vmatmul.mubr.msk.f32.gmra.mrb[6].mxu1 %vm126_vm0, %v91_v1  ;;  %4762 = vmatpush1.bf16.msra.mxu0 %v7016_v2  ;;  %v475_v23 = vld [vmem:[#allocation6 + $0x160] sm:$0xff]  ;;  %v473_v26 = vld [vmem:[#allocation6 + $0x150] sm:$0xff]  ;;  %v7047_v28 = vpack.c.bf16 %v478_v18, %v474_v16  ;;  %v480_v30 = vld [vmem:[#allocation6 + $0x188] sm:$0xff] }
  0x5f   :  { %4794 = vmatpush1.bf16.msra.mxu1 %v7020_v5  ;;  %239 = vmatprep.mubr.f32.mxu0 %v8301_v0  ;;  %8492 = vst [vmem:[#allocation28_spill] sm:$0xff] %v7039_v19  ;;  %8493 = vst [vmem:[#allocation29_spill] sm:$0xff] %v7043_v24  ;;  %v477_v27 = vld [vmem:[#allocation6 + $0x170] sm:$0xff]  ;;  %v484_v31 = vld [vmem:[#allocation6 + $0x1a8] sm:$0xff]  ;;  %v7054_v33 = vpack.c.bf16 %v475_v23, %v471_v20 }
  0x60   :  { %352 = vmatprep.mubr.f32.mxu1 %v8301_v0  ;;  %4764 = vmatprep.subr.bf16.mxu0 %v7024_v8  ;;  %8494 = vst [vmem:[#allocation30_spill] sm:$0xff] %v7047_v28  ;;  %v93_v32 = vld [vmem:[%s8291_s0 + $0x28] sm:$0xff]  ;;  %v482_v36 = vld [vmem:[#allocation6 + $0x198] sm:$0xff]  ;;  %v7058_v39 = vpack.c.bf16 %v477_v27, %v473_v26  ;;  %v479_v40 = vld [vmem:[#allocation6 + $0x180] sm:$0xff]  ;;  %v7062_v43 = vpack.c.bf16 %v484_v31, %v480_v30 }
  0x61   :  { %4626 = vmatmul.mubr.msk.f32.gmra.mrb[8].mxu0 %vm126_vm0, %v92_v14  ;;  %4796 = vmatprep.subr.bf16.mxu1 %v7028_v11  ;;  %8495 = vst [vmem:[#allocation31_spill] sm:$0xff] %v7054_v33  ;;  %v486_v37 = vld [vmem:[#allocation6 + $0x1b8] sm:$0xff]  ;;  %v483_v41 = vld [vmem:[#allocation6 + $0x1a0] sm:$0xff]  ;;  %v481_v44 = vld [vmem:[#allocation6 + $0x190] sm:$0xff] }
  0x62   :  { %4634 = vmatmul.mubr.msk.f32.gmra.mrb[8].mxu1 %vm126_vm0, %v92_v14  ;;  %4766 = vmatpush1.bf16.msra.mxu0 %v7035_v15  ;;  %8496 = vst [vmem:[#allocation32_spill] sm:$0xff] %v7058_v39  ;;  %8497 = vst [vmem:[#allocation33_spill] sm:$0xff] %v7062_v43  ;;  %v485_v45 = vld [vmem:[#allocation6 + $0x1b0] sm:$0xff]  ;;  %v7066_v46 = vpack.c.bf16 %v486_v37, %v482_v36  ;;  %v488_v48 = vld [vmem:[#allocation6 + $0x1c8] sm:$0xff]  ;;  %v7073_v52 = vpack.c.bf16 %v483_v41, %v479_v40 }
  0x63   :  { %4798 = vmatpush1.bf16.msra.mxu1 %v7039_v19  ;;  %245 = vmatprep.mubr.f32.mxu0 %v8301_v0  ;;  %v492_v49 = vld [vmem:[#allocation6 + $0x1e8] sm:$0xff]  ;;  %v94_v51 = vld [vmem:[%s8291_s0 + $0x30] sm:$0xff]  ;;  %v490_v53 = vld [vmem:[#allocation6 + $0x1d8] sm:$0xff]  ;;  %v7077_v56 = vpack.c.bf16 %v485_v45, %v481_v44 }
  0x64   :  { %358 = vmatprep.mubr.f32.mxu1 %v8301_v0  ;;  %4768 = vmatprep.subr.bf16.mxu0 %v7043_v24  ;;  %8498 = vst [vmem:[#allocation34_spill] sm:$0xff] %v7066_v46  ;;  %8499 = vst [vmem:[#allocation35_spill] sm:$0xff] %v7073_v52  ;;  %v494_v55 = vld [vmem:[#allocation6 + $0x1f8] sm:$0xff]  ;;  %v487_v57 = vld [vmem:[#allocation6 + $0x1c0] sm:$0xff]  ;;  %v7081_v60 = vpack.c.bf16 %v492_v49, %v488_v48 }
  0x65   :  { %4627 = vmatmul.mubr.msk.f32.gmra.mrb[10].mxu0 %vm126_vm0, %v93_v32  ;;  %4800 = vmatprep.subr.bf16.mxu1 %v7047_v28  ;;  %8500 = vst [vmem:[#allocation36_spill] sm:$0xff] %v7077_v56  ;;  %v491_v59 = vld [vmem:[#allocation6 + $0x1e0] sm:$0xff]  ;;  %v489_v62 = vld [vmem:[#allocation6 + $0x1d0] sm:$0xff]  ;;  %v7085_v1 = vpack.c.bf16 %v494_v55, %v490_v53  ;;  %v95_v3 = vld [vmem:[%s8291_s0 + $0x38] sm:$0xff] }
  0x66   :  { %4635 = vmatmul.mubr.msk.f32.gmra.mrb[10].mxu1 %vm126_vm0, %v93_v32  ;;  %4770 = vmatpush1.bf16.msra.mxu0 %v7054_v33  ;;  %8501 = vst [vmem:[#allocation37_spill] sm:$0xff] %v7081_v60  ;;  %v493_v63 = vld [vmem:[#allocation6 + $0x1f0] sm:$0xff]  ;;  %v7092_v4 = vpack.c.bf16 %v491_v59, %v487_v57  ;;  %v734_v7 = vld [vmem:[#allocation8 + $0x8] sm:$0xff]  ;;  %v736_v10 = vld [vmem:[#allocation8 + $0x18] sm:$0xff] }
  0x67   :  { %4802 = vmatpush1.bf16.msra.mxu1 %v7058_v39  ;;  %251 = vmatprep.mubr.f32.mxu0 %v8301_v0  ;;  %8502 = vst [vmem:[#allocation38_spill] sm:$0xff] %v7085_v1  ;;  %v7096_v6 = vpack.c.bf16 %v493_v63, %v489_v62  ;;  %v738_v9 = vld [vmem:[#allocation8 + $0x28] sm:$0xff]  ;;  %v740_v13 = vld [vmem:[#allocation8 + $0x38] sm:$0xff]  ;;  %v733_v14 = vld [vmem:[#allocation8] sm:$0xff] }
  0x68   :  { %364 = vmatprep.mubr.f32.mxu1 %v8301_v0  ;;  %4772 = vmatprep.subr.bf16.mxu0 %v7062_v43  ;;  %8503 = vst [vmem:[#allocation39_spill] sm:$0xff] %v7092_v4  ;;  %v7111_v12 = vpack.c.bf16 %v738_v9, %v734_v7  ;;  %v737_v16 = vld [vmem:[#allocation8 + $0x20] sm:$0xff]  ;;  %v7113_v18 = vpack.c.bf16 %v740_v13, %v736_v10  ;;  %v735_v23 = vld [vmem:[#allocation8 + $0x10] sm:$0xff]  ;;  %v742_v30 = vld [vmem:[#allocation8 + $0x48] sm:$0xff] }
  0x69   :  { %4628 = vmatmul.mubr.msk.f32.gmra.mrb[12].mxu0 %vm126_vm0, %v94_v51  ;;  %4804 = vmatprep.subr.bf16.mxu1 %v7066_v46  ;;  %8504 = vst [vmem:[#allocation40_spill] sm:$0xff] %v7096_v6  ;;  %v7115_v20 = vpack.c.bf16 %v737_v16, %v733_v14  ;;  %v739_v26 = vld [vmem:[#allocation8 + $0x30] sm:$0xff]  ;;  %v746_v31 = vld [vmem:[#allocation8 + $0x68] sm:$0xff]  ;;  %v744_v32 = vld [vmem:[#allocation8 + $0x58] sm:$0xff] }
  0x6a   :  { %4636 = vmatmul.mubr.msk.f32.gmra.mrb[12].mxu1 %vm126_vm0, %v94_v51  ;;  %4774 = vmatpush1.bf16.msra.mxu0 %v7073_v52  ;;  %8505 = vst [vmem:[#allocation41_spill] sm:$0xff] %v7111_v12  ;;  %8506 = vst [vmem:[#allocation42_spill] sm:$0xff] %v7113_v18  ;;  %v7118_v27 = vpack.c.bf16 %v739_v26, %v735_v23  ;;  %v7123_v36 = vpack.c.bf16 %v746_v31, %v742_v30  ;;  %v748_v37 = vld [vmem:[#allocation8 + $0x78] sm:$0xff]  ;;  %v741_v40 = vld [vmem:[#allocation8 + $0x40] sm:$0xff] }
  0x6b   :  { %4806 = vmatpush1.bf16.msra.mxu1 %v7077_v56  ;;  %257 = vmatprep.mubr.f32.mxu0 %v8301_v0  ;;  %8507 = vst [vmem:[#allocation43_spill] sm:$0xff] %v7115_v20  ;;  %v745_v41 = vld [vmem:[#allocation8 + $0x60] sm:$0xff]  ;;  %v7125_v44 = vpack.c.bf16 %v748_v37, %v744_v32  ;;  %v743_v48 = vld [vmem:[#allocation8 + $0x50] sm:$0xff]  ;;  %v750_v53 = vld [vmem:[#allocation8 + $0x88] sm:$0xff] }
  0x6c   :  { %370 = vmatprep.mubr.f32.mxu1 %v8301_v0  ;;  %4776 = vmatprep.subr.bf16.mxu0 %v7081_v60  ;;  %8508 = vst [vmem:[#allocation44_spill] sm:$0xff] %v7118_v27  ;;  %8509 = vst [vmem:[#allocation45_spill] sm:$0xff] %v7123_v36  ;;  %v7127_v45 = vpack.c.bf16 %v745_v41, %v741_v40  ;;  %v747_v49 = vld [vmem:[#allocation8 + $0x70] sm:$0xff]  ;;  %v754_v55 = vld [vmem:[#allocation8 + $0xa8] sm:$0xff] }
  0x6d   :  { %4629 = vmatmul.mubr.msk.f32.gmra.mrb[14].mxu0 %vm126_vm0, %v95_v3  ;;  %4808 = vmatprep.subr.bf16.mxu1 %v7085_v1  ;;  %8510 = vst [vmem:[#allocation46_spill] sm:$0xff] %v7125_v44  ;;  %v7130_v51 = vpack.c.bf16 %v747_v49, %v743_v48  ;;  %v752_v57 = vld [vmem:[#allocation8 + $0x98] sm:$0xff]  ;;  %v7135_v59 = vpack.c.bf16 %v754_v55, %v750_v53  ;;  %v749_v63 = vld [vmem:[#allocation8 + $0x80] sm:$0xff]  ;;  %v751_v10 = vld [vmem:[#allocation8 + $0x90] sm:$0xff] }
  0x6e   :  { %4637 = vmatmul.mubr.msk.f32.gmra.mrb[14].mxu1 %vm126_vm0, %v95_v3  ;;  %4778 = vmatpush1.bf16.msra.mxu0 %v7092_v4  ;;  %8511 = vst [vmem:[#allocation47_spill] sm:$0xff] %v7127_v45  ;;  %v756_v62 = vld [vmem:[#allocation8 + $0xb8] sm:$0xff]  ;;  %v753_v3 = vld [vmem:[#allocation8 + $0xa0] sm:$0xff]  ;;  %v755_v13 = vld [vmem:[#allocation8 + $0xb0] sm:$0xff] }
  0x6f   :  { %4810 = vmatpush1.bf16.msra.mxu1 %v7096_v6  ;;  %563 = vmatprep.mubr.f32.mxu0 %v8301_v0  ;;  %8512 = vst [vmem:[#allocation48_spill] sm:$0xff] %v7130_v51  ;;  %8513 = vst [vmem:[#allocation49_spill] sm:$0xff] %v7135_v59  ;;  %v7137_v7 = vpack.c.bf16 %v756_v62, %v752_v57  ;;  %v7139_v9 = vpack.c.bf16 %v753_v3, %v749_v63  ;;  %v758_v16 = vld [vmem:[#allocation8 + $0xc8] sm:$0xff]  ;;  %v760_v26 = vld [vmem:[#allocation8 + $0xd8] sm:$0xff] }
  0x70   :  { %634 = vmatprep.mubr.f32.mxu1 %v8301_v0  ;;  %4812 = vmatprep.subr.bf16.mxu0 %v7111_v12  ;;  %v7142_v14 = vpack.c.bf16 %v755_v13, %v751_v10  ;;  %v762_v23 = vld [vmem:[#allocation8 + $0xe8] sm:$0xff]  ;;  %v764_v31 = vld [vmem:[#allocation8 + $0xf8] sm:$0xff]  ;;  %v757_v32 = vld [vmem:[#allocation8 + $0xc0] sm:$0xff] }
  0x71   :  { %564 = vmatmul.mubr.f32.vlgmr.msra.gmra.mrb[0].mxu0 %v8301_v0  ;;  %4844 = vmatprep.subr.bf16.mxu1 %v7113_v18  ;;  %8514 = vst [vmem:[#allocation50_spill] sm:$0xff] %v7137_v7  ;;  %8515 = vst [vmem:[#allocation51_spill] sm:$0xff] %v7139_v9  ;;  %v7147_v30 = vpack.c.bf16 %v762_v23, %v758_v16  ;;  %v761_v37 = vld [vmem:[#allocation8 + $0xe0] sm:$0xff]  ;;  %v7149_v40 = vpack.c.bf16 %v764_v31, %v760_v26  ;;  %v759_v48 = vld [vmem:[#allocation8 + $0xd0] sm:$0xff] }
  0x72   :  { %635 = vmatmul.mubr.f32.vlgmr.msra.gmra.mrb[0].mxu1 %v8301_v0  ;;  %861 = vmatprep.mubr.f32.mxu0 %v8301_v0  ;;  %8516 = vst [vmem:[#allocation52_spill] sm:$0xff] %v7142_v14  ;;  %v7151_v41 = vpack.c.bf16 %v761_v37, %v757_v32  ;;  %v763_v49 = vld [vmem:[#allocation8 + $0xf0] sm:$0xff]  ;;  %v766_v55 = vld [vmem:[#allocation8 + $0x108] sm:$0xff]  ;;  %v768_v62 = vld [vmem:[#allocation8 + $0x118] sm:$0xff] }
  0x73   :  { %932 = vmatprep.mubr.f32.mxu1 %v8301_v0  ;;  %4814 = vmatpush1.bf16.msra.mxu0 %v7115_v20  ;;  %8517 = vst [vmem:[#allocation53_spill] sm:$0xff] %v7147_v30  ;;  %8518 = vst [vmem:[#allocation54_spill] sm:$0xff] %v7149_v40  ;;  %v7154_v53 = vpack.c.bf16 %v763_v49, %v759_v48  ;;  %v770_v57 = vld [vmem:[#allocation8 + $0x128] sm:$0xff]  ;;  %v772_v3 = vld [vmem:[#allocation8 + $0x138] sm:$0xff] }
  0x74   :  { %4846 = vmatpush1.bf16.msra.mxu1 %v7118_v27  ;;  %4816 = vmatprep.subr.bf16.mxu0 %v7123_v36  ;;  %8519 = vst [vmem:[#allocation55_spill] sm:$0xff] %v7151_v41  ;;  %v7159_v63 = vpack.c.bf16 %v770_v57, %v766_v55  ;;  %v765_v10 = vld [vmem:[#allocation8 + $0x100] sm:$0xff]  ;;  %v7161_v16 = vpack.c.bf16 %v772_v3, %v768_v62  ;;  %v767_v26 = vld [vmem:[#allocation8 + $0x110] sm:$0xff]  ;;  %v774_v37 = vld [vmem:[#allocation8 + $0x148] sm:$0xff] }
  0x75   :  { %4848 = vmatprep.subr.bf16.mxu1 %v7125_v44  ;;  %8520 = vst [vmem:[#allocation56_spill] sm:$0xff] %v7154_v53  ;;  %v769_v13 = vld [vmem:[#allocation8 + $0x120] sm:$0xff]  ;;  %v771_v31 = vld [vmem:[#allocation8 + $0x130] sm:$0xff]  ;;  %v778_v48 = vld [vmem:[#allocation8 + $0x168] sm:$0xff] }
  0x76   :  { %8521 = vst [vmem:[#allocation57_spill] sm:$0xff] %v7159_v63  ;;  %8522 = vst [vmem:[#allocation58_spill] sm:$0xff] %v7161_v16  ;;  %v7163_v23 = vpack.c.bf16 %v769_v13, %v765_v10  ;;  %v7166_v32 = vpack.c.bf16 %v771_v31, %v767_v26  ;;  %v776_v49 = vld [vmem:[#allocation8 + $0x158] sm:$0xff]  ;;  %v7171_v55 = vpack.c.bf16 %v778_v48, %v774_v37  ;;  %v773_v62 = vld [vmem:[#allocation8 + $0x140] sm:$0xff] }
  0x77   :  { %4818 = vmatpush1.bf16.msra.mxu0 %v7127_v45  ;;  %v780_v57 = vld [vmem:[#allocation8 + $0x178] sm:$0xff]  ;;  %v777_v3 = vld [vmem:[#allocation8 + $0x160] sm:$0xff]  ;;  %v775_v26 = vld [vmem:[#allocation8 + $0x150] sm:$0xff] }
  0x78   :  { %4850 = vmatpush1.bf16.msra.mxu1 %v7130_v51  ;;  %4820 = vmatprep.subr.bf16.mxu0 %v7135_v59  ;;  %8523 = vst [vmem:[#allocation59_spill] sm:$0xff] %v7163_v23  ;;  %8524 = vst [vmem:[#allocation60_spill] sm:$0xff] %v7166_v32  ;;  %v7173_v10 = vpack.c.bf16 %v780_v57, %v776_v49  ;;  %v7175_v13 = vpack.c.bf16 %v777_v3, %v773_v62  ;;  %v779_v31 = vld [vmem:[#allocation8 + $0x170] sm:$0xff]  ;;  %v782_v0 = vld [vmem:[#allocation8 + $0x188] sm:$0xff] }
  0x79   :  { %4852 = vmatprep.subr.bf16.mxu1 %v7137_v7  ;;  %8525 = vst [vmem:[#allocation61_spill] sm:$0xff] %v7171_v55  ;;  %v781_v49 = vld [vmem:[#allocation8 + $0x180] sm:$0xff]  ;;  %v783_v62 = vld [vmem:[#allocation8 + $0x190] sm:$0xff]  ;;  %v692_v7 = vld [vmem:[#allocation9 + $0xb8] sm:$0xff] }
  0x7a   :  { %8526 = vst [vmem:[#allocation62_spill] sm:$0xff] %v7173_v10  ;;  %8527 = vst [vmem:[#allocation63_spill] sm:$0xff] %v7175_v13  ;;  %v785_v57 = vld [vmem:[#allocation8 + $0x1a0] sm:$0xff]  ;;  %v704_v59 = vld [vmem:[#allocation9 + $0x118] sm:$0xff] }
  0x7b   :  { %4822 = vmatpush1.bf16.msra.mxu0 %v7139_v9  ;;  %v7187_v3 = vpack.c.bf16 %v785_v57, %v781_v49  ;;  %v795_v49 = vld [vmem:[#allocation8 + $0x1f0] sm:$0xff]  ;;  %v688_v9 = vld [vmem:[#allocation9 + $0x98] sm:$0xff] }
  0x7c   :  { %4854 = vmatpush1.bf16.msra.mxu1 %v7142_v14  ;;  %4824 = vmatprep.subr.bf16.mxu0 %v7147_v30  ;;  %v686_v30 = vld [vmem:[#allocation9 + $0x88] sm:$0xff] }
  0x7d   :  { %4856 = vmatprep.subr.bf16.mxu1 %v7149_v40  ;;  %8531 = vst [vmem:[#allocation67_spill] sm:$0xff] %v7187_v3  ;;  %v672_v40 = vld [vmem:[#allocation9 + $0x18] sm:$0xff]  ;;  %v690_v14 = vld [vmem:[#allocation9 + $0xa8] sm:$0xff] }
  0x7f   :  { %4826 = vmatpush1.bf16.msra.mxu0 %v7151_v41  ;;  %v670_v41 = vld [vmem:[#allocation9 + $0x8] sm:$0xff] }
  0x80   :  { %4858 = vmatpush1.bf16.msra.mxu1 %v7154_v53  ;;  %4828 = vmatprep.subr.bf16.mxu0 %v7159_v63  ;;  %v784_v63 = vld [vmem:[#allocation8 + $0x198] sm:$0xff] }
  0x81   :  { %4860 = vmatprep.subr.bf16.mxu1 %v7161_v16  ;;  %v786_v16 = vld [vmem:[#allocation8 + $0x1a8] sm:$0xff]  ;;  %v788_v53 = vld [vmem:[#allocation8 + $0x1b8] sm:$0xff] }
  0x82   :  { %v7182_v37 = vpack.c.bf16 %v786_v16, %v782_v0  ;;  %v7184_v48 = vpack.c.bf16 %v788_v53, %v784_v63  ;;  %v792_v53 = vld [vmem:[#allocation8 + $0x1d8] sm:$0xff]  ;;  %v789_v16 = vld [vmem:[#allocation8 + $0x1c0] sm:$0xff] }
  0x83   :  { %4830 = vmatpush1.bf16.msra.mxu0 %v7163_v23  ;;  %v7178_v23 = vpack.c.bf16 %v779_v31, %v775_v26  ;;  %v787_v26 = vld [vmem:[#allocation8 + $0x1b0] sm:$0xff]  ;;  %v790_v31 = vld [vmem:[#allocation8 + $0x1c8] sm:$0xff]  ;;  %v796_v63 = vld [vmem:[#allocation8 + $0x1f8] sm:$0xff] }
  0x84   :  { %4862 = vmatpush1.bf16.msra.mxu1 %v7166_v32  ;;  %4832 = vmatprep.subr.bf16.mxu0 %v7171_v55  ;;  %8529 = vst [vmem:[#allocation65_spill] sm:$0xff] %v7182_v37  ;;  %8530 = vst [vmem:[#allocation66_spill] sm:$0xff] %v7184_v48  ;;  %v794_v55 = vld [vmem:[#allocation8 + $0x1e8] sm:$0xff]  ;;  %v793_v32 = vld [vmem:[#allocation8 + $0x1e0] sm:$0xff] }
  0x85   :  { %8528 = vst [vmem:[#allocation64_spill] sm:$0xff] %v7178_v23  ;;  %4864 = vmatprep.subr.bf16.mxu1 %v7173_v10  ;;  %v7191_v10 = vpack.c.bf16 %v787_v26, %v783_v62  ;;  %v7193_v0 = vpack.c.bf16 %v794_v55, %v790_v31  ;;  %v7198_v57 = vpack.c.bf16 %v793_v32, %v789_v16  ;;  %v676_v26 = vld [vmem:[#allocation9 + $0x38] sm:$0xff]  ;;  %v106_v32 = vlaneseq }
  0x86   :  { %v7207_v31 = vpack.c.bf16 %v676_v26, %v672_v40 }
  0x87   :  { %4834 = vmatpush1.bf16.msra.mxu0 %v7175_v13  ;;  %8532 = vst [vmem:[#allocation68_spill] sm:$0xff] %v7191_v10  ;;  %8533 = vst [vmem:[#allocation69_spill] sm:$0xff] %v7193_v0  ;;  %v7195_v13 = vpack.c.bf16 %v796_v63, %v792_v53  ;;  %v7213_v53 = vshrl.u32 %v106_v32, 7 }
  0x88   :  { %4866 = vmatpush1.bf16.msra.mxu1 %v7178_v23  ;;  %4836 = vmatprep.subr.bf16.mxu0 %v7182_v37  ;;  %v791_v23 = vld [vmem:[#allocation8 + $0x1d0] sm:$0xff]  ;;  %8535 = vst [vmem:[#allocation71_spill] sm:$0xff] %v7198_v57  ;;  %v674_v37 = vld [vmem:[#allocation9 + $0x28] sm:$0xff]  ;;  %8538 = vst [vmem:[#allocation74_spill] sm:$0xff] %v7207_v31 }
  0x89   :  { %4868 = vmatprep.subr.bf16.mxu1 %v7184_v48  ;;  %8534 = vst [vmem:[#allocation70_spill] sm:$0xff] %v7195_v13  ;;  %v7202_v55 = vpack.c.bf16 %v795_v49, %v791_v23  ;;  %v7204_v62 = vpack.c.bf16 %v674_v37, %v670_v41  ;;  %8539 = vst [vmem:[#allocation75_spill] sm:$0xff] %v7213_v53  ;;  %v8337_v23 = vsub.s32 0, %v7213_v53  ;;  %v104_v41 = vld [vmem:[%s8294_s3] sm:$0xf]  ;;  %v8338_v40 = vsub.s32 1, %v7213_v53 }
  0x8a   :  { %v8345_v49 = vsub.s32 3, %v7213_v53 }
  0x8b   :  { %4838 = vmatpush1.bf16.msra.mxu0 %v7187_v3  ;;  %8536 = vst [vmem:[#allocation72_spill] sm:$0xff] %v7202_v55  ;;  %8537 = vst [vmem:[#allocation73_spill] sm:$0xff] %v7204_v62  ;;  %v7222_v37 = vrot.slane %v104_v41, %v8337_v23  ;;  %v7226_v63 = vrot.slane %v104_v41, %v8338_v40  ;;  %v8354_v40 = vsub.s32 2, %v7213_v53 }
  0x8c   :  { %4870 = vmatpush1.bf16.msra.mxu1 %v7191_v10  ;;  %4840 = vmatprep.subr.bf16.mxu0 %v7193_v0  ;;  %v7233_v23 = vrot.slane %v104_v41, %v8345_v49 }
  0x8d   :  { %4872 = vmatprep.subr.bf16.mxu1 %v7195_v13  ;;  %8540 = vst [vmem:[#allocation76_spill] sm:$0xff] %v7222_v37  ;;  %8541 = vst [vmem:[#allocation77_spill] sm:$0xff] %v7226_v63 }
  0x8e   :  { %8542 = vst [vmem:[#allocation78_spill] sm:$0xff] %v7233_v23 }
  0x8f   :  { %4842 = vmatpush1.bf16.msra.mxu0 %v7198_v57 }
  0x90   :  { %4874 = vmatpush1.bf16.msra.mxu1 %v7202_v55  ;;  %4876 = vmatprep.subr.bf16.mxu0 %v7204_v62 }
  0x91   :  { %4908 = vmatprep.subr.bf16.mxu1 %v7207_v31 }
 0x144   :  { %v565_v16 = vpop.f32.mrb[0].mxu0 }
 0x145   :  { %v6307_v26 = vadd.f32 %v565_v16, %v7222_v37  ;;  %v636_v32 = vpop.f32.mrb[0].mxu1  ;;  %v567_v31 = vpop.f32.mrb[1].mxu0  ;;  %v7239_v16 = vrot.slane %v104_v41, %v8354_v40 }
 0x146   :  { %v6308_v62 = vadd.f32 %v567_v31, %v7226_v63  ;;  %v638_v55 = vpop.f32.mrb[1].mxu1 }
 0x147   :  { %v4638_v57 = vmul.f32 -1.442695, %v6307_v26  ;;  %v6324_v0 = vadd.f32 %v638_v55, %v7233_v23  ;;  %8543 = vst [vmem:[#allocation79_spill] sm:$0xff] %v7239_v16  ;;  %v6323_v31 = vadd.f32 %v636_v32, %v7239_v16  ;;  %v673_v32 = vld [vmem:[#allocation9 + $0x20] sm:$0xff] }
 0x148   :  { %v4639_v13 = vmul.f32 -1.442695, %v6308_v62 }
 0x149   :  { %6445 = vpow2.f32 %v4638_v57  ;;  %v4640_v37 = vmul.f32 -1.442695, %v6324_v0  ;;  %v669_v0 = vld [vmem:[#allocation9] sm:$0xff] }
 0x14a   :  { %6447 = vpow2.f32 %v4639_v13  ;;  %v7245_v48 = vpack.c.bf16 %v673_v32, %v669_v0  ;;  %v685_v0 = vld [vmem:[#allocation9 + $0x80] sm:$0xff] }
 0x14b   :  { %6449 = vpow2.f32 %v4640_v37  ;;  %v675_v37 = vld [vmem:[#allocation9 + $0x30] sm:$0xff]  ;;  %v689_v32 = vld [vmem:[#allocation9 + $0xa0] sm:$0xff] }
 0x14c   :  { %6451 = vtanh.f32 %v6323_v31  ;;  %v678_v31 = vld [vmem:[#allocation9 + $0x48] sm:$0xff]  ;;  %8545 = vst [vmem:[#allocation81_spill] sm:$0xff] %v7245_v48 }
 0x153   :  { %v6446_v63 = vpop.eup %6445 }
 0x154   :  { %v6448_v26 = vpop.eup %6447  ;;  %v648_v62 = vadd.f32 1.0, %v6446_v63  ;;  %v671_v63 = vld [vmem:[#allocation9 + $0x10] sm:$0xff] }
 0x155   :  { %v654_v49 = vadd.f32 1.0, %v6448_v26  ;;  %v6450_v57 = vpop.eup %6449  ;;  %v682_v26 = vld [vmem:[#allocation9 + $0x68] sm:$0xff] }
 0x156   :  { %6453 = vrcp.f32 %v648_v62  ;;  %v6452_v10 = vpop.eup %6451  ;;  %v661_v23 = vadd.f32 1.0, %v6450_v57  ;;  %v680_v62 = vld [vmem:[#allocation9 + $0x58] sm:$0xff] }
 0x157   :  { %6455 = vrcp.f32 %v654_v49  ;;  %v684_v49 = vld [vmem:[#allocation9 + $0x78] sm:$0xff] }
 0x158   :  { %6457 = vrcp.f32 %v661_v23  ;;  %v7251_v23 = vpack.c.bf16 %v682_v26, %v678_v31  ;;  %v687_v31 = vld [vmem:[#allocation9 + $0x90] sm:$0xff] }
 0x159   :  { %v691_v26 = vld [vmem:[#allocation9 + $0xb0] sm:$0xff] }
 0x15a   :  { %8547 = vst [vmem:[#allocation83_spill] sm:$0xff] %v7251_v23 }
 0x160   :  { %v6454_v13 = vpop.eup %6453 }
 0x161   :  { %v6456_v3 = vpop.eup %6455  ;;  %v665_v55 = vmul.f32 %v6454_v13, %v6452_v10  ;;  %v7247_v10 = vpack.c.bf16 %v675_v37, %v671_v63  ;;  %v7253_v13 = vpack.c.bf16 %v684_v49, %v680_v62  ;;  %v7265_v63 = vpack.c.bf16 %v690_v14, %v686_v30  ;;  %v694_v62 = vld [vmem:[#allocation9 + $0xc8] sm:$0xff] }
 0x162   :  { %v664_v53 = vmul.f32 0.0, %v6456_v3  ;;  %v6458_v40 = vpop.eup %6457  ;;  %v677_v3 = vld [vmem:[#allocation9 + $0x40] sm:$0xff]  ;;  %v7267_v37 = vpack.c.bf16 %v692_v7, %v688_v9  ;;  %v698_v49 = vld [vmem:[#allocation9 + $0xe8] sm:$0xff]  ;;  %v7275_v14 = vpack.c.bf16 %v691_v26, %v687_v31 }
 0x163   :  { %8546 = vst [vmem:[#allocation82_spill] sm:$0xff] %v7247_v10  ;;  %8548 = vst [vmem:[#allocation84_spill] sm:$0xff] %v7253_v13  ;;  %v693_v7 = vld [vmem:[#allocation9 + $0xc0] sm:$0xff]  ;;  %v7279_v30 = vpack.c.bf16 %v698_v49, %v694_v62  ;;  %v703_v62 = vld [vmem:[#allocation9 + $0x110] sm:$0xff] }
 0x164   :  { %v7242_v41 = vadd.f32 %v665_v55, %v664_v53  ;;  %v681_v53 = vld [vmem:[#allocation9 + $0x60] sm:$0xff]  ;;  %v679_v55 = vld [vmem:[#allocation9 + $0x50] sm:$0xff]  ;;  %8551 = vst [vmem:[#allocation87_spill] sm:$0xff] %v7265_v63  ;;  %8552 = vst [vmem:[#allocation88_spill] sm:$0xff] %v7267_v37 }
 0x165   :  { %8555 = vst [vmem:[#allocation90_spill] sm:$0xff] %v7275_v14  ;;  %v697_v9 = vld [vmem:[#allocation9 + $0xe0] sm:$0xff]  ;;  %8556 = vst [vmem:[#allocation91_spill] sm:$0xff] %v7279_v30  ;;  %v707_v49 = vld [vmem:[#allocation9 + $0x130] sm:$0xff] }
 0x166   :  { %8544 = vst [vmem:[#allocation80_spill] sm:$0xff] %v7242_v41  ;;  %6459 = vtanh.f32 %v7242_v41  ;;  %v683_v41 = vld [vmem:[#allocation9 + $0x70] sm:$0xff]  ;;  %v701_v31 = vld [vmem:[#allocation9 + $0x100] sm:$0xff] }
 0x167   :  { %v705_v26 = vld [vmem:[#allocation9 + $0x120] sm:$0xff] }
 0x170   :  { %v6460_v16 = vpop.eup %6459 }
 0x171   :  { %v7249_v57 = vmul.f32 %v6460_v16, %v6458_v40  ;;  %v7259_v40 = vpack.c.bf16 %v681_v53, %v677_v3  ;;  %v7261_v16 = vpack.c.bf16 %v683_v41, %v679_v55  ;;  %v8553_v3 = vmov 0.0   ;;  %v695_v55 = vld [vmem:[#allocation9 + $0xd0] sm:$0xff] }
 0x172   :  { %v7273_v41 = vpack.c.bf16 %v689_v32, %v685_v0  ;;  %v7285_v0 = vpack.c.bf16 %v697_v9, %v693_v7  ;;  %v7299_v7 = vpack.c.bf16 %v707_v49, %v703_v62  ;;  %v709_v9 = vld [vmem:[#allocation9 + $0x140] sm:$0xff] }
 0x173   :  { %862 = vmatmul.mubr.f32.vlgmr.msra.gmra.mrb[16].mxu0 %v7249_v57  ;;  %933 = vmatmul.mubr.f32.vlgmr.msra.gmra.mrb[16].mxu1 %v7249_v57  ;;  %8549 = vst [vmem:[#allocation85_spill] sm:$0xff] %v7259_v40  ;;  %8550 = vst [vmem:[#allocation86_spill] sm:$0xff] %v7261_v16  ;;  %v717_v62 = vld [vmem:[#allocation9 + $0x180] sm:$0xff] }
 0x174   :  { %4878 = vmatpush1.bf16.msra.mxu0 %v7245_v48  ;;  %4910 = vmatpush1.bf16.msra.mxu1 %v7247_v10  ;;  %v696_v48 = vld [vmem:[#allocation9 + $0xd8] sm:$0xff]  ;;  %8554 = vst [vmem:[#allocation89_spill] sm:$0xff] %v7273_v41  ;;  %8558 = vst [vmem:[#allocation93_spill] sm:$0xff] %v7285_v0  ;;  %v721_v49 = vld [vmem:[#allocation9 + $0x1a0] sm:$0xff] }
 0x175   :  { %4880 = vmatprep.subr.bf16.mxu0 %v7251_v23  ;;  %4912 = vmatprep.subr.bf16.mxu1 %v7253_v13  ;;  %v700_v10 = vld [vmem:[#allocation9 + $0xf8] sm:$0xff]  ;;  %v699_v13 = vld [vmem:[#allocation9 + $0xf0] sm:$0xff]  ;;  %v702_v23 = vld [vmem:[#allocation9 + $0x108] sm:$0xff]  ;;  %8563 = vst [vmem:[#allocation98_spill] sm:$0xff] %v7299_v7 }
 0x176   :  { %1003 = vmatprep.mubr.f32.mxu0 %v8553_v3  ;;  %1074 = vmatprep.mubr.f32.mxu1 %v8553_v3  ;;  %v7281_v53 = vpack.c.bf16 %v700_v10, %v696_v48  ;;  %v7287_v32 = vpack.c.bf16 %v699_v13, %v695_v55  ;;  %v7297_v13 = vpack.c.bf16 %v705_v26, %v701_v31  ;;  %v713_v55 = vld [vmem:[#allocation9 + $0x160] sm:$0xff] }
 0x177   :  { %v7309_v31 = vpack.c.bf16 %v713_v55, %v709_v9  ;;  %v7321_v9 = vpack.c.bf16 %v721_v49, %v717_v62 }
 0x178   :  { %4882 = vmatpush1.bf16.msra.mxu0 %v7259_v40  ;;  %4914 = vmatpush1.bf16.msra.mxu1 %v7261_v16  ;;  %8557 = vst [vmem:[#allocation92_spill] sm:$0xff] %v7281_v53  ;;  %v706_v40 = vld [vmem:[#allocation9 + $0x128] sm:$0xff]  ;;  %v708_v16 = vld [vmem:[#allocation9 + $0x138] sm:$0xff]  ;;  %8559 = vst [vmem:[#allocation94_spill] sm:$0xff] %v7287_v32 }
 0x179   :  { %4884 = vmatprep.subr.bf16.mxu0 %v7265_v63  ;;  %4916 = vmatprep.subr.bf16.mxu1 %v7267_v37  ;;  %v7291_v48 = vpack.c.bf16 %v706_v40, %v702_v23  ;;  %v7293_v10 = vpack.c.bf16 %v708_v16, %v704_v59  ;;  %v710_v37 = vld [vmem:[#allocation9 + $0x148] sm:$0xff]  ;;  %v712_v63 = vld [vmem:[#allocation9 + $0x158] sm:$0xff]  ;;  %8562 = vst [vmem:[#allocation97_spill] sm:$0xff] %v7297_v13  ;;  %v711_v40 = vld [vmem:[#allocation9 + $0x150] sm:$0xff] }
 0x17a   :  { %v715_v16 = vld [vmem:[#allocation9 + $0x170] sm:$0xff] }
 0x17b   :  { %8560 = vst [vmem:[#allocation95_spill] sm:$0xff] %v7291_v48  ;;  %8561 = vst [vmem:[#allocation96_spill] sm:$0xff] %v7293_v10  ;;  %v7311_v26 = vpack.c.bf16 %v715_v16, %v711_v40  ;;  %v725_v40 = vld [vmem:[#allocation9 + $0x1c0] sm:$0xff]  ;;  %v731_v16 = vld [vmem:[#allocation9 + $0x1f0] sm:$0xff] }
 0x17c   :  { %4886 = vmatpush1.bf16.msra.mxu0 %v7273_v41  ;;  %4918 = vmatpush1.bf16.msra.mxu1 %v7275_v14  ;;  %v714_v41 = vld [vmem:[#allocation9 + $0x168] sm:$0xff]  ;;  %v716_v14 = vld [vmem:[#allocation9 + $0x178] sm:$0xff] }
 0x17d   :  { %4888 = vmatprep.subr.bf16.mxu0 %v7279_v30  ;;  %4920 = vmatprep.subr.bf16.mxu1 %v7281_v53  ;;  %v7303_v59 = vpack.c.bf16 %v714_v41, %v710_v37  ;;  %v7305_v23 = vpack.c.bf16 %v716_v14, %v712_v63  ;;  %v718_v53 = vld [vmem:[#allocation9 + $0x188] sm:$0xff]  ;;  %v720_v30 = vld [vmem:[#allocation9 + $0x198] sm:$0xff]  ;;  %v719_v41 = vld [vmem:[#allocation9 + $0x190] sm:$0xff] }
 0x17e   :  { %v723_v14 = vld [vmem:[#allocation9 + $0x1b0] sm:$0xff] }
 0x17f   :  { %8564 = vst [vmem:[#allocation99_spill] sm:$0xff] %v7303_v59  ;;  %v7323_v55 = vpack.c.bf16 %v723_v14, %v719_v41  ;;  %v8570_v41 = vld [vmem:[#allocation54_spill] sm:$0xff]  ;;  %v8571_v14 = vld [vmem:[#allocation55_spill] sm:$0xff] }
 0x180   :  { %4890 = vmatpush1.bf16.msra.mxu0 %v7285_v0  ;;  %4922 = vmatpush1.bf16.msra.mxu1 %v7287_v32  ;;  %v722_v0 = vld [vmem:[#allocation9 + $0x1a8] sm:$0xff]  ;;  %v724_v32 = vld [vmem:[#allocation9 + $0x1b8] sm:$0xff] }
 0x181   :  { %4892 = vmatprep.subr.bf16.mxu0 %v7291_v48  ;;  %4924 = vmatprep.subr.bf16.mxu1 %v7293_v10  ;;  %v7315_v63 = vpack.c.bf16 %v722_v0, %v718_v53  ;;  %v7317_v37 = vpack.c.bf16 %v724_v32, %v720_v30  ;;  %v726_v10 = vld [vmem:[#allocation9 + $0x1c8] sm:$0xff]  ;;  %v728_v48 = vld [vmem:[#allocation9 + $0x1d8] sm:$0xff]  ;;  %v729_v0 = vld [vmem:[#allocation9 + $0x1e0] sm:$0xff] }
 0x182   :  { %v727_v32 = vld [vmem:[#allocation9 + $0x1d0] sm:$0xff]  ;;  %v7333_v62 = vpack.c.bf16 %v729_v0, %v725_v40  ;;  %v8572_v40 = vld [vmem:[#allocation56_spill] sm:$0xff] }
 0x183   :  { %v7335_v49 = vpack.c.bf16 %v731_v16, %v727_v32  ;;  %v8573_v0 = vld [vmem:[#allocation57_spill] sm:$0xff]  ;;  %v8574_v32 = vld [vmem:[#allocation58_spill] sm:$0xff]  ;;  %v8575_v16 = vld [vmem:[#allocation59_spill] sm:$0xff] }
 0x184   :  { %4894 = vmatpush1.bf16.msra.mxu0 %v7297_v13  ;;  %4926 = vmatpush1.bf16.msra.mxu1 %v7299_v7  ;;  %v730_v13 = vld [vmem:[#allocation9 + $0x1e8] sm:$0xff]  ;;  %v732_v7 = vld [vmem:[#allocation9 + $0x1f8] sm:$0xff] }
 0x185   :  { %4896 = vmatprep.subr.bf16.mxu0 %v7303_v59  ;;  %4928 = vmatprep.subr.bf16.mxu1 %v7305_v23  ;;  %v7327_v30 = vpack.c.bf16 %v730_v13, %v726_v10  ;;  %v7329_v53 = vpack.c.bf16 %v732_v7, %v728_v48  ;;  %v8565_v48 = vld [vmem:[#allocation49_spill] sm:$0xff]  ;;  %v8566_v10 = vld [vmem:[#allocation50_spill] sm:$0xff]  ;;  %v8568_v13 = vld [vmem:[#allocation52_spill] sm:$0xff] }
 0x186   :  { %v8569_v7 = vld [vmem:[#allocation53_spill] sm:$0xff] }
 0x188   :  { %4898 = vmatpush1.bf16.msra.mxu0 %v7309_v31  ;;  %4930 = vmatpush1.bf16.msra.mxu1 %v7311_v26 }
 0x189   :  { %4900 = vmatprep.subr.bf16.mxu0 %v7315_v63  ;;  %4932 = vmatprep.subr.bf16.mxu1 %v7317_v37 }
 0x18c   :  { %4902 = vmatpush1.bf16.msra.mxu0 %v7321_v9  ;;  %4934 = vmatpush1.bf16.msra.mxu1 %v7323_v55 }
 0x18d   :  { %4904 = vmatprep.subr.bf16.mxu0 %v7327_v30  ;;  %4936 = vmatprep.subr.bf16.mxu1 %v7329_v53 }
 0x190   :  { %4906 = vmatpush1.bf16.msra.mxu0 %v7333_v62  ;;  %4938 = vmatpush1.bf16.msra.mxu1 %v7335_v49 }
 0x191   :  { %4940 = vmatprep.subr.bf16.mxu0 %v6958_v17  ;;  %4972 = vmatprep.subr.bf16.mxu1 %v6960_v21 }
 0x193   :  { %1004 = vmatmul.mubr.f32.vlgmr.msra.gmra.mrb[16].mxu0 %v8553_v3  ;;  %1075 = vmatmul.mubr.f32.vlgmr.msra.gmra.mrb[16].mxu1 %v8553_v3 }
 0x194   :  { %4942 = vmatpush1.bf16.msra.mxu0 %v6962_v22  ;;  %4974 = vmatpush1.bf16.msra.mxu1 %v6965_v25 }
 0x195   :  { %4944 = vmatprep.subr.bf16.mxu0 %v6969_v29  ;;  %4976 = vmatprep.subr.bf16.mxu1 %v6976_v34 }
 0x196   :  { %1177 = vmatprep.mubr.f32.mxu0 %v8553_v3  ;;  %1248 = vmatprep.mubr.f32.mxu1 %v8553_v3 }
 0x198   :  { %4946 = vmatpush1.bf16.msra.mxu0 %v6978_v35  ;;  %4978 = vmatpush1.bf16.msra.mxu1 %v6982_v38 }
 0x199   :  { %4948 = vmatprep.subr.bf16.mxu0 %v6986_v42  ;;  %4980 = vmatprep.subr.bf16.mxu1 %v6993_v47 }
 0x19c   :  { %4950 = vmatpush1.bf16.msra.mxu0 %v6997_v50  ;;  %4982 = vmatpush1.bf16.msra.mxu1 %v7001_v54 }
 0x19d   :  { %4952 = vmatprep.subr.bf16.mxu0 %v7005_v58  ;;  %4984 = vmatprep.subr.bf16.mxu1 %v7009_v61 }
 0x1a0   :  { %4954 = vmatpush1.bf16.msra.mxu0 %v7016_v2  ;;  %4986 = vmatpush1.bf16.msra.mxu1 %v7020_v5 }
 0x1a1   :  { %4956 = vmatprep.subr.bf16.mxu0 %v7024_v8  ;;  %4988 = vmatprep.subr.bf16.mxu1 %v7028_v11 }
 0x1a4   :  { %4958 = vmatpush1.bf16.msra.mxu0 %v7035_v15  ;;  %4990 = vmatpush1.bf16.msra.mxu1 %v7039_v19 }
 0x1a5   :  { %4960 = vmatprep.subr.bf16.mxu0 %v7043_v24  ;;  %4992 = vmatprep.subr.bf16.mxu1 %v7047_v28 }
 0x1a8   :  { %4962 = vmatpush1.bf16.msra.mxu0 %v7054_v33  ;;  %4994 = vmatpush1.bf16.msra.mxu1 %v7058_v39 }
 0x1a9   :  { %4964 = vmatprep.subr.bf16.mxu0 %v7062_v43  ;;  %4996 = vmatprep.subr.bf16.mxu1 %v7066_v46 }
 0x1ac   :  { %4966 = vmatpush1.bf16.msra.mxu0 %v7073_v52  ;;  %4998 = vmatpush1.bf16.msra.mxu1 %v7077_v56 }
 0x1ad   :  { %4968 = vmatprep.subr.bf16.mxu0 %v7081_v60  ;;  %5000 = vmatprep.subr.bf16.mxu1 %v7085_v1  ;;  %v8601_v60 = vld [vmem:[#allocation79_spill] sm:$0xff] }
 0x1b0   :  { %4970 = vmatpush1.bf16.msra.mxu0 %v7092_v4  ;;  %5002 = vmatpush1.bf16.msra.mxu1 %v7096_v6 }
 0x1b1   :  { %5004 = vmatprep.subr.bf16.mxu0 %v7111_v12  ;;  %5036 = vmatprep.subr.bf16.mxu1 %v7113_v18 }
 0x1b3   :  { %1178 = vmatmul.mubr.f32.vlgmr.msra.gmra.mrb[2].mxu0 %v7249_v57  ;;  %1249 = vmatmul.mubr.f32.vlgmr.msra.gmra.mrb[2].mxu1 %v7249_v57  ;;  %v8567_v57 = vld [vmem:[#allocation51_spill] sm:$0xff] }
 0x1b4   :  { %5006 = vmatpush1.bf16.msra.mxu0 %v7115_v20  ;;  %5038 = vmatpush1.bf16.msra.mxu1 %v7118_v27 }
 0x1b5   :  { %5008 = vmatprep.subr.bf16.mxu0 %v7123_v36  ;;  %5040 = vmatprep.subr.bf16.mxu1 %v7125_v44 }
 0x1b6   :  { %1347 = vmatprep.mubr.f32.mxu0 %v8553_v3  ;;  %1418 = vmatprep.mubr.f32.mxu1 %v8553_v3 }
 0x1b8   :  { %5010 = vmatpush1.bf16.msra.mxu0 %v7127_v45  ;;  %5042 = vmatpush1.bf16.msra.mxu1 %v7130_v51 }
 0x1b9   :  { %5012 = vmatprep.subr.bf16.mxu0 %v8565_v48  ;;  %5044 = vmatprep.subr.bf16.mxu1 %v8566_v10  ;;  %v8576_v48 = vld [vmem:[#allocation60_spill] sm:$0xff]  ;;  %v8577_v10 = vld [vmem:[#allocation61_spill] sm:$0xff] }
 0x1bc   :  { %5014 = vmatpush1.bf16.msra.mxu0 %v8567_v57  ;;  %5046 = vmatpush1.bf16.msra.mxu1 %v8568_v13  ;;  %v8578_v57 = vld [vmem:[#allocation62_spill] sm:$0xff]  ;;  %v8579_v13 = vld [vmem:[#allocation63_spill] sm:$0xff] }
 0x1bd   :  { %5016 = vmatprep.subr.bf16.mxu0 %v8569_v7  ;;  %5048 = vmatprep.subr.bf16.mxu1 %v8570_v41  ;;  %v8580_v7 = vld [vmem:[#allocation64_spill] sm:$0xff]  ;;  %v8581_v41 = vld [vmem:[#allocation65_spill] sm:$0xff] }
 0x1c0   :  { %5018 = vmatpush1.bf16.msra.mxu0 %v8571_v14  ;;  %5050 = vmatpush1.bf16.msra.mxu1 %v8572_v40  ;;  %v8582_v14 = vld [vmem:[#allocation66_spill] sm:$0xff]  ;;  %v8583_v40 = vld [vmem:[#allocation67_spill] sm:$0xff] }
 0x1c1   :  { %5020 = vmatprep.subr.bf16.mxu0 %v8573_v0  ;;  %5052 = vmatprep.subr.bf16.mxu1 %v8574_v32  ;;  %v8584_v0 = vld [vmem:[#allocation68_spill] sm:$0xff]  ;;  %v8585_v32 = vld [vmem:[#allocation69_spill] sm:$0xff] }
 0x1c4   :  { %5022 = vmatpush1.bf16.msra.mxu0 %v8575_v16  ;;  %5054 = vmatpush1.bf16.msra.mxu1 %v8576_v48  ;;  %v8586_v16 = vld [vmem:[#allocation70_spill] sm:$0xff]  ;;  %v8587_v48 = vld [vmem:[#allocation71_spill] sm:$0xff] }
 0x1c5   :  { %5024 = vmatprep.subr.bf16.mxu0 %v8577_v10  ;;  %5056 = vmatprep.subr.bf16.mxu1 %v8578_v57  ;;  %v8588_v10 = vld [vmem:[#allocation72_spill] sm:$0xff]  ;;  %v8589_v57 = vld [vmem:[#allocation73_spill] sm:$0xff] }
 0x1c8   :  { %5026 = vmatpush1.bf16.msra.mxu0 %v8579_v13  ;;  %5058 = vmatpush1.bf16.msra.mxu1 %v8580_v7  ;;  %v8590_v13 = vld [vmem:[#allocation74_spill] sm:$0xff] }
 0x1c9   :  { %5028 = vmatprep.subr.bf16.mxu0 %v8581_v41  ;;  %5060 = vmatprep.subr.bf16.mxu1 %v8582_v14  ;;  %v409_v14 = vld [vmem:[%s8297_s6] sm:$0xf] }
 0x1ca   :  { %v8591_v41 = vld [vmem:[#allocation75_spill] sm:$0xff] }
 0x1cb   :  { %v8596_v36 = vsub.s32 2, %v8591_v41 }
 0x1cc   :  { %5030 = vmatpush1.bf16.msra.mxu0 %v8583_v40  ;;  %5062 = vmatpush1.bf16.msra.mxu1 %v8584_v0  ;;  %v8592_v40 = vsub.s32 0, %v8591_v41 }
 0x1cd   :  { %5032 = vmatprep.subr.bf16.mxu0 %v8585_v32  ;;  %5064 = vmatprep.subr.bf16.mxu1 %v8586_v16  ;;  %v8594_v32 = vsub.s32 1, %v8591_v41 }
 0x1ce   :  { %v7420_v7 = vrot.slane %v409_v14, %v8592_v40  ;;  %v7430_v40 = vrot.slane %v409_v14, %v8596_v36  ;;  %v8598_v36 = vld [vmem:[#allocation76_spill] sm:$0xff] }
 0x1cf   :  { %v7424_v0 = vrot.slane %v409_v14, %v8594_v32 }
 0x1d0   :  { %5034 = vmatpush1.bf16.msra.mxu0 %v8587_v48  ;;  %5066 = vmatpush1.bf16.msra.mxu1 %v8588_v10  ;;  %8593 = vst [vmem:[#allocation75_spill] sm:$0xff] %v7420_v7  ;;  %8597 = vst [vmem:[#allocation101_spill] sm:$0xff] %v7430_v40 }
 0x1d1   :  { %5068 = vmatprep.subr.bf16.mxu0 %v8589_v57  ;;  %5100 = vmatprep.subr.bf16.mxu1 %v8590_v13  ;;  %8595 = vst [vmem:[#allocation100_spill] sm:$0xff] %v7424_v0 }
 0x266   :  { %v1005_v16 = vpop.f32.mrb[16].mxu0  ;;  %v1076_v48 = vpop.f32.mrb[16].mxu1 }
 0x267   :  { %v6339_v10 = vadd.f32 %v1005_v16, %v7420_v7  ;;  %v1007_v51 = vpop.f32.mrb[17].mxu0  ;;  %v1078_v57 = vpop.f32.mrb[17].mxu1  ;;  %v6341_v27 = vadd.f32 %v1076_v48, %v7430_v40  ;;  %v8599_v40 = vld [vmem:[#allocation77_spill] sm:$0xff] }
 0x268   :  { %v6340_v13 = vadd.f32 %v1007_v51, %v7424_v0 }
 0x269   :  { %v4641_v45 = vmul.f32 -1.442695, %v6339_v10 }
 0x26a   :  { %v4642_v44 = vmul.f32 -1.442695, %v6340_v13 }
 0x26b   :  { %6461 = vpow2.f32 %v4641_v45 }
 0x26c   :  { %6463 = vpow2.f32 %v4642_v44 }
 0x26d   :  { %6465 = vtanh.f32 %v6341_v27 }
 0x275   :  { %v6462_v32 = vpop.eup %6461 }
 0x276   :  { %v6464_v20 = vpop.eup %6463  ;;  %v1088_v18 = vadd.f32 1.0, %v6462_v32 }
 0x277   :  { %v1094_v12 = vadd.f32 1.0, %v6464_v20  ;;  %v6466_v16 = vpop.eup %6465 }
 0x278   :  { %6467 = vrcp.f32 %v1088_v18 }
 0x279   :  { %6469 = vrcp.f32 %v1094_v12  ;;  %v8600_v12 = vld [vmem:[#allocation78_spill] sm:$0xff] }
 0x282   :  { %v6468_v7 = vpop.eup %6467 }
 0x283   :  { %v6470_v51 = vpop.eup %6469  ;;  %v1105_v10 = vmul.f32 %v6468_v7, %v6466_v16 }
 0x284   :  { %v1104_v13 = vmul.f32 0.0, %v6470_v51 }
 0x286   :  { %v7433_v45 = vadd.f32 %v1105_v10, %v1104_v13  ;;  %v1179_v44 = vpop.f32.mrb[2].mxu0  ;;  %v1250_v0 = vpop.f32.mrb[2].mxu1 }
 0x287   :  { %v6309_v6 = vadd.f32 %v1179_v44, %v8598_v36  ;;  %v1181_v4 = vpop.f32.mrb[3].mxu0  ;;  %v1252_v48 = vpop.f32.mrb[3].mxu1  ;;  %v6325_v7 = vadd.f32 %v1250_v0, %v8601_v60  ;;  %v8603_v0 = vsub.s32 3, %v8591_v41  ;;  %v8607_v41 = vld [vmem:[#allocation84_spill] sm:$0xff] }
 0x288   :  { %v6310_v1 = vadd.f32 %v1181_v4, %v8599_v40  ;;  %v6326_v18 = vadd.f32 %v1252_v48, %v8600_v12 }
 0x289   :  { %v4644_v32 = vmul.f32 -1.442695, %v6309_v6 }
 0x28a   :  { %v4645_v27 = vmul.f32 -1.442695, %v6310_v1  ;;  %v4646_v20 = vmul.f32 -1.442695, %v6326_v18  ;;  %v7445_v18 = vrot.slane %v409_v14, %v8603_v0  ;;  %v8609_v14 = vld [vmem:[#allocation86_spill] sm:$0xff] }
 0x28b   :  { %6471 = vpow2.f32 %v4644_v32 }
 0x28c   :  { %6473 = vpow2.f32 %v4645_v27  ;;  %v8602_v27 = vld [vmem:[#allocation80_spill] sm:$0xff] }
 0x28d   :  { %6475 = vpow2.f32 %v4646_v20  ;;  %v6342_v20 = vadd.f32 %v1078_v57, %v7445_v18  ;;  %v8608_v57 = vld [vmem:[#allocation85_spill] sm:$0xff] }
 0x28e   :  { %6477 = vtanh.f32 %v6325_v7 }
 0x295   :  { %v6472_v16 = vpop.eup %6471 }
 0x296   :  { %v6474_v51 = vpop.eup %6473  ;;  %v1262_v10 = vadd.f32 1.0, %v6472_v16 }
 0x297   :  { %v1268_v13 = vadd.f32 1.0, %v6474_v51  ;;  %v6476_v44 = vpop.eup %6475  ;;  %v4643_v51 = vmul.f32 -1.442695, %v6342_v20  ;;  %v8616_v20 = vld [vmem:[#allocation93_spill] sm:$0xff] }
 0x298   :  { %6479 = vrcp.f32 %v1262_v10  ;;  %v6478_v36 = vpop.eup %6477  ;;  %v1275_v32 = vadd.f32 1.0, %v6476_v44  ;;  %v8610_v44 = vld [vmem:[#allocation87_spill] sm:$0xff] }
 0x299   :  { %6481 = vrcp.f32 %v1268_v13  ;;  %v8606_v13 = vld [vmem:[#allocation83_spill] sm:$0xff] }
 0x29a   :  { %6483 = vrcp.f32 %v1275_v32  ;;  %v8614_v32 = vld [vmem:[#allocation91_spill] sm:$0xff] }
 0x2a2   :  { %v6480_v4 = vpop.eup %6479 }
 0x2a3   :  { %v6482_v6 = vpop.eup %6481  ;;  %v1279_v1 = vmul.f32 %v6480_v4, %v6478_v36  ;;  %v8605_v36 = vld [vmem:[#allocation82_spill] sm:$0xff]  ;;  %v8611_v4 = vld [vmem:[#allocation88_spill] sm:$0xff] }
 0x2a4   :  { %v1278_v40 = vmul.f32 %v6482_v6, %v8602_v27  ;;  %v6484_v7 = vpop.eup %6483  ;;  %v8612_v6 = vld [vmem:[#allocation89_spill] sm:$0xff]  ;;  %v8615_v27 = vld [vmem:[#allocation92_spill] sm:$0xff] }
 0x2a6   :  { %v7440_v48 = vadd.f32 %v1279_v1, %v1278_v40  ;;  %v8604_v40 = vld [vmem:[#allocation81_spill] sm:$0xff]  ;;  %v8613_v1 = vld [vmem:[#allocation90_spill] sm:$0xff] }
 0x2a8   :  { %6485 = vtanh.f32 %v7440_v48 }
 0x2a9   :  { %6487 = vpow2.f32 %v4643_v51  ;;  %v8619_v51 = vld [vmem:[#allocation96_spill] sm:$0xff] }
 0x2aa   :  { %6489 = vtanh.f32 %v7433_v45 }
 0x2b2   :  { %v6486_v16 = vpop.eup %6485 }
 0x2b3   :  { %v7448_v10 = vmul.f32 %v6486_v16, %v6484_v7  ;;  %v6488_v0 = vpop.eup %6487  ;;  %v8617_v7 = vld [vmem:[#allocation94_spill] sm:$0xff]  ;;  %v8618_v16 = vld [vmem:[#allocation95_spill] sm:$0xff] }
 0x2b5   :  { %1348 = vmatmul.mubr.f32.vlgmr.msra.gmra.mrb[18].mxu0 %v7448_v10  ;;  %1419 = vmatmul.mubr.f32.vlgmr.msra.gmra.mrb[18].mxu1 %v7448_v10 }
 0x2b6   :  { %5070 = vmatpush1.bf16.msra.mxu0 %v8604_v40  ;;  %5102 = vmatpush1.bf16.msra.mxu1 %v8605_v36 }
 0x2b7   :  { %5072 = vmatprep.subr.bf16.mxu0 %v8606_v13  ;;  %5104 = vmatprep.subr.bf16.mxu1 %v8607_v41 }
 0x2b8   :  { %1489 = vmatprep.mubr.f32.mxu0 %v8553_v3  ;;  %1560 = vmatprep.mubr.f32.mxu1 %v8553_v3 }
 0x2ba   :  { %5074 = vmatpush1.bf16.msra.mxu0 %v8608_v57  ;;  %5106 = vmatpush1.bf16.msra.mxu1 %v8609_v14 }
 0x2bb   :  { %5076 = vmatprep.subr.bf16.mxu0 %v8610_v44  ;;  %5108 = vmatprep.subr.bf16.mxu1 %v8611_v4  ;;  %v1101_v44 = vadd.f32 1.0, %v6488_v0  ;;  %v8620_v4 = vld [vmem:[#allocation97_spill] sm:$0xff]  ;;  %v6490_v0 = vpop.eup %6489 }
 0x2bd   :  { %6491 = vrcp.f32 %v1101_v44 }
 0x2be   :  { %5078 = vmatpush1.bf16.msra.mxu0 %v8612_v6  ;;  %5110 = vmatpush1.bf16.msra.mxu1 %v8613_v1  ;;  %v8621_v6 = vld [vmem:[#allocation98_spill] sm:$0xff] }
 0x2bf   :  { %5080 = vmatprep.subr.bf16.mxu0 %v8614_v32  ;;  %5112 = vmatprep.subr.bf16.mxu1 %v8615_v27 }
 0x2c2   :  { %5082 = vmatpush1.bf16.msra.mxu0 %v8616_v20  ;;  %5114 = vmatpush1.bf16.msra.mxu1 %v8617_v7 }
 0x2c3   :  { %5084 = vmatprep.subr.bf16.mxu0 %v8618_v16  ;;  %5116 = vmatprep.subr.bf16.mxu1 %v8619_v51 }
 0x2c6   :  { %5086 = vmatpush1.bf16.msra.mxu0 %v8620_v4  ;;  %5118 = vmatpush1.bf16.msra.mxu1 %v8621_v6 }
 0x2c7   :  { %5088 = vmatprep.subr.bf16.mxu0 %v7303_v59  ;;  %5120 = vmatprep.subr.bf16.mxu1 %v7305_v23  ;;  %v6492_v59 = vpop.eup %6491 }
 0x2c8   :  { %v1108_v44 = vmul.f32 %v6492_v59, %v6490_v0  ;;  %v8622_v59 = vld [vmem:[#allocation37_spill] sm:$0xff]  ;;  %v8623_v0 = vld [vmem:[#allocation38_spill] sm:$0xff] }
 0x2ca   :  { %5090 = vmatpush1.bf16.msra.mxu0 %v7309_v31  ;;  %5122 = vmatpush1.bf16.msra.mxu1 %v7311_v26 }
 0x2cb   :  { %5092 = vmatprep.subr.bf16.mxu0 %v7315_v63  ;;  %5124 = vmatprep.subr.bf16.mxu1 %v7317_v37 }
 0x2ce   :  { %5094 = vmatpush1.bf16.msra.mxu0 %v7321_v9  ;;  %5126 = vmatpush1.bf16.msra.mxu1 %v7323_v55 }
 0x2cf   :  { %5096 = vmatprep.subr.bf16.mxu0 %v7327_v30  ;;  %5128 = vmatprep.subr.bf16.mxu1 %v7329_v53 }
 0x2d2   :  { %5098 = vmatpush1.bf16.msra.mxu0 %v7333_v62  ;;  %5130 = vmatpush1.bf16.msra.mxu1 %v7335_v49 }
 0x2d3   :  { %5132 = vmatprep.subr.bf16.mxu0 %v6958_v17  ;;  %5164 = vmatprep.subr.bf16.mxu1 %v6960_v21 }
 0x2d5   :  { %1490 = vmatmul.mubr.f32.vlgmr.msra.gmra.mrb[18].mxu0 %v1108_v44  ;;  %1561 = vmatmul.mubr.f32.vlgmr.msra.gmra.mrb[18].mxu1 %v1108_v44  ;;  %v8624_v44 = vld [vmem:[#allocation39_spill] sm:$0xff] }
 0x2d6   :  { %5134 = vmatpush1.bf16.msra.mxu0 %v6962_v22  ;;  %5166 = vmatpush1.bf16.msra.mxu1 %v6965_v25 }
 0x2d7   :  { %5136 = vmatprep.subr.bf16.mxu0 %v6969_v29  ;;  %5168 = vmatprep.subr.bf16.mxu1 %v6976_v34 }
 0x2d8   :  { %1663 = vmatprep.mubr.f32.mxu0 %v8553_v3  ;;  %1734 = vmatprep.mubr.f32.mxu1 %v8553_v3 }
 0x2da   :  { %5138 = vmatpush1.bf16.msra.mxu0 %v6978_v35  ;;  %5170 = vmatpush1.bf16.msra.mxu1 %v6982_v38 }
 0x2db   :  { %5140 = vmatprep.subr.bf16.mxu0 %v6986_v42  ;;  %5172 = vmatprep.subr.bf16.mxu1 %v6993_v47 }
 0x2de   :  { %5142 = vmatpush1.bf16.msra.mxu0 %v6997_v50  ;;  %5174 = vmatpush1.bf16.msra.mxu1 %v7001_v54 }
 0x2df   :  { %5144 = vmatprep.subr.bf16.mxu0 %v7005_v58  ;;  %5176 = vmatprep.subr.bf16.mxu1 %v7009_v61 }
 0x2e2   :  { %5146 = vmatpush1.bf16.msra.mxu0 %v7016_v2  ;;  %5178 = vmatpush1.bf16.msra.mxu1 %v7020_v5 }
 0x2e3   :  { %5148 = vmatprep.subr.bf16.mxu0 %v7024_v8  ;;  %5180 = vmatprep.subr.bf16.mxu1 %v7028_v11 }
 0x2e6   :  { %5150 = vmatpush1.bf16.msra.mxu0 %v7035_v15  ;;  %5182 = vmatpush1.bf16.msra.mxu1 %v7039_v19  ;;  %v8661_v15 = vld [vmem:[#allocation100_spill] sm:$0xff] }
 0x2e7   :  { %5152 = vmatprep.subr.bf16.mxu0 %v7043_v24  ;;  %5184 = vmatprep.subr.bf16.mxu1 %v7047_v28  ;;  %v8625_v24 = vld [vmem:[#allocation40_spill] sm:$0xff]  ;;  %v8626_v28 = vld [vmem:[#allocation41_spill] sm:$0xff] }
 0x2ea   :  { %5154 = vmatpush1.bf16.msra.mxu0 %v7054_v33  ;;  %5186 = vmatpush1.bf16.msra.mxu1 %v7058_v39  ;;  %v8627_v33 = vld [vmem:[#allocation42_spill] sm:$0xff]  ;;  %v8660_v39 = vld [vmem:[#allocation75_spill] sm:$0xff] }
 0x2eb   :  { %5156 = vmatprep.subr.bf16.mxu0 %v7062_v43  ;;  %5188 = vmatprep.subr.bf16.mxu1 %v7066_v46  ;;  %v8628_v46 = vld [vmem:[#allocation43_spill] sm:$0xff]  ;;  %v8642_v43 = vld [vmem:[#allocation57_spill] sm:$0xff] }
 0x2ee   :  { %5158 = vmatpush1.bf16.msra.mxu0 %v7073_v52  ;;  %5190 = vmatpush1.bf16.msra.mxu1 %v7077_v56  ;;  %v8629_v52 = vld [vmem:[#allocation44_spill] sm:$0xff]  ;;  %v8630_v56 = vld [vmem:[#allocation45_spill] sm:$0xff] }
 0x2ef   :  { %5160 = vmatprep.subr.bf16.mxu0 %v8622_v59  ;;  %5192 = vmatprep.subr.bf16.mxu1 %v8623_v0  ;;  %v8631_v59 = vld [vmem:[#allocation46_spill] sm:$0xff]  ;;  %v8641_v0 = vld [vmem:[#allocation56_spill] sm:$0xff] }
 0x2f2   :  { %5162 = vmatpush1.bf16.msra.mxu0 %v8624_v44  ;;  %5194 = vmatpush1.bf16.msra.mxu1 %v8625_v24  ;;  %v8632_v24 = vld [vmem:[#allocation47_spill] sm:$0xff]  ;;  %v8635_v44 = vld [vmem:[#allocation50_spill] sm:$0xff] }
 0x2f3   :  { %5196 = vmatprep.subr.bf16.mxu0 %v8626_v28  ;;  %5228 = vmatprep.subr.bf16.mxu1 %v8627_v33  ;;  %v8633_v28 = vld [vmem:[#allocation48_spill] sm:$0xff]  ;;  %v8634_v33 = vld [vmem:[#allocation49_spill] sm:$0xff] }
 0x2f5   :  { %1664 = vmatmul.mubr.f32.vlgmr.msra.gmra.mrb[4].mxu0 %v7448_v10  ;;  %1735 = vmatmul.mubr.f32.vlgmr.msra.gmra.mrb[4].mxu1 %v7448_v10  ;;  %v8636_v10 = vld [vmem:[#allocation51_spill] sm:$0xff] }
 0x2f6   :  { %5198 = vmatpush1.bf16.msra.mxu0 %v8628_v46  ;;  %5230 = vmatpush1.bf16.msra.mxu1 %v8629_v52  ;;  %v8637_v46 = vld [vmem:[#allocation52_spill] sm:$0xff]  ;;  %v8638_v52 = vld [vmem:[#allocation53_spill] sm:$0xff] }
 0x2f7   :  { %5200 = vmatprep.subr.bf16.mxu0 %v8630_v56  ;;  %5232 = vmatprep.subr.bf16.mxu1 %v8631_v59  ;;  %v8639_v56 = vld [vmem:[#allocation54_spill] sm:$0xff]  ;;  %v8640_v59 = vld [vmem:[#allocation55_spill] sm:$0xff] }
 0x2f8   :  { %1833 = vmatprep.mubr.f32.mxu0 %v8553_v3  ;;  %1904 = vmatprep.mubr.f32.mxu1 %v8553_v3 }
 0x2fa   :  { %5202 = vmatpush1.bf16.msra.mxu0 %v8632_v24  ;;  %5234 = vmatpush1.bf16.msra.mxu1 %v8633_v28  ;;  %v8643_v24 = vld [vmem:[#allocation58_spill] sm:$0xff]  ;;  %v8644_v28 = vld [vmem:[#allocation59_spill] sm:$0xff] }
 0x2fb   :  { %5204 = vmatprep.subr.bf16.mxu0 %v8634_v33  ;;  %5236 = vmatprep.subr.bf16.mxu1 %v8635_v44  ;;  %v8645_v33 = vld [vmem:[#allocation60_spill] sm:$0xff]  ;;  %v8646_v44 = vld [vmem:[#allocation61_spill] sm:$0xff] }
 0x2fe   :  { %5206 = vmatpush1.bf16.msra.mxu0 %v8636_v10  ;;  %5238 = vmatpush1.bf16.msra.mxu1 %v8637_v46  ;;  %v8647_v10 = vld [vmem:[#allocation62_spill] sm:$0xff]  ;;  %v8648_v46 = vld [vmem:[#allocation63_spill] sm:$0xff] }
 0x2ff   :  { %5208 = vmatprep.subr.bf16.mxu0 %v8638_v52  ;;  %5240 = vmatprep.subr.bf16.mxu1 %v8639_v56  ;;  %v8649_v52 = vld [vmem:[#allocation64_spill] sm:$0xff]  ;;  %v8650_v56 = vld [vmem:[#allocation65_spill] sm:$0xff] }
 0x302   :  { %5210 = vmatpush1.bf16.msra.mxu0 %v8640_v59  ;;  %5242 = vmatpush1.bf16.msra.mxu1 %v8641_v0  ;;  %v8651_v59 = vld [vmem:[#allocation66_spill] sm:$0xff]  ;;  %v8652_v0 = vld [vmem:[#allocation67_spill] sm:$0xff] }
 0x303   :  { %5212 = vmatprep.subr.bf16.mxu0 %v8642_v43  ;;  %5244 = vmatprep.subr.bf16.mxu1 %v8643_v24  ;;  %v8653_v43 = vld [vmem:[#allocation68_spill] sm:$0xff]  ;;  %v8654_v24 = vld [vmem:[#allocation69_spill] sm:$0xff] }
 0x306   :  { %5214 = vmatpush1.bf16.msra.mxu0 %v8644_v28  ;;  %5246 = vmatpush1.bf16.msra.mxu1 %v8645_v33  ;;  %v8655_v28 = vld [vmem:[#allocation70_spill] sm:$0xff]  ;;  %v8656_v33 = vld [vmem:[#allocation71_spill] sm:$0xff] }
 0x307   :  { %5216 = vmatprep.subr.bf16.mxu0 %v8646_v44  ;;  %5248 = vmatprep.subr.bf16.mxu1 %v8647_v10  ;;  %v8657_v44 = vld [vmem:[#allocation72_spill] sm:$0xff]  ;;  %v8658_v10 = vld [vmem:[#allocation73_spill] sm:$0xff] }
 0x30a   :  { %5218 = vmatpush1.bf16.msra.mxu0 %v8648_v46  ;;  %5250 = vmatpush1.bf16.msra.mxu1 %v8649_v52  ;;  %v8659_v46 = vld [vmem:[#allocation74_spill] sm:$0xff] }
 0x30b   :  { %5220 = vmatprep.subr.bf16.mxu0 %v8650_v56  ;;  %5252 = vmatprep.subr.bf16.mxu1 %v8651_v59 }
 0x30e   :  { %5222 = vmatpush1.bf16.msra.mxu0 %v8652_v0  ;;  %5254 = vmatpush1.bf16.msra.mxu1 %v8653_v43 }
 0x30f   :  { %5224 = vmatprep.subr.bf16.mxu0 %v8654_v24  ;;  %5256 = vmatprep.subr.bf16.mxu1 %v8655_v28  ;;  %v8662_v28 = vld [vmem:[#allocation101_spill] sm:$0xff] }
 0x312   :  { %5226 = vmatpush1.bf16.msra.mxu0 %v8656_v33  ;;  %5258 = vmatpush1.bf16.msra.mxu1 %v8657_v44 }
 0x313   :  { %5260 = vmatprep.subr.bf16.mxu0 %v8658_v10  ;;  %5292 = vmatprep.subr.bf16.mxu1 %v8659_v46 }
 0x3a8   :  { %v1491_v52 = vpop.f32.mrb[18].mxu0  ;;  %v1562_v56 = vpop.f32.mrb[18].mxu1 }
 0x3a9   :  { %v6343_v59 = vadd.f32 %v1491_v52, %v8660_v39  ;;  %v1493_v19 = vpop.f32.mrb[19].mxu0  ;;  %v1564_v0 = vpop.f32.mrb[19].mxu1  ;;  %v6345_v33 = vadd.f32 %v1562_v56, %v8662_v28 }
 0x3aa   :  { %v6344_v43 = vadd.f32 %v1493_v19, %v8661_v15  ;;  %v8664_v15 = vld [vmem:[#allocation77_spill] sm:$0xff] }
 0x3ab   :  { %v4647_v11 = vmul.f32 -1.442695, %v6343_v59 }
 0x3ac   :  { %v4648_v24 = vmul.f32 -1.442695, %v6344_v43 }
 0x3ad   :  { %6493 = vpow2.f32 %v4647_v11 }
 0x3ae   :  { %6495 = vpow2.f32 %v4648_v24  ;;  %v8663_v24 = vld [vmem:[#allocation76_spill] sm:$0xff] }
 0x3af   :  { %6497 = vtanh.f32 %v6345_v33 }
 0x3b7   :  { %v6494_v8 = vpop.eup %6493 }
 0x3b8   :  { %v6496_v44 = vpop.eup %6495  ;;  %v1574_v5 = vadd.f32 1.0, %v6494_v8 }
 0x3b9   :  { %v1580_v10 = vadd.f32 1.0, %v6496_v44  ;;  %v6498_v46 = vpop.eup %6497 }
 0x3ba   :  { %6499 = vrcp.f32 %v1574_v5 }
 0x3bb   :  { %6501 = vrcp.f32 %v1580_v10 }
 0x3c4   :  { %v6500_v2 = vpop.eup %6499 }
 0x3c5   :  { %v6502_v52 = vpop.eup %6501  ;;  %v1591_v39 = vmul.f32 %v6500_v2, %v6498_v46 }
 0x3c6   :  { %v1590_v61 = vmul.f32 %v6502_v52, %v7433_v45 }
 0x3c8   :  { %v7561_v19 = vadd.f32 %v1591_v39, %v1590_v61  ;;  %v1665_v43 = vpop.f32.mrb[4].mxu0  ;;  %v1736_v11 = vpop.f32.mrb[4].mxu1 }
 0x3c9   :  { %v6311_v59 = vadd.f32 %v1665_v43, %v8663_v24  ;;  %v1667_v56 = vpop.f32.mrb[5].mxu0  ;;  %v1738_v28 = vpop.f32.mrb[5].mxu1  ;;  %v6327_v2 = vadd.f32 %v1736_v11, %v8601_v60  ;;  %v6346_v11 = vadd.f32 %v1564_v0, %v7445_v18  ;;  %v8666_v0 = vld [vmem:[#allocation88_spill] sm:$0xff] }
 0x3ca   :  { %v6312_v8 = vadd.f32 %v1667_v56, %v8664_v15  ;;  %v6328_v5 = vadd.f32 %v1738_v28, %v8600_v12 }
 0x3cb   :  { %v4650_v33 = vmul.f32 -1.442695, %v6311_v59 }
 0x3cc   :  { %v4651_v44 = vmul.f32 -1.442695, %v6312_v8  ;;  %v4652_v10 = vmul.f32 -1.442695, %v6328_v5 }
 0x3cd   :  { %6503 = vpow2.f32 %v4650_v33 }
 0x3ce   :  { %6505 = vpow2.f32 %v4651_v44 }
 0x3cf   :  { %6507 = vpow2.f32 %v4652_v10 }
 0x3d0   :  { %6509 = vtanh.f32 %v6327_v2  ;;  %v4649_v2 = vmul.f32 -1.442695, %v6346_v11  ;;  %v8672_v11 = vld [vmem:[#allocation25_spill] sm:$0xff] }
 0x3d7   :  { %v6504_v46 = vpop.eup %6503 }
 0x3d8   :  { %v6506_v61 = vpop.eup %6505  ;;  %v1748_v39 = vadd.f32 1.0, %v6504_v46 }
 0x3d9   :  { %v1754_v45 = vadd.f32 1.0, %v6506_v61  ;;  %v6508_v52 = vpop.eup %6507  ;;  %v8667_v61 = vld [vmem:[#allocation89_spill] sm:$0xff] }
 0x3da   :  { %6511 = vrcp.f32 %v1748_v39  ;;  %v6510_v43 = vpop.eup %6509  ;;  %v1761_v33 = vadd.f32 1.0, %v6508_v52  ;;  %v8668_v52 = vld [vmem:[#allocation99_spill] sm:$0xff] }
 0x3db   :  { %6513 = vrcp.f32 %v1754_v45 }
 0x3dc   :  { %6515 = vrcp.f32 %v1761_v33  ;;  %v8670_v33 = vld [vmem:[#allocation23_spill] sm:$0xff] }
 0x3e4   :  { %v6512_v56 = vpop.eup %6511 }
 0x3e5   :  { %v6514_v59 = vpop.eup %6513  ;;  %v1765_v8 = vmul.f32 %v6512_v56, %v6510_v43 }
 0x3e6   :  { %v1764_v44 = vmul.f32 %v6514_v59, %v7440_v48  ;;  %v6516_v5 = vpop.eup %6515  ;;  %v8665_v48 = vld [vmem:[#allocation87_spill] sm:$0xff] }
 0x3e8   :  { %v7568_v28 = vadd.f32 %v1765_v8, %v1764_v44  ;;  %v8669_v8 = vld [vmem:[#allocation22_spill] sm:$0xff]  ;;  %v8671_v44 = vld [vmem:[#allocation24_spill] sm:$0xff] }
 0x3ea   :  { %6517 = vtanh.f32 %v7568_v28 }
 0x3eb   :  { %6519 = vpow2.f32 %v4649_v2  ;;  %v8675_v2 = vld [vmem:[#allocation28_spill] sm:$0xff] }
 0x3ec   :  { %6521 = vtanh.f32 %v7561_v19 }
 0x3f4   :  { %v6518_v10 = vpop.eup %6517 }
 0x3f5   :  { %v7572_v46 = vmul.f32 %v6518_v10, %v6516_v5  ;;  %v6520_v39 = vpop.eup %6519  ;;  %v8673_v5 = vld [vmem:[#allocation26_spill] sm:$0xff]  ;;  %v8674_v10 = vld [vmem:[#allocation27_spill] sm:$0xff] }
 0x3f6   :  { %v1587_v45 = vadd.f32 1.0, %v6520_v39  ;;  %v6522_v43 = vpop.eup %6521  ;;  %v8676_v39 = vld [vmem:[#allocation29_spill] sm:$0xff] }
 0x3f7   :  { %1834 = vmatmul.mubr.f32.vlgmr.msra.gmra.mrb[20].mxu0 %v7572_v46  ;;  %1905 = vmatmul.mubr.f32.vlgmr.msra.gmra.mrb[20].mxu1 %v7572_v46 }
 0x3f8   :  { %5262 = vmatpush1.bf16.msra.mxu0 %v8604_v40  ;;  %5294 = vmatpush1.bf16.msra.mxu1 %v8605_v36  ;;  %6523 = vrcp.f32 %v1587_v45  ;;  %v8677_v45 = vld [vmem:[#allocation30_spill] sm:$0xff] }
 0x3f9   :  { %5264 = vmatprep.subr.bf16.mxu0 %v8606_v13  ;;  %5296 = vmatprep.subr.bf16.mxu1 %v8607_v41 }
 0x3fa   :  { %1975 = vmatprep.mubr.f32.mxu0 %v8553_v3  ;;  %2046 = vmatprep.mubr.f32.mxu1 %v8553_v3 }
 0x3fc   :  { %5266 = vmatpush1.bf16.msra.mxu0 %v8608_v57  ;;  %5298 = vmatpush1.bf16.msra.mxu1 %v8609_v14 }
 0x3fd   :  { %5268 = vmatprep.subr.bf16.mxu0 %v8665_v48  ;;  %5300 = vmatprep.subr.bf16.mxu1 %v8666_v0 }
 0x400   :  { %5270 = vmatpush1.bf16.msra.mxu0 %v8667_v61  ;;  %5302 = vmatpush1.bf16.msra.mxu1 %v8613_v1 }
 0x401   :  { %5272 = vmatprep.subr.bf16.mxu0 %v8614_v32  ;;  %5304 = vmatprep.subr.bf16.mxu1 %v8615_v27 }
 0x402   :  { %v6524_v56 = vpop.eup %6523 }
 0x403   :  { %v1594_v59 = vmul.f32 %v6524_v56, %v6522_v43  ;;  %v8678_v43 = vld [vmem:[#allocation31_spill] sm:$0xff]  ;;  %v8679_v56 = vld [vmem:[#allocation32_spill] sm:$0xff] }
 0x404   :  { %5274 = vmatpush1.bf16.msra.mxu0 %v8616_v20  ;;  %5306 = vmatpush1.bf16.msra.mxu1 %v8617_v7 }
 0x405   :  { %5276 = vmatprep.subr.bf16.mxu0 %v8618_v16  ;;  %5308 = vmatprep.subr.bf16.mxu1 %v8619_v51 }
 0x408   :  { %5278 = vmatpush1.bf16.msra.mxu0 %v8620_v4  ;;  %5310 = vmatpush1.bf16.msra.mxu1 %v8621_v6 }
 0x409   :  { %5280 = vmatprep.subr.bf16.mxu0 %v8668_v52  ;;  %5312 = vmatprep.subr.bf16.mxu1 %v7305_v23 }
 0x40c   :  { %5282 = vmatpush1.bf16.msra.mxu0 %v7309_v31  ;;  %5314 = vmatpush1.bf16.msra.mxu1 %v7311_v26 }
 0x40d   :  { %5284 = vmatprep.subr.bf16.mxu0 %v7315_v63  ;;  %5316 = vmatprep.subr.bf16.mxu1 %v7317_v37 }
 0x410   :  { %5286 = vmatpush1.bf16.msra.mxu0 %v7321_v9  ;;  %5318 = vmatpush1.bf16.msra.mxu1 %v7323_v55 }
 0x411   :  { %5288 = vmatprep.subr.bf16.mxu0 %v7327_v30  ;;  %5320 = vmatprep.subr.bf16.mxu1 %v7329_v53 }
 0x414   :  { %5290 = vmatpush1.bf16.msra.mxu0 %v7333_v62  ;;  %5322 = vmatpush1.bf16.msra.mxu1 %v7335_v49 }
 0x415   :  { %5324 = vmatprep.subr.bf16.mxu0 %v6958_v17  ;;  %5356 = vmatprep.subr.bf16.mxu1 %v6960_v21 }
 0x417   :  { %1976 = vmatmul.mubr.f32.vlgmr.msra.gmra.mrb[20].mxu0 %v1594_v59  ;;  %2047 = vmatmul.mubr.f32.vlgmr.msra.gmra.mrb[20].mxu1 %v1594_v59  ;;  %v8680_v59 = vld [vmem:[#allocation33_spill] sm:$0xff] }
 0x418   :  { %5326 = vmatpush1.bf16.msra.mxu0 %v6962_v22  ;;  %5358 = vmatpush1.bf16.msra.mxu1 %v6965_v25 }
 0x419   :  { %5328 = vmatprep.subr.bf16.mxu0 %v6969_v29  ;;  %5360 = vmatprep.subr.bf16.mxu1 %v6976_v34 }
 0x41a   :  { %2149 = vmatprep.mubr.f32.mxu0 %v8553_v3  ;;  %2220 = vmatprep.mubr.f32.mxu1 %v8553_v3 }
 0x41c   :  { %5330 = vmatpush1.bf16.msra.mxu0 %v6978_v35  ;;  %5362 = vmatpush1.bf16.msra.mxu1 %v6982_v38 }
 0x41d   :  { %5332 = vmatprep.subr.bf16.mxu0 %v6986_v42  ;;  %5364 = vmatprep.subr.bf16.mxu1 %v6993_v47 }
 0x420   :  { %5334 = vmatpush1.bf16.msra.mxu0 %v6997_v50  ;;  %5366 = vmatpush1.bf16.msra.mxu1 %v7001_v54 }
 0x421   :  { %5336 = vmatprep.subr.bf16.mxu0 %v7005_v58  ;;  %5368 = vmatprep.subr.bf16.mxu1 %v8669_v8  ;;  %v8723_v58 = vld [vmem:[#allocation100_spill] sm:$0xff] }
 0x424   :  { %5338 = vmatpush1.bf16.msra.mxu0 %v8670_v33  ;;  %5370 = vmatpush1.bf16.msra.mxu1 %v8671_v44  ;;  %v8681_v33 = vld [vmem:[#allocation34_spill] sm:$0xff]  ;;  %v8682_v44 = vld [vmem:[#allocation35_spill] sm:$0xff] }
 0x425   :  { %5340 = vmatprep.subr.bf16.mxu0 %v8672_v11  ;;  %5372 = vmatprep.subr.bf16.mxu1 %v8673_v5  ;;  %v8683_v11 = vld [vmem:[#allocation36_spill] sm:$0xff]  ;;  %v8684_v5 = vld [vmem:[#allocation37_spill] sm:$0xff] }
 0x428   :  { %5342 = vmatpush1.bf16.msra.mxu0 %v8674_v10  ;;  %5374 = vmatpush1.bf16.msra.mxu1 %v8675_v2  ;;  %v8685_v10 = vld [vmem:[#allocation38_spill] sm:$0xff]  ;;  %v8686_v2 = vld [vmem:[#allocation39_spill] sm:$0xff] }
 0x429   :  { %5344 = vmatprep.subr.bf16.mxu0 %v8676_v39  ;;  %5376 = vmatprep.subr.bf16.mxu1 %v8677_v45  ;;  %v8687_v39 = vld [vmem:[#allocation40_spill] sm:$0xff]  ;;  %v8688_v45 = vld [vmem:[#allocation41_spill] sm:$0xff] }
 0x42c   :  { %5346 = vmatpush1.bf16.msra.mxu0 %v8678_v43  ;;  %5378 = vmatpush1.bf16.msra.mxu1 %v8679_v56  ;;  %v8689_v43 = vld [vmem:[#allocation42_spill] sm:$0xff]  ;;  %v8722_v56 = vld [vmem:[#allocation75_spill] sm:$0xff] }
 0x42d   :  { %5348 = vmatprep.subr.bf16.mxu0 %v8680_v59  ;;  %5380 = vmatprep.subr.bf16.mxu1 %v8681_v33  ;;  %v8690_v33 = vld [vmem:[#allocation43_spill] sm:$0xff]  ;;  %v8704_v59 = vld [vmem:[#allocation57_spill] sm:$0xff] }
 0x430   :  { %5350 = vmatpush1.bf16.msra.mxu0 %v8682_v44  ;;  %5382 = vmatpush1.bf16.msra.mxu1 %v8683_v11  ;;  %v8691_v44 = vld [vmem:[#allocation44_spill] sm:$0xff]  ;;  %v8692_v11 = vld [vmem:[#allocation45_spill] sm:$0xff] }
 0x431   :  { %5352 = vmatprep.subr.bf16.mxu0 %v8684_v5  ;;  %5384 = vmatprep.subr.bf16.mxu1 %v8685_v10  ;;  %v8693_v5 = vld [vmem:[#allocation46_spill] sm:$0xff]  ;;  %v8703_v10 = vld [vmem:[#allocation56_spill] sm:$0xff] }
 0x434   :  { %5354 = vmatpush1.bf16.msra.mxu0 %v8686_v2  ;;  %5386 = vmatpush1.bf16.msra.mxu1 %v8687_v39  ;;  %v8694_v39 = vld [vmem:[#allocation47_spill] sm:$0xff]  ;;  %v8697_v2 = vld [vmem:[#allocation50_spill] sm:$0xff] }
 0x435   :  { %5388 = vmatprep.subr.bf16.mxu0 %v8688_v45  ;;  %5420 = vmatprep.subr.bf16.mxu1 %v8689_v43  ;;  %v8695_v45 = vld [vmem:[#allocation48_spill] sm:$0xff]  ;;  %v8696_v43 = vld [vmem:[#allocation49_spill] sm:$0xff] }
 0x437   :  { %2150 = vmatmul.mubr.f32.vlgmr.msra.gmra.mrb[6].mxu0 %v7572_v46  ;;  %2221 = vmatmul.mubr.f32.vlgmr.msra.gmra.mrb[6].mxu1 %v7572_v46  ;;  %v8698_v46 = vld [vmem:[#allocation51_spill] sm:$0xff] }
 0x438   :  { %5390 = vmatpush1.bf16.msra.mxu0 %v8690_v33  ;;  %5422 = vmatpush1.bf16.msra.mxu1 %v8691_v44  ;;  %v8699_v33 = vld [vmem:[#allocation52_spill] sm:$0xff]  ;;  %v8700_v44 = vld [vmem:[#allocation53_spill] sm:$0xff] }
 0x439   :  { %5392 = vmatprep.subr.bf16.mxu0 %v8692_v11  ;;  %5424 = vmatprep.subr.bf16.mxu1 %v8693_v5  ;;  %v8701_v11 = vld [vmem:[#allocation54_spill] sm:$0xff]  ;;  %v8702_v5 = vld [vmem:[#allocation55_spill] sm:$0xff] }
 0x43a   :  { %2319 = vmatprep.mubr.f32.mxu0 %v8553_v3  ;;  %2390 = vmatprep.mubr.f32.mxu1 %v8553_v3 }
 0x43c   :  { %5394 = vmatpush1.bf16.msra.mxu0 %v8694_v39  ;;  %5426 = vmatpush1.bf16.msra.mxu1 %v8695_v45  ;;  %v8705_v39 = vld [vmem:[#allocation58_spill] sm:$0xff]  ;;  %v8706_v45 = vld [vmem:[#allocation59_spill] sm:$0xff] }
 0x43d   :  { %5396 = vmatprep.subr.bf16.mxu0 %v8696_v43  ;;  %5428 = vmatprep.subr.bf16.mxu1 %v8697_v2  ;;  %v8707_v43 = vld [vmem:[#allocation60_spill] sm:$0xff]  ;;  %v8708_v2 = vld [vmem:[#allocation61_spill] sm:$0xff] }
 0x440   :  { %5398 = vmatpush1.bf16.msra.mxu0 %v8698_v46  ;;  %5430 = vmatpush1.bf16.msra.mxu1 %v8699_v33  ;;  %v8709_v46 = vld [vmem:[#allocation62_spill] sm:$0xff]  ;;  %v8710_v33 = vld [vmem:[#allocation63_spill] sm:$0xff] }
 0x441   :  { %5400 = vmatprep.subr.bf16.mxu0 %v8700_v44  ;;  %5432 = vmatprep.subr.bf16.mxu1 %v8701_v11  ;;  %v8711_v44 = vld [vmem:[#allocation64_spill] sm:$0xff]  ;;  %v8712_v11 = vld [vmem:[#allocation65_spill] sm:$0xff] }
 0x444   :  { %5402 = vmatpush1.bf16.msra.mxu0 %v8702_v5  ;;  %5434 = vmatpush1.bf16.msra.mxu1 %v8703_v10  ;;  %v8713_v5 = vld [vmem:[#allocation66_spill] sm:$0xff]  ;;  %v8714_v10 = vld [vmem:[#allocation67_spill] sm:$0xff] }
 0x445   :  { %5404 = vmatprep.subr.bf16.mxu0 %v8704_v59  ;;  %5436 = vmatprep.subr.bf16.mxu1 %v8705_v39  ;;  %v8715_v59 = vld [vmem:[#allocation68_spill] sm:$0xff]  ;;  %v8716_v39 = vld [vmem:[#allocation69_spill] sm:$0xff] }
 0x448   :  { %5406 = vmatpush1.bf16.msra.mxu0 %v8706_v45  ;;  %5438 = vmatpush1.bf16.msra.mxu1 %v8707_v43  ;;  %v8717_v45 = vld [vmem:[#allocation70_spill] sm:$0xff]  ;;  %v8718_v43 = vld [vmem:[#allocation71_spill] sm:$0xff] }
 0x449   :  { %5408 = vmatprep.subr.bf16.mxu0 %v8708_v2  ;;  %5440 = vmatprep.subr.bf16.mxu1 %v8709_v46  ;;  %v8719_v2 = vld [vmem:[#allocation72_spill] sm:$0xff]  ;;  %v8720_v46 = vld [vmem:[#allocation73_spill] sm:$0xff] }
 0x44c   :  { %5410 = vmatpush1.bf16.msra.mxu0 %v8710_v33  ;;  %5442 = vmatpush1.bf16.msra.mxu1 %v8711_v44  ;;  %v8721_v33 = vld [vmem:[#allocation74_spill] sm:$0xff] }
 0x44d   :  { %5412 = vmatprep.subr.bf16.mxu0 %v8712_v11  ;;  %5444 = vmatprep.subr.bf16.mxu1 %v8713_v5 }
 0x450   :  { %5414 = vmatpush1.bf16.msra.mxu0 %v8714_v10  ;;  %5446 = vmatpush1.bf16.msra.mxu1 %v8715_v59 }
 0x451   :  { %5416 = vmatprep.subr.bf16.mxu0 %v8716_v39  ;;  %5448 = vmatprep.subr.bf16.mxu1 %v8717_v45  ;;  %v8724_v45 = vld [vmem:[#allocation101_spill] sm:$0xff] }
 0x454   :  { %5418 = vmatpush1.bf16.msra.mxu0 %v8718_v43  ;;  %5450 = vmatpush1.bf16.msra.mxu1 %v8719_v2 }
 0x455   :  { %5452 = vmatprep.subr.bf16.mxu0 %v8720_v46  ;;  %5484 = vmatprep.subr.bf16.mxu1 %v8721_v33 }
 0x4ea   :  { %v1977_v44 = vpop.f32.mrb[20].mxu0  ;;  %v2048_v11 = vpop.f32.mrb[20].mxu1 }
 0x4eb   :  { %v6347_v5 = vadd.f32 %v1977_v44, %v8722_v56  ;;  %v1979_v8 = vpop.f32.mrb[21].mxu0  ;;  %v2050_v10 = vpop.f32.mrb[21].mxu1  ;;  %v6349_v43 = vadd.f32 %v2048_v11, %v8724_v45 }
 0x4ec   :  { %v6348_v59 = vadd.f32 %v1979_v8, %v8723_v58 }
 0x4ed   :  { %v4653_v54 = vmul.f32 -1.442695, %v6347_v5 }
 0x4ee   :  { %v4654_v39 = vmul.f32 -1.442695, %v6348_v59 }
 0x4ef   :  { %6525 = vpow2.f32 %v4653_v54 }
 0x4f0   :  { %6527 = vpow2.f32 %v4654_v39 }
 0x4f1   :  { %6529 = vtanh.f32 %v6349_v43 }
 0x4f9   :  { %v6526_v50 = vpop.eup %6525 }
 0x4fa   :  { %v6528_v2 = vpop.eup %6527  ;;  %v2060_v47 = vadd.f32 1.0, %v6526_v50 }
 0x4fb   :  { %v2066_v46 = vadd.f32 1.0, %v6528_v2  ;;  %v6530_v33 = vpop.eup %6529 }
 0x4fc   :  { %6531 = vrcp.f32 %v2060_v47 }
 0x4fd   :  { %6533 = vrcp.f32 %v2066_v46 }
 0x506   :  { %v6532_v42 = vpop.eup %6531 }
 0x507   :  { %v6534_v44 = vpop.eup %6533  ;;  %v2077_v56 = vmul.f32 %v6532_v42, %v6530_v33 }
 0x508   :  { %v2076_v38 = vmul.f32 %v6534_v44, %v7561_v19 }
 0x50a   :  { %v7685_v8 = vadd.f32 %v2077_v56, %v2076_v38  ;;  %v2151_v5 = vpop.f32.mrb[6].mxu0  ;;  %v2222_v54 = vpop.f32.mrb[6].mxu1 }
 0x50b   :  { %v6313_v39 = vadd.f32 %v2151_v5, %v8663_v24  ;;  %v2153_v11 = vpop.f32.mrb[7].mxu0  ;;  %v2224_v59 = vpop.f32.mrb[7].mxu1  ;;  %v6329_v42 = vadd.f32 %v2222_v54, %v8601_v60  ;;  %v6350_v54 = vadd.f32 %v2050_v10, %v7445_v18 }
 0x50c   :  { %v6314_v50 = vadd.f32 %v2153_v11, %v8664_v15  ;;  %v6330_v47 = vadd.f32 %v2224_v59, %v8600_v12 }
 0x50d   :  { %v4656_v43 = vmul.f32 -1.442695, %v6313_v39 }
 0x50e   :  { %v4657_v2 = vmul.f32 -1.442695, %v6314_v50  ;;  %v4658_v46 = vmul.f32 -1.442695, %v6330_v47 }
 0x50f   :  { %6535 = vpow2.f32 %v4656_v43 }
 0x510   :  { %6537 = vpow2.f32 %v4657_v2 }
 0x511   :  { %6539 = vpow2.f32 %v4658_v46 }
 0x512   :  { %6541 = vtanh.f32 %v6329_v42  ;;  %v4655_v42 = vmul.f32 -1.442695, %v6350_v54  ;;  %v8732_v54 = vld [vmem:[#allocation23_spill] sm:$0xff] }
 0x519   :  { %v6536_v19 = vpop.eup %6535 }
 0x51a   :  { %v6538_v38 = vpop.eup %6537  ;;  %v2234_v33 = vadd.f32 1.0, %v6536_v19 }
 0x51b   :  { %v2240_v56 = vadd.f32 1.0, %v6538_v38  ;;  %v6540_v44 = vpop.eup %6539 }
 0x51c   :  { %6543 = vrcp.f32 %v2234_v33  ;;  %v6542_v5 = vpop.eup %6541  ;;  %v2247_v43 = vadd.f32 1.0, %v6540_v44  ;;  %v8725_v44 = vld [vmem:[#allocation16_spill] sm:$0xff] }
 0x51d   :  { %6545 = vrcp.f32 %v2240_v56 }
 0x51e   :  { %6547 = vrcp.f32 %v2247_v43  ;;  %v8730_v43 = vld [vmem:[#allocation21_spill] sm:$0xff] }
 0x526   :  { %v6544_v11 = vpop.eup %6543 }
 0x527   :  { %v6546_v39 = vpop.eup %6545  ;;  %v2251_v50 = vmul.f32 %v6544_v11, %v6542_v5  ;;  %v8726_v5 = vld [vmem:[#allocation17_spill] sm:$0xff]  ;;  %v8727_v11 = vld [vmem:[#allocation18_spill] sm:$0xff] }
 0x528   :  { %v2250_v2 = vmul.f32 %v6546_v39, %v7568_v28  ;;  %v6548_v47 = vpop.eup %6547  ;;  %v8728_v39 = vld [vmem:[#allocation19_spill] sm:$0xff] }
 0x52a   :  { %v7692_v59 = vadd.f32 %v2251_v50, %v2250_v2  ;;  %v8729_v50 = vld [vmem:[#allocation20_spill] sm:$0xff]  ;;  %v8731_v2 = vld [vmem:[#allocation22_spill] sm:$0xff] }
 0x52c   :  { %6549 = vtanh.f32 %v7692_v59 }
 0x52d   :  { %6551 = vpow2.f32 %v4655_v42  ;;  %v8735_v42 = vld [vmem:[#allocation26_spill] sm:$0xff] }
 0x52e   :  { %6553 = vtanh.f32 %v7685_v8 }
 0x536   :  { %v6550_v46 = vpop.eup %6549 }
 0x537   :  { %v7696_v19 = vmul.f32 %v6550_v46, %v6548_v47  ;;  %v6552_v28 = vpop.eup %6551  ;;  %v8733_v47 = vld [vmem:[#allocation24_spill] sm:$0xff]  ;;  %v8734_v46 = vld [vmem:[#allocation25_spill] sm:$0xff] }
 0x538   :  { %v2073_v10 = vadd.f32 1.0, %v6552_v28  ;;  %v6554_v38 = vpop.eup %6553  ;;  %v8736_v28 = vld [vmem:[#allocation27_spill] sm:$0xff] }
 0x539   :  { %2320 = vmatmul.mubr.f32.vlgmr.msra.gmra.mrb[22].mxu0 %v7696_v19  ;;  %2391 = vmatmul.mubr.f32.vlgmr.msra.gmra.mrb[22].mxu1 %v7696_v19 }
 0x53a   :  { %5454 = vmatpush1.bf16.msra.mxu0 %v8604_v40  ;;  %5486 = vmatpush1.bf16.msra.mxu1 %v8605_v36  ;;  %6555 = vrcp.f32 %v2073_v10  ;;  %v8737_v10 = vld [vmem:[#allocation28_spill] sm:$0xff] }
 0x53b   :  { %5456 = vmatprep.subr.bf16.mxu0 %v8606_v13  ;;  %5488 = vmatprep.subr.bf16.mxu1 %v8607_v41 }
 0x53c   :  { %2461 = vmatprep.mubr.f32.mxu0 %v8553_v3  ;;  %2532 = vmatprep.mubr.f32.mxu1 %v8553_v3 }
 0x53e   :  { %5458 = vmatpush1.bf16.msra.mxu0 %v8608_v57  ;;  %5490 = vmatpush1.bf16.msra.mxu1 %v8609_v14 }
 0x53f   :  { %5460 = vmatprep.subr.bf16.mxu0 %v8665_v48  ;;  %5492 = vmatprep.subr.bf16.mxu1 %v8666_v0 }
 0x542   :  { %5462 = vmatpush1.bf16.msra.mxu0 %v8667_v61  ;;  %5494 = vmatpush1.bf16.msra.mxu1 %v8613_v1 }
 0x543   :  { %5464 = vmatprep.subr.bf16.mxu0 %v8614_v32  ;;  %5496 = vmatprep.subr.bf16.mxu1 %v8615_v27 }
 0x544   :  { %v6556_v33 = vpop.eup %6555 }
 0x545   :  { %v2080_v56 = vmul.f32 %v6556_v33, %v6554_v38  ;;  %v8738_v38 = vld [vmem:[#allocation29_spill] sm:$0xff]  ;;  %v8739_v33 = vld [vmem:[#allocation30_spill] sm:$0xff] }
 0x546   :  { %5466 = vmatpush1.bf16.msra.mxu0 %v8616_v20  ;;  %5498 = vmatpush1.bf16.msra.mxu1 %v8617_v7 }
 0x547   :  { %5468 = vmatprep.subr.bf16.mxu0 %v8618_v16  ;;  %5500 = vmatprep.subr.bf16.mxu1 %v8619_v51 }
 0x54a   :  { %5470 = vmatpush1.bf16.msra.mxu0 %v8620_v4  ;;  %5502 = vmatpush1.bf16.msra.mxu1 %v8621_v6 }
 0x54b   :  { %5472 = vmatprep.subr.bf16.mxu0 %v8668_v52  ;;  %5504 = vmatprep.subr.bf16.mxu1 %v7305_v23 }
 0x54e   :  { %5474 = vmatpush1.bf16.msra.mxu0 %v7309_v31  ;;  %5506 = vmatpush1.bf16.msra.mxu1 %v7311_v26 }
 0x54f   :  { %5476 = vmatprep.subr.bf16.mxu0 %v7315_v63  ;;  %5508 = vmatprep.subr.bf16.mxu1 %v7317_v37 }
 0x552   :  { %5478 = vmatpush1.bf16.msra.mxu0 %v7321_v9  ;;  %5510 = vmatpush1.bf16.msra.mxu1 %v7323_v55 }
 0x553   :  { %5480 = vmatprep.subr.bf16.mxu0 %v7327_v30  ;;  %5512 = vmatprep.subr.bf16.mxu1 %v7329_v53 }
 0x556   :  { %5482 = vmatpush1.bf16.msra.mxu0 %v7333_v62  ;;  %5514 = vmatpush1.bf16.msra.mxu1 %v7335_v49 }
 0x557   :  { %5516 = vmatprep.subr.bf16.mxu0 %v6958_v17  ;;  %5548 = vmatprep.subr.bf16.mxu1 %v6960_v21 }
 0x559   :  { %2462 = vmatmul.mubr.f32.vlgmr.msra.gmra.mrb[22].mxu0 %v2080_v56  ;;  %2533 = vmatmul.mubr.f32.vlgmr.msra.gmra.mrb[22].mxu1 %v2080_v56  ;;  %v8740_v56 = vld [vmem:[#allocation31_spill] sm:$0xff] }
 0x55a   :  { %5518 = vmatpush1.bf16.msra.mxu0 %v6962_v22  ;;  %5550 = vmatpush1.bf16.msra.mxu1 %v6965_v25 }
 0x55b   :  { %5520 = vmatprep.subr.bf16.mxu0 %v6969_v29  ;;  %5552 = vmatprep.subr.bf16.mxu1 %v6976_v34 }
 0x55c   :  { %2635 = vmatprep.mubr.f32.mxu0 %v8553_v3  ;;  %2706 = vmatprep.mubr.f32.mxu1 %v8553_v3 }
 0x55e   :  { %5522 = vmatpush1.bf16.msra.mxu0 %v6978_v35  ;;  %5554 = vmatpush1.bf16.msra.mxu1 %v8725_v44 }
 0x55f   :  { %5524 = vmatprep.subr.bf16.mxu0 %v8726_v5  ;;  %5556 = vmatprep.subr.bf16.mxu1 %v8727_v11 }
 0x562   :  { %5526 = vmatpush1.bf16.msra.mxu0 %v8728_v39  ;;  %5558 = vmatpush1.bf16.msra.mxu1 %v8729_v50 }
 0x563   :  { %5528 = vmatprep.subr.bf16.mxu0 %v8730_v43  ;;  %5560 = vmatprep.subr.bf16.mxu1 %v8731_v2  ;;  %v8741_v43 = vld [vmem:[#allocation32_spill] sm:$0xff]  ;;  %v8742_v2 = vld [vmem:[#allocation33_spill] sm:$0xff] }
 0x566   :  { %5530 = vmatpush1.bf16.msra.mxu0 %v8732_v54  ;;  %5562 = vmatpush1.bf16.msra.mxu1 %v8733_v47  ;;  %v8743_v54 = vld [vmem:[#allocation34_spill] sm:$0xff]  ;;  %v8744_v47 = vld [vmem:[#allocation35_spill] sm:$0xff] }
 0x567   :  { %5532 = vmatprep.subr.bf16.mxu0 %v8734_v46  ;;  %5564 = vmatprep.subr.bf16.mxu1 %v8735_v42  ;;  %v8745_v46 = vld [vmem:[#allocation36_spill] sm:$0xff]  ;;  %v8746_v42 = vld [vmem:[#allocation37_spill] sm:$0xff] }
 0x56a   :  { %5534 = vmatpush1.bf16.msra.mxu0 %v8736_v28  ;;  %5566 = vmatpush1.bf16.msra.mxu1 %v8737_v10  ;;  %v8747_v28 = vld [vmem:[#allocation38_spill] sm:$0xff]  ;;  %v8748_v10 = vld [vmem:[#allocation39_spill] sm:$0xff] }
 0x56b   :  { %5536 = vmatprep.subr.bf16.mxu0 %v8738_v38  ;;  %5568 = vmatprep.subr.bf16.mxu1 %v8739_v33  ;;  %v8749_v38 = vld [vmem:[#allocation40_spill] sm:$0xff]  ;;  %v8750_v33 = vld [vmem:[#allocation41_spill] sm:$0xff] }
 0x56e   :  { %5538 = vmatpush1.bf16.msra.mxu0 %v8740_v56  ;;  %5570 = vmatpush1.bf16.msra.mxu1 %v8741_v43  ;;  %v8751_v56 = vld [vmem:[#allocation42_spill] sm:$0xff]  ;;  %v8784_v43 = vld [vmem:[#allocation75_spill] sm:$0xff] }
 0x56f   :  { %5540 = vmatprep.subr.bf16.mxu0 %v8742_v2  ;;  %5572 = vmatprep.subr.bf16.mxu1 %v8743_v54  ;;  %v8752_v54 = vld [vmem:[#allocation43_spill] sm:$0xff]  ;;  %v8766_v2 = vld [vmem:[#allocation57_spill] sm:$0xff] }
 0x572   :  { %5542 = vmatpush1.bf16.msra.mxu0 %v8744_v47  ;;  %5574 = vmatpush1.bf16.msra.mxu1 %v8745_v46  ;;  %v8753_v47 = vld [vmem:[#allocation44_spill] sm:$0xff]  ;;  %v8754_v46 = vld [vmem:[#allocation45_spill] sm:$0xff] }
 0x573   :  { %5544 = vmatprep.subr.bf16.mxu0 %v8746_v42  ;;  %5576 = vmatprep.subr.bf16.mxu1 %v8747_v28  ;;  %v8755_v42 = vld [vmem:[#allocation46_spill] sm:$0xff]  ;;  %v8765_v28 = vld [vmem:[#allocation56_spill] sm:$0xff] }
 0x576   :  { %5546 = vmatpush1.bf16.msra.mxu0 %v8748_v10  ;;  %5578 = vmatpush1.bf16.msra.mxu1 %v8749_v38  ;;  %v8756_v38 = vld [vmem:[#allocation47_spill] sm:$0xff]  ;;  %v8759_v10 = vld [vmem:[#allocation50_spill] sm:$0xff] }
 0x577   :  { %5580 = vmatprep.subr.bf16.mxu0 %v8750_v33  ;;  %5612 = vmatprep.subr.bf16.mxu1 %v8751_v56  ;;  %v8757_v33 = vld [vmem:[#allocation48_spill] sm:$0xff]  ;;  %v8758_v56 = vld [vmem:[#allocation49_spill] sm:$0xff] }
 0x579   :  { %2636 = vmatmul.mubr.f32.vlgmr.msra.gmra.mrb[8].mxu0 %v7696_v19  ;;  %2707 = vmatmul.mubr.f32.vlgmr.msra.gmra.mrb[8].mxu1 %v7696_v19  ;;  %v8760_v19 = vld [vmem:[#allocation51_spill] sm:$0xff] }
 0x57a   :  { %5582 = vmatpush1.bf16.msra.mxu0 %v8752_v54  ;;  %5614 = vmatpush1.bf16.msra.mxu1 %v8753_v47  ;;  %v8761_v54 = vld [vmem:[#allocation52_spill] sm:$0xff]  ;;  %v8762_v47 = vld [vmem:[#allocation53_spill] sm:$0xff] }
 0x57b   :  { %5584 = vmatprep.subr.bf16.mxu0 %v8754_v46  ;;  %5616 = vmatprep.subr.bf16.mxu1 %v8755_v42  ;;  %v8763_v46 = vld [vmem:[#allocation54_spill] sm:$0xff]  ;;  %v8764_v42 = vld [vmem:[#allocation55_spill] sm:$0xff] }
 0x57c   :  { %2805 = vmatprep.mubr.f32.mxu0 %v8553_v3  ;;  %2876 = vmatprep.mubr.f32.mxu1 %v8553_v3 }
 0x57e   :  { %5586 = vmatpush1.bf16.msra.mxu0 %v8756_v38  ;;  %5618 = vmatpush1.bf16.msra.mxu1 %v8757_v33  ;;  %v8767_v38 = vld [vmem:[#allocation58_spill] sm:$0xff]  ;;  %v8768_v33 = vld [vmem:[#allocation59_spill] sm:$0xff] }
 0x57f   :  { %5588 = vmatprep.subr.bf16.mxu0 %v8758_v56  ;;  %5620 = vmatprep.subr.bf16.mxu1 %v8759_v10  ;;  %v8769_v56 = vld [vmem:[#allocation60_spill] sm:$0xff]  ;;  %v8770_v10 = vld [vmem:[#allocation61_spill] sm:$0xff] }
 0x582   :  { %5590 = vmatpush1.bf16.msra.mxu0 %v8760_v19  ;;  %5622 = vmatpush1.bf16.msra.mxu1 %v8761_v54  ;;  %v8771_v19 = vld [vmem:[#allocation62_spill] sm:$0xff]  ;;  %v8772_v54 = vld [vmem:[#allocation63_spill] sm:$0xff] }
 0x583   :  { %5592 = vmatprep.subr.bf16.mxu0 %v8762_v47  ;;  %5624 = vmatprep.subr.bf16.mxu1 %v8763_v46  ;;  %v8773_v47 = vld [vmem:[#allocation64_spill] sm:$0xff]  ;;  %v8774_v46 = vld [vmem:[#allocation65_spill] sm:$0xff] }
 0x586   :  { %5594 = vmatpush1.bf16.msra.mxu0 %v8764_v42  ;;  %5626 = vmatpush1.bf16.msra.mxu1 %v8765_v28  ;;  %v8775_v42 = vld [vmem:[#allocation66_spill] sm:$0xff]  ;;  %v8776_v28 = vld [vmem:[#allocation67_spill] sm:$0xff] }
 0x587   :  { %5596 = vmatprep.subr.bf16.mxu0 %v8766_v2  ;;  %5628 = vmatprep.subr.bf16.mxu1 %v8767_v38  ;;  %v8777_v2 = vld [vmem:[#allocation68_spill] sm:$0xff]  ;;  %v8778_v38 = vld [vmem:[#allocation69_spill] sm:$0xff] }
 0x58a   :  { %5598 = vmatpush1.bf16.msra.mxu0 %v8768_v33  ;;  %5630 = vmatpush1.bf16.msra.mxu1 %v8769_v56  ;;  %v8779_v33 = vld [vmem:[#allocation70_spill] sm:$0xff]  ;;  %v8780_v56 = vld [vmem:[#allocation71_spill] sm:$0xff] }
 0x58b   :  { %5600 = vmatprep.subr.bf16.mxu0 %v8770_v10  ;;  %5632 = vmatprep.subr.bf16.mxu1 %v8771_v19  ;;  %v8781_v10 = vld [vmem:[#allocation72_spill] sm:$0xff]  ;;  %v8782_v19 = vld [vmem:[#allocation73_spill] sm:$0xff] }
 0x58e   :  { %5602 = vmatpush1.bf16.msra.mxu0 %v8772_v54  ;;  %5634 = vmatpush1.bf16.msra.mxu1 %v8773_v47  ;;  %v8783_v54 = vld [vmem:[#allocation74_spill] sm:$0xff] }
 0x58f   :  { %5604 = vmatprep.subr.bf16.mxu0 %v8774_v46  ;;  %5636 = vmatprep.subr.bf16.mxu1 %v8775_v42 }
 0x592   :  { %5606 = vmatpush1.bf16.msra.mxu0 %v8776_v28  ;;  %5638 = vmatpush1.bf16.msra.mxu1 %v8777_v2 }
 0x593   :  { %5608 = vmatprep.subr.bf16.mxu0 %v8778_v38  ;;  %5640 = vmatprep.subr.bf16.mxu1 %v8779_v33 }
 0x596   :  { %5610 = vmatpush1.bf16.msra.mxu0 %v8780_v56  ;;  %5642 = vmatpush1.bf16.msra.mxu1 %v8781_v10 }
 0x597   :  { %5644 = vmatprep.subr.bf16.mxu0 %v8782_v19  ;;  %5676 = vmatprep.subr.bf16.mxu1 %v8783_v54 }
 0x62c   :  { %v2463_v47 = vpop.f32.mrb[22].mxu0  ;;  %v2534_v46 = vpop.f32.mrb[22].mxu1 }
 0x62d   :  { %v6351_v42 = vadd.f32 %v2463_v47, %v8784_v43  ;;  %v2465_v50 = vpop.f32.mrb[23].mxu0  ;;  %v2536_v28 = vpop.f32.mrb[23].mxu1  ;;  %v6353_v56 = vadd.f32 %v2534_v46, %v8724_v45 }
 0x62e   :  { %v6352_v2 = vadd.f32 %v2465_v50, %v8723_v58 }
 0x62f   :  { %v4659_v39 = vmul.f32 -1.442695, %v6351_v42 }
 0x630   :  { %v4660_v38 = vmul.f32 -1.442695, %v6352_v2 }
 0x631   :  { %6557 = vpow2.f32 %v4659_v39 }
 0x632   :  { %6559 = vpow2.f32 %v4660_v38 }
 0x633   :  { %6561 = vtanh.f32 %v6353_v56 }
 0x63b   :  { %v6558_v33 = vpop.eup %6557 }
 0x63c   :  { %v6560_v10 = vpop.eup %6559  ;;  %v2546_v11 = vadd.f32 1.0, %v6558_v33 }
 0x63d   :  { %v2552_v19 = vadd.f32 1.0, %v6560_v10  ;;  %v6562_v54 = vpop.eup %6561 }
 0x63e   :  { %6563 = vrcp.f32 %v2546_v11 }
 0x63f   :  { %6565 = vrcp.f32 %v2552_v19 }
 0x648   :  { %v6564_v5 = vpop.eup %6563 }
 0x649   :  { %v6566_v47 = vpop.eup %6565  ;;  %v2563_v43 = vmul.f32 %v6564_v5, %v6562_v54 }
 0x64a   :  { %v2562_v44 = vmul.f32 %v6566_v47, %v7685_v8 }
 0x64c   :  { %v7809_v50 = vadd.f32 %v2563_v43, %v2562_v44  ;;  %v2637_v2 = vpop.f32.mrb[8].mxu0  ;;  %v2708_v39 = vpop.f32.mrb[8].mxu1 }
 0x64d   :  { %v6315_v42 = vadd.f32 %v2637_v2, %v8663_v24  ;;  %v2639_v46 = vpop.f32.mrb[9].mxu0  ;;  %v2710_v38 = vpop.f32.mrb[9].mxu1  ;;  %v6331_v5 = vadd.f32 %v2708_v39, %v8601_v60  ;;  %v6354_v39 = vadd.f32 %v2536_v28, %v7445_v18 }
 0x64e   :  { %v6316_v33 = vadd.f32 %v2639_v46, %v8664_v15  ;;  %v6332_v11 = vadd.f32 %v2710_v38, %v8600_v12 }
 0x64f   :  { %v4662_v56 = vmul.f32 -1.442695, %v6315_v42 }
 0x650   :  { %v4663_v10 = vmul.f32 -1.442695, %v6316_v33  ;;  %v4664_v19 = vmul.f32 -1.442695, %v6332_v11 }
 0x651   :  { %6567 = vpow2.f32 %v4662_v56 }
 0x652   :  { %6569 = vpow2.f32 %v4663_v10 }
 0x653   :  { %6571 = vpow2.f32 %v4664_v19 }
 0x654   :  { %6573 = vtanh.f32 %v6331_v5  ;;  %v4661_v5 = vmul.f32 -1.442695, %v6354_v39  ;;  %v8792_v39 = vld [vmem:[#allocation23_spill] sm:$0xff] }
 0x65b   :  { %v6568_v8 = vpop.eup %6567 }
 0x65c   :  { %v6570_v44 = vpop.eup %6569  ;;  %v2720_v43 = vadd.f32 1.0, %v6568_v8 }
 0x65d   :  { %v2726_v54 = vadd.f32 1.0, %v6570_v44  ;;  %v6572_v47 = vpop.eup %6571 }
 0x65e   :  { %6575 = vrcp.f32 %v2720_v43  ;;  %v6574_v2 = vpop.eup %6573  ;;  %v2733_v56 = vadd.f32 1.0, %v6572_v47  ;;  %v8785_v47 = vld [vmem:[#allocation16_spill] sm:$0xff] }
 0x65f   :  { %6577 = vrcp.f32 %v2726_v54 }
 0x660   :  { %6579 = vrcp.f32 %v2733_v56  ;;  %v8790_v56 = vld [vmem:[#allocation21_spill] sm:$0xff] }
 0x668   :  { %v6576_v46 = vpop.eup %6575 }
 0x669   :  { %v6578_v42 = vpop.eup %6577  ;;  %v2737_v33 = vmul.f32 %v6576_v46, %v6574_v2  ;;  %v8786_v2 = vld [vmem:[#allocation17_spill] sm:$0xff]  ;;  %v8787_v46 = vld [vmem:[#allocation18_spill] sm:$0xff] }
 0x66a   :  { %v2736_v10 = vmul.f32 %v6578_v42, %v7692_v59  ;;  %v6580_v11 = vpop.eup %6579  ;;  %v8788_v42 = vld [vmem:[#allocation19_spill] sm:$0xff] }
 0x66c   :  { %v7816_v38 = vadd.f32 %v2737_v33, %v2736_v10  ;;  %v8789_v33 = vld [vmem:[#allocation20_spill] sm:$0xff]  ;;  %v8791_v10 = vld [vmem:[#allocation22_spill] sm:$0xff] }
 0x66e   :  { %6581 = vtanh.f32 %v7816_v38 }
 0x66f   :  { %6583 = vpow2.f32 %v4661_v5  ;;  %v8795_v5 = vld [vmem:[#allocation26_spill] sm:$0xff] }
 0x670   :  { %6585 = vtanh.f32 %v7809_v50 }
 0x678   :  { %v6582_v19 = vpop.eup %6581 }
 0x679   :  { %v7820_v8 = vmul.f32 %v6582_v19, %v6580_v11  ;;  %v6584_v59 = vpop.eup %6583  ;;  %v8793_v11 = vld [vmem:[#allocation24_spill] sm:$0xff]  ;;  %v8794_v19 = vld [vmem:[#allocation25_spill] sm:$0xff] }
 0x67a   :  { %v2559_v28 = vadd.f32 1.0, %v6584_v59  ;;  %v6586_v44 = vpop.eup %6585  ;;  %v8796_v59 = vld [vmem:[#allocation27_spill] sm:$0xff] }
 0x67b   :  { %2806 = vmatmul.mubr.f32.vlgmr.msra.gmra.mrb[24].mxu0 %v7820_v8  ;;  %2877 = vmatmul.mubr.f32.vlgmr.msra.gmra.mrb[24].mxu1 %v7820_v8 }
 0x67c   :  { %5646 = vmatpush1.bf16.msra.mxu0 %v8604_v40  ;;  %5678 = vmatpush1.bf16.msra.mxu1 %v8605_v36  ;;  %6587 = vrcp.f32 %v2559_v28  ;;  %v8797_v28 = vld [vmem:[#allocation28_spill] sm:$0xff] }
 0x67d   :  { %5648 = vmatprep.subr.bf16.mxu0 %v8606_v13  ;;  %5680 = vmatprep.subr.bf16.mxu1 %v8607_v41 }
 0x67e   :  { %2947 = vmatprep.mubr.f32.mxu0 %v8553_v3  ;;  %3018 = vmatprep.mubr.f32.mxu1 %v8553_v3 }
 0x680   :  { %5650 = vmatpush1.bf16.msra.mxu0 %v8608_v57  ;;  %5682 = vmatpush1.bf16.msra.mxu1 %v8609_v14 }
 0x681   :  { %5652 = vmatprep.subr.bf16.mxu0 %v8665_v48  ;;  %5684 = vmatprep.subr.bf16.mxu1 %v8666_v0 }
 0x684   :  { %5654 = vmatpush1.bf16.msra.mxu0 %v8667_v61  ;;  %5686 = vmatpush1.bf16.msra.mxu1 %v8613_v1 }
 0x685   :  { %5656 = vmatprep.subr.bf16.mxu0 %v8614_v32  ;;  %5688 = vmatprep.subr.bf16.mxu1 %v8615_v27 }
 0x686   :  { %v6588_v43 = vpop.eup %6587 }
 0x687   :  { %v2566_v54 = vmul.f32 %v6588_v43, %v6586_v44  ;;  %v8798_v44 = vld [vmem:[#allocation29_spill] sm:$0xff]  ;;  %v8799_v43 = vld [vmem:[#allocation30_spill] sm:$0xff] }
 0x688   :  { %5658 = vmatpush1.bf16.msra.mxu0 %v8616_v20  ;;  %5690 = vmatpush1.bf16.msra.mxu1 %v8617_v7 }
 0x689   :  { %5660 = vmatprep.subr.bf16.mxu0 %v8618_v16  ;;  %5692 = vmatprep.subr.bf16.mxu1 %v8619_v51 }
 0x68c   :  { %5662 = vmatpush1.bf16.msra.mxu0 %v8620_v4  ;;  %5694 = vmatpush1.bf16.msra.mxu1 %v8621_v6 }
 0x68d   :  { %5664 = vmatprep.subr.bf16.mxu0 %v8668_v52  ;;  %5696 = vmatprep.subr.bf16.mxu1 %v7305_v23 }
 0x690   :  { %5666 = vmatpush1.bf16.msra.mxu0 %v7309_v31  ;;  %5698 = vmatpush1.bf16.msra.mxu1 %v7311_v26 }
 0x691   :  { %5668 = vmatprep.subr.bf16.mxu0 %v7315_v63  ;;  %5700 = vmatprep.subr.bf16.mxu1 %v7317_v37 }
 0x694   :  { %5670 = vmatpush1.bf16.msra.mxu0 %v7321_v9  ;;  %5702 = vmatpush1.bf16.msra.mxu1 %v7323_v55 }
 0x695   :  { %5672 = vmatprep.subr.bf16.mxu0 %v7327_v30  ;;  %5704 = vmatprep.subr.bf16.mxu1 %v7329_v53 }
 0x698   :  { %5674 = vmatpush1.bf16.msra.mxu0 %v7333_v62  ;;  %5706 = vmatpush1.bf16.msra.mxu1 %v7335_v49 }
 0x699   :  { %5708 = vmatprep.subr.bf16.mxu0 %v6958_v17  ;;  %5740 = vmatprep.subr.bf16.mxu1 %v6960_v21 }
 0x69b   :  { %2948 = vmatmul.mubr.f32.vlgmr.msra.gmra.mrb[24].mxu0 %v2566_v54  ;;  %3019 = vmatmul.mubr.f32.vlgmr.msra.gmra.mrb[24].mxu1 %v2566_v54  ;;  %v8800_v54 = vld [vmem:[#allocation31_spill] sm:$0xff] }
 0x69c   :  { %5710 = vmatpush1.bf16.msra.mxu0 %v6962_v22  ;;  %5742 = vmatpush1.bf16.msra.mxu1 %v6965_v25 }
 0x69d   :  { %5712 = vmatprep.subr.bf16.mxu0 %v6969_v29  ;;  %5744 = vmatprep.subr.bf16.mxu1 %v6976_v34 }
 0x69e   :  { %3121 = vmatprep.mubr.f32.mxu0 %v8553_v3  ;;  %3192 = vmatprep.mubr.f32.mxu1 %v8553_v3 }
 0x6a0   :  { %5714 = vmatpush1.bf16.msra.mxu0 %v6978_v35  ;;  %5746 = vmatpush1.bf16.msra.mxu1 %v8785_v47 }
 0x6a1   :  { %5716 = vmatprep.subr.bf16.mxu0 %v8786_v2  ;;  %5748 = vmatprep.subr.bf16.mxu1 %v8787_v46 }
 0x6a4   :  { %5718 = vmatpush1.bf16.msra.mxu0 %v8788_v42  ;;  %5750 = vmatpush1.bf16.msra.mxu1 %v8789_v33 }
 0x6a5   :  { %5720 = vmatprep.subr.bf16.mxu0 %v8790_v56  ;;  %5752 = vmatprep.subr.bf16.mxu1 %v8791_v10  ;;  %v8801_v56 = vld [vmem:[#allocation32_spill] sm:$0xff]  ;;  %v8802_v10 = vld [vmem:[#allocation33_spill] sm:$0xff] }
 0x6a8   :  { %5722 = vmatpush1.bf16.msra.mxu0 %v8792_v39  ;;  %5754 = vmatpush1.bf16.msra.mxu1 %v8793_v11  ;;  %v8803_v39 = vld [vmem:[#allocation34_spill] sm:$0xff]  ;;  %v8804_v11 = vld [vmem:[#allocation35_spill] sm:$0xff] }
 0x6a9   :  { %5724 = vmatprep.subr.bf16.mxu0 %v8794_v19  ;;  %5756 = vmatprep.subr.bf16.mxu1 %v8795_v5  ;;  %v8805_v19 = vld [vmem:[#allocation36_spill] sm:$0xff]  ;;  %v8806_v5 = vld [vmem:[#allocation37_spill] sm:$0xff] }
 0x6ac   :  { %5726 = vmatpush1.bf16.msra.mxu0 %v8796_v59  ;;  %5758 = vmatpush1.bf16.msra.mxu1 %v8797_v28  ;;  %v8807_v59 = vld [vmem:[#allocation38_spill] sm:$0xff]  ;;  %v8808_v28 = vld [vmem:[#allocation39_spill] sm:$0xff] }
 0x6ad   :  { %5728 = vmatprep.subr.bf16.mxu0 %v8798_v44  ;;  %5760 = vmatprep.subr.bf16.mxu1 %v8799_v43  ;;  %v8809_v44 = vld [vmem:[#allocation40_spill] sm:$0xff]  ;;  %v8810_v43 = vld [vmem:[#allocation41_spill] sm:$0xff] }
 0x6b0   :  { %5730 = vmatpush1.bf16.msra.mxu0 %v8800_v54  ;;  %5762 = vmatpush1.bf16.msra.mxu1 %v8801_v56  ;;  %v8811_v54 = vld [vmem:[#allocation42_spill] sm:$0xff]  ;;  %v8844_v56 = vld [vmem:[#allocation75_spill] sm:$0xff] }
 0x6b1   :  { %5732 = vmatprep.subr.bf16.mxu0 %v8802_v10  ;;  %5764 = vmatprep.subr.bf16.mxu1 %v8803_v39  ;;  %v8812_v39 = vld [vmem:[#allocation43_spill] sm:$0xff]  ;;  %v8826_v10 = vld [vmem:[#allocation57_spill] sm:$0xff] }
 0x6b4   :  { %5734 = vmatpush1.bf16.msra.mxu0 %v8804_v11  ;;  %5766 = vmatpush1.bf16.msra.mxu1 %v8805_v19  ;;  %v8813_v11 = vld [vmem:[#allocation44_spill] sm:$0xff]  ;;  %v8814_v19 = vld [vmem:[#allocation45_spill] sm:$0xff] }
 0x6b5   :  { %5736 = vmatprep.subr.bf16.mxu0 %v8806_v5  ;;  %5768 = vmatprep.subr.bf16.mxu1 %v8807_v59  ;;  %v8815_v5 = vld [vmem:[#allocation46_spill] sm:$0xff]  ;;  %v8825_v59 = vld [vmem:[#allocation56_spill] sm:$0xff] }
 0x6b8   :  { %5738 = vmatpush1.bf16.msra.mxu0 %v8808_v28  ;;  %5770 = vmatpush1.bf16.msra.mxu1 %v8809_v44  ;;  %v8816_v44 = vld [vmem:[#allocation47_spill] sm:$0xff]  ;;  %v8819_v28 = vld [vmem:[#allocation50_spill] sm:$0xff] }
 0x6b9   :  { %5772 = vmatprep.subr.bf16.mxu0 %v8810_v43  ;;  %5804 = vmatprep.subr.bf16.mxu1 %v8811_v54  ;;  %v8817_v43 = vld [vmem:[#allocation48_spill] sm:$0xff]  ;;  %v8818_v54 = vld [vmem:[#allocation49_spill] sm:$0xff] }
 0x6bb   :  { %3122 = vmatmul.mubr.f32.vlgmr.msra.gmra.mrb[10].mxu0 %v7820_v8  ;;  %3193 = vmatmul.mubr.f32.vlgmr.msra.gmra.mrb[10].mxu1 %v7820_v8  ;;  %v8820_v8 = vld [vmem:[#allocation51_spill] sm:$0xff] }
 0x6bc   :  { %5774 = vmatpush1.bf16.msra.mxu0 %v8812_v39  ;;  %5806 = vmatpush1.bf16.msra.mxu1 %v8813_v11  ;;  %v8821_v39 = vld [vmem:[#allocation52_spill] sm:$0xff]  ;;  %v8822_v11 = vld [vmem:[#allocation53_spill] sm:$0xff] }
 0x6bd   :  { %5776 = vmatprep.subr.bf16.mxu0 %v8814_v19  ;;  %5808 = vmatprep.subr.bf16.mxu1 %v8815_v5  ;;  %v8823_v19 = vld [vmem:[#allocation54_spill] sm:$0xff]  ;;  %v8824_v5 = vld [vmem:[#allocation55_spill] sm:$0xff] }
 0x6be   :  { %3291 = vmatprep.mubr.f32.mxu0 %v8553_v3  ;;  %3362 = vmatprep.mubr.f32.mxu1 %v8553_v3 }
 0x6c0   :  { %5778 = vmatpush1.bf16.msra.mxu0 %v8816_v44  ;;  %5810 = vmatpush1.bf16.msra.mxu1 %v8817_v43  ;;  %v8827_v44 = vld [vmem:[#allocation58_spill] sm:$0xff]  ;;  %v8828_v43 = vld [vmem:[#allocation59_spill] sm:$0xff] }
 0x6c1   :  { %5780 = vmatprep.subr.bf16.mxu0 %v8818_v54  ;;  %5812 = vmatprep.subr.bf16.mxu1 %v8819_v28  ;;  %v8829_v54 = vld [vmem:[#allocation60_spill] sm:$0xff]  ;;  %v8830_v28 = vld [vmem:[#allocation61_spill] sm:$0xff] }
 0x6c4   :  { %5782 = vmatpush1.bf16.msra.mxu0 %v8820_v8  ;;  %5814 = vmatpush1.bf16.msra.mxu1 %v8821_v39  ;;  %v8831_v8 = vld [vmem:[#allocation62_spill] sm:$0xff]  ;;  %v8832_v39 = vld [vmem:[#allocation63_spill] sm:$0xff] }
 0x6c5   :  { %5784 = vmatprep.subr.bf16.mxu0 %v8822_v11  ;;  %5816 = vmatprep.subr.bf16.mxu1 %v8823_v19  ;;  %v8833_v11 = vld [vmem:[#allocation64_spill] sm:$0xff]  ;;  %v8834_v19 = vld [vmem:[#allocation65_spill] sm:$0xff] }
 0x6c8   :  { %5786 = vmatpush1.bf16.msra.mxu0 %v8824_v5  ;;  %5818 = vmatpush1.bf16.msra.mxu1 %v8825_v59  ;;  %v8835_v5 = vld [vmem:[#allocation66_spill] sm:$0xff]  ;;  %v8836_v59 = vld [vmem:[#allocation67_spill] sm:$0xff] }
 0x6c9   :  { %5788 = vmatprep.subr.bf16.mxu0 %v8826_v10  ;;  %5820 = vmatprep.subr.bf16.mxu1 %v8827_v44  ;;  %v8837_v10 = vld [vmem:[#allocation68_spill] sm:$0xff]  ;;  %v8838_v44 = vld [vmem:[#allocation69_spill] sm:$0xff] }
 0x6cc   :  { %5790 = vmatpush1.bf16.msra.mxu0 %v8828_v43  ;;  %5822 = vmatpush1.bf16.msra.mxu1 %v8829_v54  ;;  %v8839_v43 = vld [vmem:[#allocation70_spill] sm:$0xff]  ;;  %v8840_v54 = vld [vmem:[#allocation71_spill] sm:$0xff] }
 0x6cd   :  { %5792 = vmatprep.subr.bf16.mxu0 %v8830_v28  ;;  %5824 = vmatprep.subr.bf16.mxu1 %v8831_v8  ;;  %v8841_v28 = vld [vmem:[#allocation72_spill] sm:$0xff]  ;;  %v8842_v8 = vld [vmem:[#allocation73_spill] sm:$0xff] }
 0x6d0   :  { %5794 = vmatpush1.bf16.msra.mxu0 %v8832_v39  ;;  %5826 = vmatpush1.bf16.msra.mxu1 %v8833_v11  ;;  %v8843_v39 = vld [vmem:[#allocation74_spill] sm:$0xff] }
 0x6d1   :  { %5796 = vmatprep.subr.bf16.mxu0 %v8834_v19  ;;  %5828 = vmatprep.subr.bf16.mxu1 %v8835_v5 }
 0x6d4   :  { %5798 = vmatpush1.bf16.msra.mxu0 %v8836_v59  ;;  %5830 = vmatpush1.bf16.msra.mxu1 %v8837_v10 }
 0x6d5   :  { %5800 = vmatprep.subr.bf16.mxu0 %v8838_v44  ;;  %5832 = vmatprep.subr.bf16.mxu1 %v8839_v43 }
 0x6d8   :  { %5802 = vmatpush1.bf16.msra.mxu0 %v8840_v54  ;;  %5834 = vmatpush1.bf16.msra.mxu1 %v8841_v28 }
 0x6d9   :  { %5836 = vmatprep.subr.bf16.mxu0 %v8842_v8  ;;  %5868 = vmatprep.subr.bf16.mxu1 %v8843_v39 }
 0x76e   :  { %v2949_v11 = vpop.f32.mrb[24].mxu0  ;;  %v3020_v19 = vpop.f32.mrb[24].mxu1 }
 0x76f   :  { %v6355_v5 = vadd.f32 %v2949_v11, %v8844_v56  ;;  %v2951_v33 = vpop.f32.mrb[25].mxu0  ;;  %v3022_v59 = vpop.f32.mrb[25].mxu1  ;;  %v6357_v54 = vadd.f32 %v3020_v19, %v8724_v45 }
 0x770   :  { %v6356_v10 = vadd.f32 %v2951_v33, %v8723_v58 }
 0x771   :  { %v4665_v42 = vmul.f32 -1.442695, %v6355_v5 }
 0x772   :  { %v4666_v44 = vmul.f32 -1.442695, %v6356_v10 }
 0x773   :  { %6589 = vpow2.f32 %v4665_v42 }
 0x774   :  { %6591 = vpow2.f32 %v4666_v44 }
 0x775   :  { %6593 = vtanh.f32 %v6357_v54 }
 0x77d   :  { %v6590_v43 = vpop.eup %6589 }
 0x77e   :  { %v6592_v28 = vpop.eup %6591  ;;  %v3032_v46 = vadd.f32 1.0, %v6590_v43 }
 0x77f   :  { %v3038_v8 = vadd.f32 1.0, %v6592_v28  ;;  %v6594_v39 = vpop.eup %6593 }
 0x780   :  { %6595 = vrcp.f32 %v3032_v46 }
 0x781   :  { %6597 = vrcp.f32 %v3038_v8 }
 0x78a   :  { %v6596_v2 = vpop.eup %6595 }
 0x78b   :  { %v6598_v11 = vpop.eup %6597  ;;  %v3049_v56 = vmul.f32 %v6596_v2, %v6594_v39 }
 0x78c   :  { %v3048_v47 = vmul.f32 %v6598_v11, %v7809_v50 }
 0x78e   :  { %v7933_v33 = vadd.f32 %v3049_v56, %v3048_v47  ;;  %v3123_v10 = vpop.f32.mrb[10].mxu0  ;;  %v3194_v42 = vpop.f32.mrb[10].mxu1 }
 0x78f   :  { %v6317_v5 = vadd.f32 %v3123_v10, %v8663_v24  ;;  %v3125_v19 = vpop.f32.mrb[11].mxu0  ;;  %v3196_v44 = vpop.f32.mrb[11].mxu1  ;;  %v6333_v2 = vadd.f32 %v3194_v42, %v8601_v60  ;;  %v6358_v42 = vadd.f32 %v3022_v59, %v7445_v18 }
 0x790   :  { %v6318_v43 = vadd.f32 %v3125_v19, %v8664_v15  ;;  %v6334_v46 = vadd.f32 %v3196_v44, %v8600_v12 }
 0x791   :  { %v4668_v54 = vmul.f32 -1.442695, %v6317_v5 }
 0x792   :  { %v4669_v28 = vmul.f32 -1.442695, %v6318_v43  ;;  %v4670_v8 = vmul.f32 -1.442695, %v6334_v46 }
 0x793   :  { %6599 = vpow2.f32 %v4668_v54 }
 0x794   :  { %6601 = vpow2.f32 %v4669_v28 }
 0x795   :  { %6603 = vpow2.f32 %v4670_v8 }
 0x796   :  { %6605 = vtanh.f32 %v6333_v2  ;;  %v4667_v2 = vmul.f32 -1.442695, %v6358_v42  ;;  %v8852_v42 = vld [vmem:[#allocation23_spill] sm:$0xff] }
 0x79d   :  { %v6600_v50 = vpop.eup %6599 }
 0x79e   :  { %v6602_v47 = vpop.eup %6601  ;;  %v3206_v56 = vadd.f32 1.0, %v6600_v50 }
 0x79f   :  { %v3212_v39 = vadd.f32 1.0, %v6602_v47  ;;  %v6604_v11 = vpop.eup %6603 }
 0x7a0   :  { %6607 = vrcp.f32 %v3206_v56  ;;  %v6606_v10 = vpop.eup %6605  ;;  %v3219_v54 = vadd.f32 1.0, %v6604_v11  ;;  %v8845_v11 = vld [vmem:[#allocation16_spill] sm:$0xff] }
 0x7a1   :  { %6609 = vrcp.f32 %v3212_v39 }
 0x7a2   :  { %6611 = vrcp.f32 %v3219_v54  ;;  %v8850_v54 = vld [vmem:[#allocation21_spill] sm:$0xff] }
 0x7aa   :  { %v6608_v19 = vpop.eup %6607 }
 0x7ab   :  { %v6610_v5 = vpop.eup %6609  ;;  %v3223_v43 = vmul.f32 %v6608_v19, %v6606_v10  ;;  %v8846_v10 = vld [vmem:[#allocation17_spill] sm:$0xff]  ;;  %v8847_v19 = vld [vmem:[#allocation18_spill] sm:$0xff] }
 0x7ac   :  { %v3222_v28 = vmul.f32 %v6610_v5, %v7816_v38  ;;  %v6612_v46 = vpop.eup %6611  ;;  %v8848_v5 = vld [vmem:[#allocation19_spill] sm:$0xff] }
 0x7ae   :  { %v7940_v44 = vadd.f32 %v3223_v43, %v3222_v28  ;;  %v8849_v43 = vld [vmem:[#allocation20_spill] sm:$0xff]  ;;  %v8851_v28 = vld [vmem:[#allocation22_spill] sm:$0xff] }
 0x7b0   :  { %6613 = vtanh.f32 %v7940_v44 }
 0x7b1   :  { %6615 = vpow2.f32 %v4667_v2  ;;  %v8855_v2 = vld [vmem:[#allocation26_spill] sm:$0xff] }
 0x7b2   :  { %6617 = vtanh.f32 %v7933_v33 }
 0x7ba   :  { %v6614_v8 = vpop.eup %6613 }
 0x7bb   :  { %v7944_v50 = vmul.f32 %v6614_v8, %v6612_v46  ;;  %v6616_v38 = vpop.eup %6615  ;;  %v8853_v46 = vld [vmem:[#allocation24_spill] sm:$0xff]  ;;  %v8854_v8 = vld [vmem:[#allocation25_spill] sm:$0xff] }
 0x7bc   :  { %v3045_v59 = vadd.f32 1.0, %v6616_v38  ;;  %v6618_v47 = vpop.eup %6617  ;;  %v8856_v38 = vld [vmem:[#allocation27_spill] sm:$0xff] }
 0x7bd   :  { %3292 = vmatmul.mubr.f32.vlgmr.msra.gmra.mrb[26].mxu0 %v7944_v50  ;;  %3363 = vmatmul.mubr.f32.vlgmr.msra.gmra.mrb[26].mxu1 %v7944_v50 }
 0x7be   :  { %5838 = vmatpush1.bf16.msra.mxu0 %v8604_v40  ;;  %5870 = vmatpush1.bf16.msra.mxu1 %v8605_v36  ;;  %6619 = vrcp.f32 %v3045_v59  ;;  %v8857_v59 = vld [vmem:[#allocation28_spill] sm:$0xff] }
 0x7bf   :  { %5840 = vmatprep.subr.bf16.mxu0 %v8606_v13  ;;  %5872 = vmatprep.subr.bf16.mxu1 %v8607_v41 }
 0x7c0   :  { %3433 = vmatprep.mubr.f32.mxu0 %v8553_v3  ;;  %3504 = vmatprep.mubr.f32.mxu1 %v8553_v3 }
 0x7c2   :  { %5842 = vmatpush1.bf16.msra.mxu0 %v8608_v57  ;;  %5874 = vmatpush1.bf16.msra.mxu1 %v8609_v14 }
 0x7c3   :  { %5844 = vmatprep.subr.bf16.mxu0 %v8665_v48  ;;  %5876 = vmatprep.subr.bf16.mxu1 %v8666_v0 }
 0x7c6   :  { %5846 = vmatpush1.bf16.msra.mxu0 %v8667_v61  ;;  %5878 = vmatpush1.bf16.msra.mxu1 %v8613_v1 }
 0x7c7   :  { %5848 = vmatprep.subr.bf16.mxu0 %v8614_v32  ;;  %5880 = vmatprep.subr.bf16.mxu1 %v8615_v27 }
 0x7c8   :  { %v6620_v56 = vpop.eup %6619 }
 0x7c9   :  { %v3052_v39 = vmul.f32 %v6620_v56, %v6618_v47  ;;  %v8858_v47 = vld [vmem:[#allocation29_spill] sm:$0xff]  ;;  %v8859_v56 = vld [vmem:[#allocation30_spill] sm:$0xff] }
 0x7ca   :  { %5850 = vmatpush1.bf16.msra.mxu0 %v8616_v20  ;;  %5882 = vmatpush1.bf16.msra.mxu1 %v8617_v7 }
 0x7cb   :  { %5852 = vmatprep.subr.bf16.mxu0 %v8618_v16  ;;  %5884 = vmatprep.subr.bf16.mxu1 %v8619_v51 }
 0x7ce   :  { %5854 = vmatpush1.bf16.msra.mxu0 %v8620_v4  ;;  %5886 = vmatpush1.bf16.msra.mxu1 %v8621_v6 }
 0x7cf   :  { %5856 = vmatprep.subr.bf16.mxu0 %v8668_v52  ;;  %5888 = vmatprep.subr.bf16.mxu1 %v7305_v23 }
 0x7d2   :  { %5858 = vmatpush1.bf16.msra.mxu0 %v7309_v31  ;;  %5890 = vmatpush1.bf16.msra.mxu1 %v7311_v26 }
 0x7d3   :  { %5860 = vmatprep.subr.bf16.mxu0 %v7315_v63  ;;  %5892 = vmatprep.subr.bf16.mxu1 %v7317_v37 }
 0x7d6   :  { %5862 = vmatpush1.bf16.msra.mxu0 %v7321_v9  ;;  %5894 = vmatpush1.bf16.msra.mxu1 %v7323_v55 }
 0x7d7   :  { %5864 = vmatprep.subr.bf16.mxu0 %v7327_v30  ;;  %5896 = vmatprep.subr.bf16.mxu1 %v7329_v53 }
 0x7da   :  { %5866 = vmatpush1.bf16.msra.mxu0 %v7333_v62  ;;  %5898 = vmatpush1.bf16.msra.mxu1 %v7335_v49 }
 0x7db   :  { %5900 = vmatprep.subr.bf16.mxu0 %v6958_v17  ;;  %5932 = vmatprep.subr.bf16.mxu1 %v6960_v21 }
 0x7dd   :  { %3434 = vmatmul.mubr.f32.vlgmr.msra.gmra.mrb[26].mxu0 %v3052_v39  ;;  %3505 = vmatmul.mubr.f32.vlgmr.msra.gmra.mrb[26].mxu1 %v3052_v39  ;;  %v8860_v39 = vld [vmem:[#allocation31_spill] sm:$0xff] }
 0x7de   :  { %5902 = vmatpush1.bf16.msra.mxu0 %v6962_v22  ;;  %5934 = vmatpush1.bf16.msra.mxu1 %v6965_v25 }
 0x7df   :  { %5904 = vmatprep.subr.bf16.mxu0 %v6969_v29  ;;  %5936 = vmatprep.subr.bf16.mxu1 %v6976_v34 }
 0x7e0   :  { %3607 = vmatprep.mubr.f32.mxu0 %v8553_v3  ;;  %3678 = vmatprep.mubr.f32.mxu1 %v8553_v3 }
 0x7e2   :  { %5906 = vmatpush1.bf16.msra.mxu0 %v6978_v35  ;;  %5938 = vmatpush1.bf16.msra.mxu1 %v8845_v11 }
 0x7e3   :  { %5908 = vmatprep.subr.bf16.mxu0 %v8846_v10  ;;  %5940 = vmatprep.subr.bf16.mxu1 %v8847_v19 }
 0x7e6   :  { %5910 = vmatpush1.bf16.msra.mxu0 %v8848_v5  ;;  %5942 = vmatpush1.bf16.msra.mxu1 %v8849_v43 }
 0x7e7   :  { %5912 = vmatprep.subr.bf16.mxu0 %v8850_v54  ;;  %5944 = vmatprep.subr.bf16.mxu1 %v8851_v28  ;;  %v8861_v54 = vld [vmem:[#allocation32_spill] sm:$0xff]  ;;  %v8862_v28 = vld [vmem:[#allocation33_spill] sm:$0xff] }
 0x7ea   :  { %5914 = vmatpush1.bf16.msra.mxu0 %v8852_v42  ;;  %5946 = vmatpush1.bf16.msra.mxu1 %v8853_v46  ;;  %v8863_v42 = vld [vmem:[#allocation34_spill] sm:$0xff]  ;;  %v8864_v46 = vld [vmem:[#allocation35_spill] sm:$0xff] }
 0x7eb   :  { %5916 = vmatprep.subr.bf16.mxu0 %v8854_v8  ;;  %5948 = vmatprep.subr.bf16.mxu1 %v8855_v2  ;;  %v8865_v8 = vld [vmem:[#allocation36_spill] sm:$0xff]  ;;  %v8866_v2 = vld [vmem:[#allocation37_spill] sm:$0xff] }
 0x7ee   :  { %5918 = vmatpush1.bf16.msra.mxu0 %v8856_v38  ;;  %5950 = vmatpush1.bf16.msra.mxu1 %v8857_v59  ;;  %v8867_v38 = vld [vmem:[#allocation38_spill] sm:$0xff]  ;;  %v8868_v59 = vld [vmem:[#allocation39_spill] sm:$0xff] }
 0x7ef   :  { %5920 = vmatprep.subr.bf16.mxu0 %v8858_v47  ;;  %5952 = vmatprep.subr.bf16.mxu1 %v8859_v56  ;;  %v8869_v47 = vld [vmem:[#allocation40_spill] sm:$0xff]  ;;  %v8870_v56 = vld [vmem:[#allocation41_spill] sm:$0xff] }
 0x7f2   :  { %5922 = vmatpush1.bf16.msra.mxu0 %v8860_v39  ;;  %5954 = vmatpush1.bf16.msra.mxu1 %v8861_v54  ;;  %v8871_v39 = vld [vmem:[#allocation42_spill] sm:$0xff]  ;;  %v8904_v54 = vld [vmem:[#allocation75_spill] sm:$0xff] }
 0x7f3   :  { %5924 = vmatprep.subr.bf16.mxu0 %v8862_v28  ;;  %5956 = vmatprep.subr.bf16.mxu1 %v8863_v42  ;;  %v8872_v42 = vld [vmem:[#allocation43_spill] sm:$0xff]  ;;  %v8886_v28 = vld [vmem:[#allocation57_spill] sm:$0xff] }
 0x7f6   :  { %5926 = vmatpush1.bf16.msra.mxu0 %v8864_v46  ;;  %5958 = vmatpush1.bf16.msra.mxu1 %v8865_v8  ;;  %v8873_v46 = vld [vmem:[#allocation44_spill] sm:$0xff]  ;;  %v8874_v8 = vld [vmem:[#allocation45_spill] sm:$0xff] }
 0x7f7   :  { %5928 = vmatprep.subr.bf16.mxu0 %v8866_v2  ;;  %5960 = vmatprep.subr.bf16.mxu1 %v8867_v38  ;;  %v8875_v2 = vld [vmem:[#allocation46_spill] sm:$0xff]  ;;  %v8885_v38 = vld [vmem:[#allocation56_spill] sm:$0xff] }
 0x7fa   :  { %5930 = vmatpush1.bf16.msra.mxu0 %v8868_v59  ;;  %5962 = vmatpush1.bf16.msra.mxu1 %v8869_v47  ;;  %v8876_v47 = vld [vmem:[#allocation47_spill] sm:$0xff]  ;;  %v8879_v59 = vld [vmem:[#allocation50_spill] sm:$0xff] }
 0x7fb   :  { %5964 = vmatprep.subr.bf16.mxu0 %v8870_v56  ;;  %5996 = vmatprep.subr.bf16.mxu1 %v8871_v39  ;;  %v8877_v56 = vld [vmem:[#allocation48_spill] sm:$0xff]  ;;  %v8878_v39 = vld [vmem:[#allocation49_spill] sm:$0xff] }
 0x7fd   :  { %3608 = vmatmul.mubr.f32.vlgmr.msra.gmra.mrb[12].mxu0 %v7944_v50  ;;  %3679 = vmatmul.mubr.f32.vlgmr.msra.gmra.mrb[12].mxu1 %v7944_v50  ;;  %v8880_v50 = vld [vmem:[#allocation51_spill] sm:$0xff] }
 0x7fe   :  { %5966 = vmatpush1.bf16.msra.mxu0 %v8872_v42  ;;  %5998 = vmatpush1.bf16.msra.mxu1 %v8873_v46  ;;  %v8881_v42 = vld [vmem:[#allocation52_spill] sm:$0xff]  ;;  %v8882_v46 = vld [vmem:[#allocation53_spill] sm:$0xff] }
 0x7ff   :  { %5968 = vmatprep.subr.bf16.mxu0 %v8874_v8  ;;  %6000 = vmatprep.subr.bf16.mxu1 %v8875_v2  ;;  %v8883_v8 = vld [vmem:[#allocation54_spill] sm:$0xff]  ;;  %v8884_v2 = vld [vmem:[#allocation55_spill] sm:$0xff] }
 0x800   :  { %3777 = vmatprep.mubr.f32.mxu0 %v8553_v3  ;;  %3848 = vmatprep.mubr.f32.mxu1 %v8553_v3 }
 0x802   :  { %5970 = vmatpush1.bf16.msra.mxu0 %v8876_v47  ;;  %6002 = vmatpush1.bf16.msra.mxu1 %v8877_v56  ;;  %v8887_v47 = vld [vmem:[#allocation58_spill] sm:$0xff]  ;;  %v8888_v56 = vld [vmem:[#allocation59_spill] sm:$0xff] }
 0x803   :  { %5972 = vmatprep.subr.bf16.mxu0 %v8878_v39  ;;  %6004 = vmatprep.subr.bf16.mxu1 %v8879_v59  ;;  %v8889_v39 = vld [vmem:[#allocation60_spill] sm:$0xff]  ;;  %v8890_v59 = vld [vmem:[#allocation61_spill] sm:$0xff] }
 0x806   :  { %5974 = vmatpush1.bf16.msra.mxu0 %v8880_v50  ;;  %6006 = vmatpush1.bf16.msra.mxu1 %v8881_v42  ;;  %v8891_v50 = vld [vmem:[#allocation62_spill] sm:$0xff]  ;;  %v8892_v42 = vld [vmem:[#allocation63_spill] sm:$0xff] }
 0x807   :  { %5976 = vmatprep.subr.bf16.mxu0 %v8882_v46  ;;  %6008 = vmatprep.subr.bf16.mxu1 %v8883_v8  ;;  %v8893_v46 = vld [vmem:[#allocation64_spill] sm:$0xff]  ;;  %v8894_v8 = vld [vmem:[#allocation65_spill] sm:$0xff] }
 0x80a   :  { %5978 = vmatpush1.bf16.msra.mxu0 %v8884_v2  ;;  %6010 = vmatpush1.bf16.msra.mxu1 %v8885_v38  ;;  %v8895_v2 = vld [vmem:[#allocation66_spill] sm:$0xff]  ;;  %v8896_v38 = vld [vmem:[#allocation67_spill] sm:$0xff] }
 0x80b   :  { %5980 = vmatprep.subr.bf16.mxu0 %v8886_v28  ;;  %6012 = vmatprep.subr.bf16.mxu1 %v8887_v47  ;;  %v8897_v28 = vld [vmem:[#allocation68_spill] sm:$0xff]  ;;  %v8898_v47 = vld [vmem:[#allocation69_spill] sm:$0xff] }
 0x80e   :  { %5982 = vmatpush1.bf16.msra.mxu0 %v8888_v56  ;;  %6014 = vmatpush1.bf16.msra.mxu1 %v8889_v39  ;;  %v8899_v56 = vld [vmem:[#allocation70_spill] sm:$0xff]  ;;  %v8900_v39 = vld [vmem:[#allocation71_spill] sm:$0xff] }
 0x80f   :  { %5984 = vmatprep.subr.bf16.mxu0 %v8890_v59  ;;  %6016 = vmatprep.subr.bf16.mxu1 %v8891_v50  ;;  %v8901_v59 = vld [vmem:[#allocation72_spill] sm:$0xff]  ;;  %v8902_v50 = vld [vmem:[#allocation73_spill] sm:$0xff] }
 0x812   :  { %5986 = vmatpush1.bf16.msra.mxu0 %v8892_v42  ;;  %6018 = vmatpush1.bf16.msra.mxu1 %v8893_v46  ;;  %v8903_v42 = vld [vmem:[#allocation74_spill] sm:$0xff] }
 0x813   :  { %5988 = vmatprep.subr.bf16.mxu0 %v8894_v8  ;;  %6020 = vmatprep.subr.bf16.mxu1 %v8895_v2 }
 0x816   :  { %5990 = vmatpush1.bf16.msra.mxu0 %v8896_v38  ;;  %6022 = vmatpush1.bf16.msra.mxu1 %v8897_v28 }
 0x817   :  { %5992 = vmatprep.subr.bf16.mxu0 %v8898_v47  ;;  %6024 = vmatprep.subr.bf16.mxu1 %v8899_v56 }
 0x81a   :  { %5994 = vmatpush1.bf16.msra.mxu0 %v8900_v39  ;;  %6026 = vmatpush1.bf16.msra.mxu1 %v8901_v59 }
 0x81b   :  { %6028 = vmatprep.subr.bf16.mxu0 %v8902_v50  ;;  %6060 = vmatprep.subr.bf16.mxu1 %v8903_v42 }
 0x8b0   :  { %v3435_v46 = vpop.f32.mrb[26].mxu0  ;;  %v3506_v8 = vpop.f32.mrb[26].mxu1 }
 0x8b1   :  { %v6359_v2 = vadd.f32 %v3435_v46, %v8904_v54  ;;  %v3437_v43 = vpop.f32.mrb[27].mxu0  ;;  %v3508_v38 = vpop.f32.mrb[27].mxu1  ;;  %v6361_v39 = vadd.f32 %v3506_v8, %v8724_v45 }
 0x8b2   :  { %v6360_v28 = vadd.f32 %v3437_v43, %v8723_v58 }
 0x8b3   :  { %v4671_v5 = vmul.f32 -1.442695, %v6359_v2 }
 0x8b4   :  { %v4672_v47 = vmul.f32 -1.442695, %v6360_v28 }
 0x8b5   :  { %6621 = vpow2.f32 %v4671_v5 }
 0x8b6   :  { %6623 = vpow2.f32 %v4672_v47 }
 0x8b7   :  { %6625 = vtanh.f32 %v6361_v39 }
 0x8bf   :  { %v6622_v56 = vpop.eup %6621 }
 0x8c0   :  { %v6624_v59 = vpop.eup %6623  ;;  %v3518_v19 = vadd.f32 1.0, %v6622_v56 }
 0x8c1   :  { %v3524_v50 = vadd.f32 1.0, %v6624_v59  ;;  %v6626_v42 = vpop.eup %6625 }
 0x8c2   :  { %6627 = vrcp.f32 %v3518_v19 }
 0x8c3   :  { %6629 = vrcp.f32 %v3524_v50 }
 0x8cc   :  { %v6628_v10 = vpop.eup %6627 }
 0x8cd   :  { %v6630_v46 = vpop.eup %6629  ;;  %v3535_v54 = vmul.f32 %v6628_v10, %v6626_v42 }
 0x8ce   :  { %v3534_v11 = vmul.f32 %v6630_v46, %v7933_v33 }
 0x8d0   :  { %v8057_v43 = vadd.f32 %v3535_v54, %v3534_v11  ;;  %v3609_v28 = vpop.f32.mrb[12].mxu0  ;;  %v3680_v5 = vpop.f32.mrb[12].mxu1 }
 0x8d1   :  { %v6319_v2 = vadd.f32 %v3609_v28, %v8663_v24  ;;  %v3611_v8 = vpop.f32.mrb[13].mxu0  ;;  %v3682_v47 = vpop.f32.mrb[13].mxu1  ;;  %v6335_v10 = vadd.f32 %v3680_v5, %v8601_v60  ;;  %v6362_v5 = vadd.f32 %v3508_v38, %v7445_v18 }
 0x8d2   :  { %v6320_v56 = vadd.f32 %v3611_v8, %v8664_v15  ;;  %v6336_v19 = vadd.f32 %v3682_v47, %v8600_v12 }
 0x8d3   :  { %v4674_v39 = vmul.f32 -1.442695, %v6319_v2 }
 0x8d4   :  { %v4675_v59 = vmul.f32 -1.442695, %v6320_v56  ;;  %v4676_v50 = vmul.f32 -1.442695, %v6336_v19 }
 0x8d5   :  { %6631 = vpow2.f32 %v4674_v39 }
 0x8d6   :  { %6633 = vpow2.f32 %v4675_v59 }
 0x8d7   :  { %6635 = vpow2.f32 %v4676_v50 }
 0x8d8   :  { %6637 = vtanh.f32 %v6335_v10  ;;  %v4673_v10 = vmul.f32 -1.442695, %v6362_v5  ;;  %v8919_v5 = vld [vmem:[#allocation30_spill] sm:$0xff] }
 0x8df   :  { %v6632_v33 = vpop.eup %6631 }
 0x8e0   :  { %v6634_v11 = vpop.eup %6633  ;;  %v3692_v54 = vadd.f32 1.0, %v6632_v33 }
 0x8e1   :  { %v3698_v42 = vadd.f32 1.0, %v6634_v11  ;;  %v6636_v46 = vpop.eup %6635 }
 0x8e2   :  { %6639 = vrcp.f32 %v3692_v54  ;;  %v6638_v28 = vpop.eup %6637  ;;  %v3705_v39 = vadd.f32 1.0, %v6636_v46  ;;  %v8905_v46 = vld [vmem:[#allocation16_spill] sm:$0xff] }
 0x8e3   :  { %6641 = vrcp.f32 %v3698_v42 }
 0x8e4   :  { %6643 = vrcp.f32 %v3705_v39  ;;  %v8917_v39 = vld [vmem:[#allocation28_spill] sm:$0xff] }
 0x8ec   :  { %v6640_v8 = vpop.eup %6639 }
 0x8ed   :  { %v6642_v2 = vpop.eup %6641  ;;  %v3709_v56 = vmul.f32 %v6640_v8, %v6638_v28  ;;  %v8908_v28 = vld [vmem:[#allocation19_spill] sm:$0xff]  ;;  %v8913_v8 = vld [vmem:[#allocation24_spill] sm:$0xff] }
 0x8ee   :  { %v3708_v59 = vmul.f32 %v6642_v2, %v7940_v44  ;;  %v6644_v19 = vpop.eup %6643  ;;  %v8914_v2 = vld [vmem:[#allocation25_spill] sm:$0xff] }
 0x8f0   :  { %v8064_v47 = vadd.f32 %v3709_v56, %v3708_v59  ;;  %v8916_v56 = vld [vmem:[#allocation27_spill] sm:$0xff]  ;;  %v8918_v59 = vld [vmem:[#allocation29_spill] sm:$0xff] }
 0x8f2   :  { %6645 = vtanh.f32 %v8064_v47 }
 0x8f3   :  { %6647 = vpow2.f32 %v4673_v10  ;;  %v8922_v10 = vld [vmem:[#allocation33_spill] sm:$0xff] }
 0x8f4   :  { %6649 = vtanh.f32 %v8057_v43 }
 0x8fc   :  { %v6646_v50 = vpop.eup %6645 }
 0x8fd   :  { %v8068_v33 = vmul.f32 %v6646_v50, %v6644_v19  ;;  %v6648_v44 = vpop.eup %6647  ;;  %v8920_v19 = vld [vmem:[#allocation31_spill] sm:$0xff]  ;;  %v8921_v50 = vld [vmem:[#allocation32_spill] sm:$0xff] }
 0x8fe   :  { %v3531_v38 = vadd.f32 1.0, %v6648_v44  ;;  %v6650_v11 = vpop.eup %6649  ;;  %v8923_v44 = vld [vmem:[#allocation34_spill] sm:$0xff] }
 0x8ff   :  { %3778 = vmatmul.mubr.f32.vlgmr.msra.gmra.mrb[28].mxu0 %v8068_v33  ;;  %3849 = vmatmul.mubr.f32.vlgmr.msra.gmra.mrb[28].mxu1 %v8068_v33 }
 0x900   :  { %6030 = vmatpush1.bf16.msra.mxu0 %v8604_v40  ;;  %6062 = vmatpush1.bf16.msra.mxu1 %v8605_v36  ;;  %6651 = vrcp.f32 %v3531_v38  ;;  %v8924_v38 = vld [vmem:[#allocation35_spill] sm:$0xff] }
 0x901   :  { %6032 = vmatprep.subr.bf16.mxu0 %v8606_v13  ;;  %6064 = vmatprep.subr.bf16.mxu1 %v8607_v41 }
 0x902   :  { %3919 = vmatprep.mubr.f32.mxu0 %v8553_v3  ;;  %3990 = vmatprep.mubr.f32.mxu1 %v8553_v3 }
 0x904   :  { %6034 = vmatpush1.bf16.msra.mxu0 %v8608_v57  ;;  %6066 = vmatpush1.bf16.msra.mxu1 %v8609_v14 }
 0x905   :  { %6036 = vmatprep.subr.bf16.mxu0 %v8665_v48  ;;  %6068 = vmatprep.subr.bf16.mxu1 %v8666_v0 }
 0x908   :  { %6038 = vmatpush1.bf16.msra.mxu0 %v8667_v61  ;;  %6070 = vmatpush1.bf16.msra.mxu1 %v8613_v1 }
 0x909   :  { %6040 = vmatprep.subr.bf16.mxu0 %v8614_v32  ;;  %6072 = vmatprep.subr.bf16.mxu1 %v8615_v27 }
 0x90a   :  { %v6652_v54 = vpop.eup %6651 }
 0x90b   :  { %v3538_v42 = vmul.f32 %v6652_v54, %v6650_v11  ;;  %v8925_v11 = vld [vmem:[#allocation36_spill] sm:$0xff]  ;;  %v8926_v54 = vld [vmem:[#allocation37_spill] sm:$0xff] }
 0x90c   :  { %6042 = vmatpush1.bf16.msra.mxu0 %v8616_v20  ;;  %6074 = vmatpush1.bf16.msra.mxu1 %v8617_v7 }
 0x90d   :  { %6044 = vmatprep.subr.bf16.mxu0 %v8618_v16  ;;  %6076 = vmatprep.subr.bf16.mxu1 %v8619_v51 }
 0x910   :  { %6046 = vmatpush1.bf16.msra.mxu0 %v8620_v4  ;;  %6078 = vmatpush1.bf16.msra.mxu1 %v8621_v6 }
 0x911   :  { %6048 = vmatprep.subr.bf16.mxu0 %v8668_v52  ;;  %6080 = vmatprep.subr.bf16.mxu1 %v7305_v23 }
 0x914   :  { %6050 = vmatpush1.bf16.msra.mxu0 %v7309_v31  ;;  %6082 = vmatpush1.bf16.msra.mxu1 %v7311_v26 }
 0x915   :  { %6052 = vmatprep.subr.bf16.mxu0 %v7315_v63  ;;  %6084 = vmatprep.subr.bf16.mxu1 %v7317_v37 }
 0x918   :  { %6054 = vmatpush1.bf16.msra.mxu0 %v7321_v9  ;;  %6086 = vmatpush1.bf16.msra.mxu1 %v7323_v55 }
 0x919   :  { %6056 = vmatprep.subr.bf16.mxu0 %v7327_v30  ;;  %6088 = vmatprep.subr.bf16.mxu1 %v7329_v53 }
 0x91c   :  { %6058 = vmatpush1.bf16.msra.mxu0 %v7333_v62  ;;  %6090 = vmatpush1.bf16.msra.mxu1 %v7335_v49 }
 0x91d   :  { %6092 = vmatprep.subr.bf16.mxu0 %v6958_v17  ;;  %6124 = vmatprep.subr.bf16.mxu1 %v6960_v21  ;;  %v8906_v17 = vld [vmem:[#allocation17_spill] sm:$0xff]  ;;  %v8907_v21 = vld [vmem:[#allocation18_spill] sm:$0xff] }
 0x91f   :  { %3920 = vmatmul.mubr.f32.vlgmr.msra.gmra.mrb[28].mxu0 %v3538_v42  ;;  %3991 = vmatmul.mubr.f32.vlgmr.msra.gmra.mrb[28].mxu1 %v3538_v42  ;;  %v8927_v42 = vld [vmem:[#allocation38_spill] sm:$0xff] }
 0x920   :  { %6094 = vmatpush1.bf16.msra.mxu0 %v6962_v22  ;;  %6126 = vmatpush1.bf16.msra.mxu1 %v6965_v25  ;;  %v8909_v22 = vld [vmem:[#allocation20_spill] sm:$0xff]  ;;  %v8910_v25 = vld [vmem:[#allocation21_spill] sm:$0xff] }
 0x921   :  { %6096 = vmatprep.subr.bf16.mxu0 %v6969_v29  ;;  %6128 = vmatprep.subr.bf16.mxu1 %v6976_v34  ;;  %v8911_v29 = vld [vmem:[#allocation22_spill] sm:$0xff]  ;;  %v8912_v34 = vld [vmem:[#allocation23_spill] sm:$0xff] }
 0x922   :  { %4093 = vmatprep.mubr.f32.mxu0 %v8553_v3  ;;  %4164 = vmatprep.mubr.f32.mxu1 %v8553_v3 }
 0x924   :  { %6098 = vmatpush1.bf16.msra.mxu0 %v6978_v35  ;;  %6130 = vmatpush1.bf16.msra.mxu1 %v8905_v46  ;;  %v8915_v35 = vld [vmem:[#allocation26_spill] sm:$0xff]  ;;  %v8928_v46 = vld [vmem:[#allocation39_spill] sm:$0xff] }
 0x925   :  { %6100 = vmatprep.subr.bf16.mxu0 %v8906_v17  ;;  %6132 = vmatprep.subr.bf16.mxu1 %v8907_v21  ;;  %v8929_v17 = vld [vmem:[#allocation40_spill] sm:$0xff]  ;;  %v8930_v21 = vld [vmem:[#allocation41_spill] sm:$0xff] }
 0x928   :  { %6102 = vmatpush1.bf16.msra.mxu0 %v8908_v28  ;;  %6134 = vmatpush1.bf16.msra.mxu1 %v8909_v22  ;;  %v8931_v28 = vld [vmem:[#allocation42_spill] sm:$0xff]  ;;  %v8932_v22 = vld [vmem:[#allocation43_spill] sm:$0xff] }
 0x929   :  { %6104 = vmatprep.subr.bf16.mxu0 %v8910_v25  ;;  %6136 = vmatprep.subr.bf16.mxu1 %v8911_v29  ;;  %v8933_v25 = vld [vmem:[#allocation44_spill] sm:$0xff]  ;;  %v8934_v29 = vld [vmem:[#allocation45_spill] sm:$0xff] }
 0x92c   :  { %6106 = vmatpush1.bf16.msra.mxu0 %v8912_v34  ;;  %6138 = vmatpush1.bf16.msra.mxu1 %v8913_v8  ;;  %v8935_v34 = vld [vmem:[#allocation46_spill] sm:$0xff]  ;;  %v8936_v8 = vld [vmem:[#allocation47_spill] sm:$0xff] }
 0x92d   :  { %6108 = vmatprep.subr.bf16.mxu0 %v8914_v2  ;;  %6140 = vmatprep.subr.bf16.mxu1 %v8915_v35  ;;  %v8937_v2 = vld [vmem:[#allocation48_spill] sm:$0xff]  ;;  %v8938_v35 = vld [vmem:[#allocation49_spill] sm:$0xff] }
 0x930   :  { %6110 = vmatpush1.bf16.msra.mxu0 %v8916_v56  ;;  %6142 = vmatpush1.bf16.msra.mxu1 %v8917_v39  ;;  %v8939_v56 = vld [vmem:[#allocation50_spill] sm:$0xff]  ;;  %v8941_v39 = vld [vmem:[#allocation52_spill] sm:$0xff] }
 0x931   :  { %6112 = vmatprep.subr.bf16.mxu0 %v8918_v59  ;;  %6144 = vmatprep.subr.bf16.mxu1 %v8919_v5  ;;  %v8942_v59 = vld [vmem:[#allocation53_spill] sm:$0xff]  ;;  %v8943_v5 = vld [vmem:[#allocation54_spill] sm:$0xff] }
 0x934   :  { %6114 = vmatpush1.bf16.msra.mxu0 %v8920_v19  ;;  %6146 = vmatpush1.bf16.msra.mxu1 %v8921_v50  ;;  %v8944_v19 = vld [vmem:[#allocation55_spill] sm:$0xff]  ;;  %v8945_v50 = vld [vmem:[#allocation56_spill] sm:$0xff] }
 0x935   :  { %6116 = vmatprep.subr.bf16.mxu0 %v8922_v10  ;;  %6148 = vmatprep.subr.bf16.mxu1 %v8923_v44  ;;  %v8946_v10 = vld [vmem:[#allocation57_spill] sm:$0xff]  ;;  %v8947_v44 = vld [vmem:[#allocation58_spill] sm:$0xff] }
 0x938   :  { %6118 = vmatpush1.bf16.msra.mxu0 %v8924_v38  ;;  %6150 = vmatpush1.bf16.msra.mxu1 %v8925_v11  ;;  %v8948_v38 = vld [vmem:[#allocation59_spill] sm:$0xff]  ;;  %v8949_v11 = vld [vmem:[#allocation60_spill] sm:$0xff] }
 0x939   :  { %6120 = vmatprep.subr.bf16.mxu0 %v8926_v54  ;;  %6152 = vmatprep.subr.bf16.mxu1 %v8927_v42  ;;  %v8950_v54 = vld [vmem:[#allocation61_spill] sm:$0xff]  ;;  %v8951_v42 = vld [vmem:[#allocation62_spill] sm:$0xff] }
 0x93c   :  { %6122 = vmatpush1.bf16.msra.mxu0 %v8928_v46  ;;  %6154 = vmatpush1.bf16.msra.mxu1 %v8929_v17  ;;  %v8952_v46 = vld [vmem:[#allocation63_spill] sm:$0xff]  ;;  %v8953_v17 = vld [vmem:[#allocation64_spill] sm:$0xff] }
 0x93d   :  { %6156 = vmatprep.subr.bf16.mxu0 %v8930_v21  ;;  %6188 = vmatprep.subr.bf16.mxu1 %v8931_v28  ;;  %v8954_v21 = vld [vmem:[#allocation65_spill] sm:$0xff]  ;;  %v8955_v28 = vld [vmem:[#allocation66_spill] sm:$0xff] }
 0x93f   :  { %4094 = vmatmul.mubr.f32.vlgmr.msra.gmra.mrb[14].mxu0 %v8068_v33  ;;  %4165 = vmatmul.mubr.f32.vlgmr.msra.gmra.mrb[14].mxu1 %v8068_v33  ;;  %v8940_v33 = vld [vmem:[#allocation51_spill] sm:$0xff] }
 0x940   :  { %6158 = vmatpush1.bf16.msra.mxu0 %v8932_v22  ;;  %6190 = vmatpush1.bf16.msra.mxu1 %v8933_v25  ;;  %v8956_v22 = vld [vmem:[#allocation67_spill] sm:$0xff]  ;;  %v8957_v25 = vld [vmem:[#allocation68_spill] sm:$0xff] }
 0x941   :  { %6160 = vmatprep.subr.bf16.mxu0 %v8934_v29  ;;  %6192 = vmatprep.subr.bf16.mxu1 %v8935_v34  ;;  %v8958_v29 = vld [vmem:[#allocation69_spill] sm:$0xff]  ;;  %v8959_v34 = vld [vmem:[#allocation70_spill] sm:$0xff] }
 0x942   :  { %4263 = vmatprep.mubr.f32.mxu0 %v8553_v3  ;;  %4334 = vmatprep.mubr.f32.mxu1 %v8553_v3 }
 0x944   :  { %6162 = vmatpush1.bf16.msra.mxu0 %v8936_v8  ;;  %6194 = vmatpush1.bf16.msra.mxu1 %v8937_v2  ;;  %v8960_v8 = vld [vmem:[#allocation71_spill] sm:$0xff]  ;;  %v8961_v2 = vld [vmem:[#allocation72_spill] sm:$0xff] }
 0x945   :  { %6164 = vmatprep.subr.bf16.mxu0 %v8938_v35  ;;  %6196 = vmatprep.subr.bf16.mxu1 %v8939_v56  ;;  %v8962_v35 = vld [vmem:[#allocation73_spill] sm:$0xff]  ;;  %v8963_v56 = vld [vmem:[#allocation74_spill] sm:$0xff] }
 0x948   :  { %6166 = vmatpush1.bf16.msra.mxu0 %v8940_v33  ;;  %6198 = vmatpush1.bf16.msra.mxu1 %v8941_v39 }
 0x949   :  { %6168 = vmatprep.subr.bf16.mxu0 %v8942_v59  ;;  %6200 = vmatprep.subr.bf16.mxu1 %v8943_v5  ;;  %v8964_v59 = vld [vmem:[#allocation75_spill] sm:$0xff] }
 0x94c   :  { %6170 = vmatpush1.bf16.msra.mxu0 %v8944_v19  ;;  %6202 = vmatpush1.bf16.msra.mxu1 %v8945_v50 }
 0x94d   :  { %6172 = vmatprep.subr.bf16.mxu0 %v8946_v10  ;;  %6204 = vmatprep.subr.bf16.mxu1 %v8947_v44 }
 0x950   :  { %6174 = vmatpush1.bf16.msra.mxu0 %v8948_v38  ;;  %6206 = vmatpush1.bf16.msra.mxu1 %v8949_v11 }
 0x951   :  { %6176 = vmatprep.subr.bf16.mxu0 %v8950_v54  ;;  %6208 = vmatprep.subr.bf16.mxu1 %v8951_v42 }
 0x954   :  { %6178 = vmatpush1.bf16.msra.mxu0 %v8952_v46  ;;  %6210 = vmatpush1.bf16.msra.mxu1 %v8953_v17 }
 0x955   :  { %6180 = vmatprep.subr.bf16.mxu0 %v8954_v21  ;;  %6212 = vmatprep.subr.bf16.mxu1 %v8955_v28 }
 0x958   :  { %6182 = vmatpush1.bf16.msra.mxu0 %v8956_v22  ;;  %6214 = vmatpush1.bf16.msra.mxu1 %v8957_v25 }
 0x959   :  { %6184 = vmatprep.subr.bf16.mxu0 %v8958_v29  ;;  %6216 = vmatprep.subr.bf16.mxu1 %v8959_v34 }
 0x95c   :  { %6186 = vmatpush1.bf16.msra.mxu0 %v8960_v8  ;;  %6218 = vmatpush1.bf16.msra.mxu1 %v8961_v2 }
 0x95d   :  { %6220 = vmatprep.subr.bf16.mxu0 %v8962_v35  ;;  %6252 = vmatprep.subr.bf16.mxu1 %v8963_v56 }
 0x9f2   :  { %v3921_v33 = vpop.f32.mrb[28].mxu0  ;;  %v3992_v39 = vpop.f32.mrb[28].mxu1 }
 0x9f3   :  { %v6363_v5 = vadd.f32 %v3921_v33, %v8964_v59  ;;  %v3923_v19 = vpop.f32.mrb[29].mxu0  ;;  %v3994_v50 = vpop.f32.mrb[29].mxu1  ;;  %v6365_v11 = vadd.f32 %v3992_v39, %v8724_v45 }
 0x9f4   :  { %v6364_v10 = vadd.f32 %v3923_v19, %v8723_v58 }
 0x9f5   :  { %v4677_v44 = vmul.f32 -1.442695, %v6363_v5 }
 0x9f6   :  { %v4678_v38 = vmul.f32 -1.442695, %v6364_v10 }
 0x9f7   :  { %6653 = vpow2.f32 %v4677_v44 }
 0x9f8   :  { %6655 = vpow2.f32 %v4678_v38 }
 0x9f9   :  { %6657 = vtanh.f32 %v6365_v11 }
 0xa01   :  { %v6654_v54 = vpop.eup %6653 }
 0xa02   :  { %v6656_v42 = vpop.eup %6655  ;;  %v4004_v46 = vadd.f32 1.0, %v6654_v54 }
 0xa03   :  { %v4010_v17 = vadd.f32 1.0, %v6656_v42  ;;  %v6658_v21 = vpop.eup %6657 }
 0xa04   :  { %6659 = vrcp.f32 %v4004_v46 }
 0xa05   :  { %6661 = vrcp.f32 %v4010_v17 }
 0xa0e   :  { %v6660_v28 = vpop.eup %6659 }
 0xa0f   :  { %v6662_v22 = vpop.eup %6661  ;;  %v4021_v25 = vmul.f32 %v6660_v28, %v6658_v21 }
 0xa10   :  { %v4020_v29 = vmul.f32 %v6662_v22, %v8057_v43 }
 0xa12   :  { %v8181_v34 = vadd.f32 %v4021_v25, %v4020_v29  ;;  %v4095_v8 = vpop.f32.mrb[14].mxu0  ;;  %v4166_v2 = vpop.f32.mrb[14].mxu1 }
 0xa13   :  { %v6321_v35 = vadd.f32 %v4095_v8, %v8663_v24  ;;  %v4097_v56 = vpop.f32.mrb[15].mxu0  ;;  %v4168_v33 = vpop.f32.mrb[15].mxu1  ;;  %v6337_v38 = vadd.f32 %v4166_v2, %v8601_v60  ;;  %v6366_v60 = vadd.f32 %v3994_v50, %v7445_v18 }
 0xa14   :  { %v6322_v39 = vadd.f32 %v4097_v56, %v8664_v15  ;;  %v6338_v10 = vadd.f32 %v4168_v33, %v8600_v12 }
 0xa15   :  { %v4680_v5 = vmul.f32 -1.442695, %v6321_v35  ;;  %v4679_v8 = vmul.f32 -1.442695, %v6366_v60 }
 0xa16   :  { %v4681_v19 = vmul.f32 -1.442695, %v6322_v39  ;;  %v4682_v44 = vmul.f32 -1.442695, %v6338_v10 }
 0xa17   :  { %6663 = vpow2.f32 %v4680_v5 }
 0xa18   :  { %6665 = vpow2.f32 %v4681_v19 }
 0xa19   :  { %6667 = vpow2.f32 %v4682_v44 }
 0xa1a   :  { %6669 = vtanh.f32 %v6337_v38 }
 0xa21   :  { %v6664_v43 = vpop.eup %6663 }
 0xa22   :  { %v6666_v11 = vpop.eup %6665  ;;  %v4178_v54 = vadd.f32 1.0, %v6664_v43 }
 0xa23   :  { %v4184_v42 = vadd.f32 1.0, %v6666_v11  ;;  %v6668_v24 = vpop.eup %6667 }
 0xa24   :  { %6671 = vrcp.f32 %v4178_v54  ;;  %v6670_v46 = vpop.eup %6669  ;;  %v4191_v28 = vadd.f32 1.0, %v6668_v24 }
 0xa25   :  { %6673 = vrcp.f32 %v4184_v42 }
 0xa26   :  { %6675 = vrcp.f32 %v4191_v28 }
 0xa2e   :  { %v6672_v15 = vpop.eup %6671 }
 0xa2f   :  { %v6674_v17 = vpop.eup %6673  ;;  %v4195_v21 = vmul.f32 %v6672_v15, %v6670_v46 }
 0xa30   :  { %v4194_v22 = vmul.f32 %v6674_v17, %v8064_v47  ;;  %v6676_v25 = vpop.eup %6675 }
 0xa32   :  { %v4196_v12 = vadd.f32 %v4195_v21, %v4194_v22  ;;  %v4686_v22 = vld [vmem:[%s8299_s8] ss:$0 sm:$0xff] }
 0xa34   :  { %6677 = vtanh.f32 %v4196_v12 }
 0xa35   :  { %6679 = vpow2.f32 %v4679_v8 }
 0xa36   :  { %6681 = vtanh.f32 %v8181_v34 }
 0xa3e   :  { %v6678_v29 = vpop.eup %6677 }
 0xa3f   :  { %v4198_v2 = vmul.f32 %v6678_v29, %v6676_v25 }
 0xa41   :  { %4264 = vmatmul.mubr.f32.vlgmr.msra.gmra.mrb[30].mxu0 %v4198_v2  ;;  %4335 = vmatmul.mubr.f32.vlgmr.msra.gmra.mrb[30].mxu1 %v4198_v2 }
 0xa42   :  { %6222 = vmatpush1.bf16.msra.mxu0 %v8604_v40  ;;  %6254 = vmatpush1.bf16.msra.mxu1 %v8605_v36  ;;  %v6680_v40 = vpop.eup %6679 }
 0xa43   :  { %6224 = vmatprep.subr.bf16.mxu0 %v8606_v13  ;;  %6256 = vmatprep.subr.bf16.mxu1 %v8607_v41  ;;  %v4017_v36 = vadd.f32 1.0, %v6680_v40  ;;  %v6682_v13 = vpop.eup %6681 }
 0xa44   :  { %4405 = vmatprep.mubr.f32.mxu0 %v8553_v3  ;;  %4476 = vmatprep.mubr.f32.mxu1 %v8553_v3 }
 0xa45   :  { %6683 = vrcp.f32 %v4017_v36 }
 0xa46   :  { %6226 = vmatpush1.bf16.msra.mxu0 %v8608_v57  ;;  %6258 = vmatpush1.bf16.msra.mxu1 %v8609_v14  ;;  %v4517_v57 = vld [vmem:[%s8298_s7 + $0x30] sm:$0xff]  ;;  %v4518_v14 = vld [vmem:[%s8298_s7 + $0x38] sm:$0xff] }
 0xa47   :  { %6228 = vmatprep.subr.bf16.mxu0 %v8665_v48  ;;  %6260 = vmatprep.subr.bf16.mxu1 %v8666_v0  ;;  %v4525_v0 = vld [vmem:[%s8298_s7 + $0x70] sm:$0xff] }
 0xa4a   :  { %6230 = vmatpush1.bf16.msra.mxu0 %v8667_v61  ;;  %6262 = vmatpush1.bf16.msra.mxu1 %v8613_v1  ;;  %v4520_v1 = vld [vmem:[%s8298_s7 + $0x48] sm:$0xff]  ;;  %v4526_v61 = vld [vmem:[%s8298_s7 + $0x78] sm:$0xff] }
 0xa4b   :  { %6232 = vmatprep.subr.bf16.mxu0 %v8614_v32  ;;  %6264 = vmatprep.subr.bf16.mxu1 %v8615_v27  ;;  %v4521_v27 = vld [vmem:[%s8298_s7 + $0x50] sm:$0xff] }
 0xa4e   :  { %6234 = vmatpush1.bf16.msra.mxu0 %v8616_v20  ;;  %6266 = vmatpush1.bf16.msra.mxu1 %v8617_v7  ;;  %v4522_v20 = vld [vmem:[%s8298_s7 + $0x58] sm:$0xff]  ;;  %v4523_v7 = vld [vmem:[%s8298_s7 + $0x60] sm:$0xff] }
 0xa4f   :  { %6236 = vmatprep.subr.bf16.mxu0 %v8618_v16  ;;  %6268 = vmatprep.subr.bf16.mxu1 %v8619_v51  ;;  %v6684_v41 = vpop.eup %6683  ;;  %v6299_v16 = vpack.c.bf16 %v4522_v20, %v4521_v27  ;;  %v4524_v51 = vld [vmem:[%s8298_s7 + $0x68] sm:$0xff] }
 0xa50   :  { %v6302_v48 = vpack.c.bf16 %v4524_v51, %v4523_v7 }
 0xa52   :  { %6238 = vmatpush1.bf16.msra.mxu0 %v8620_v4  ;;  %6270 = vmatpush1.bf16.msra.mxu1 %v8621_v6  ;;  %v6293_v4 = vpack.c.bf16 %v4518_v14, %v4517_v57  ;;  %v4519_v6 = vld [vmem:[%s8298_s7 + $0x40] sm:$0xff] }
 0xa53   :  { %6240 = vmatprep.subr.bf16.mxu0 %v8668_v52  ;;  %6272 = vmatprep.subr.bf16.mxu1 %v7305_v23  ;;  %v4024_v23 = vmul.f32 %v6684_v41, %v6682_v13  ;;  %v6296_v32 = vpack.c.bf16 %v4520_v1, %v4519_v6  ;;  %v6305_v52 = vpack.c.bf16 %v4526_v61, %v4525_v0 }
 0xa56   :  { %6242 = vmatpush1.bf16.msra.mxu0 %v7309_v31  ;;  %6274 = vmatpush1.bf16.msra.mxu1 %v7311_v26  ;;  %v4511_v31 = vld [vmem:[%s8298_s7] sm:$0xff]  ;;  %v4512_v26 = vld [vmem:[%s8298_s7 + $0x8] sm:$0xff] }
 0xa57   :  { %6244 = vmatprep.subr.bf16.mxu0 %v7315_v63  ;;  %6276 = vmatprep.subr.bf16.mxu1 %v7317_v37  ;;  %v6284_v63 = vpack.c.bf16 %v4512_v26, %v4511_v31  ;;  %v6826_v37 = vmov 0.0|0.0  }
 0xa5a   :  { %6246 = vmatpush1.bf16.msra.mxu0 %v7321_v9  ;;  %6278 = vmatpush1.bf16.msra.mxu1 %v7323_v55  ;;  %v4513_v9 = vld [vmem:[%s8298_s7 + $0x10] sm:$0xff]  ;;  %v4514_v55 = vld [vmem:[%s8298_s7 + $0x18] sm:$0xff] }
 0xa5b   :  { %6248 = vmatprep.subr.bf16.mxu0 %v7327_v30  ;;  %6280 = vmatprep.subr.bf16.mxu1 %v7329_v53  ;;  %v6287_v30 = vpack.c.bf16 %v4514_v55, %v4513_v9  ;;  %v4515_v53 = vld [vmem:[%s8298_s7 + $0x20] sm:$0xff] }
 0xa5e   :  { %6250 = vmatpush1.bf16.msra.mxu0 %v7333_v62  ;;  %6282 = vmatpush1.bf16.msra.mxu1 %v7335_v49  ;;  %v4516_v62 = vld [vmem:[%s8298_s7 + $0x28] sm:$0xff] }
 0xa5f   :  { %6283 = vmatprep.subr.bf16.mxu0 %v6826_v37  ;;  %v6290_v49 = vpack.c.bf16 %v4516_v62, %v4515_v53 }
 0xa61   :  { %4406 = vmatmul.mubr.f32.vlgmr.msra.gmra.mrb[30].mxu0 %v4024_v23  ;;  %4477 = vmatmul.mubr.f32.vlgmr.msra.gmra.mrb[30].mxu1 %v4024_v23 }
 0xa62   :  { %6285 = vmatpush3.bf16.msra.mxu0 %v6284_v63  ;;  %4736 = vmatprep.mubr.msk.f32.mxu0 %vm6827_vm1, %v8553_v3 }
 0xa63   :  { %6286 = vmatprep.subr.bf16.mxu0 %v6826_v37 }
 0xa66   :  { %6288 = vmatpush3.bf16.msra.mxu0 %v6287_v30 }
 0xa67   :  { %6289 = vmatprep.subr.bf16.mxu0 %v6826_v37 }
 0xa6a   :  { %6291 = vmatpush3.bf16.msra.mxu0 %v6290_v49 }
 0xa6b   :  { %6292 = vmatprep.subr.bf16.mxu0 %v6826_v37 }
 0xa6e   :  { %6294 = vmatpush3.bf16.msra.mxu0 %v6293_v4 }
 0xa6f   :  { %6295 = vmatprep.subr.bf16.mxu0 %v6826_v37 }
 0xa72   :  { %6297 = vmatpush3.bf16.msra.mxu0 %v6296_v32 }
 0xa73   :  { %6298 = vmatprep.subr.bf16.mxu0 %v6826_v37 }
 0xa76   :  { %6300 = vmatpush3.bf16.msra.mxu0 %v6299_v16 }
 0xa77   :  { %6301 = vmatprep.subr.bf16.mxu0 %v6826_v37 }
 0xa7a   :  { %6303 = vmatpush3.bf16.msra.mxu0 %v6302_v48 }
 0xa7b   :  { %6304 = vmatprep.subr.bf16.mxu0 %v6826_v37 }
 0xa7e   :  { %6306 = vmatpush3.bf16.msra.mxu0 %v6305_v52 }
 0xb34   :  { %v4407_v47 = vpop.f32.mrb[30].mxu0  ;;  %v4478_v50 = vpop.f32.mrb[30].mxu1 }
 0xb35   :  { %v6367_v35 = vadd.f32 %v4407_v47, %v8964_v59  ;;  %v4409_v3 = vpop.f32.mrb[31].mxu0  ;;  %v4480_v56 = vpop.f32.mrb[31].mxu1  ;;  %v6369_v44 = vadd.f32 %v4478_v50, %v8724_v45 }
 0xb36   :  { %v6368_v33 = vadd.f32 %v4409_v3, %v8723_v58  ;;  %v6370_v19 = vadd.f32 %v4480_v56, %v7445_v18 }
 0xb37   :  { %v4683_v39 = vmul.f32 -1.442695, %v6367_v35 }
 0xb38   :  { %v4684_v5 = vmul.f32 -1.442695, %v6368_v33  ;;  %v4685_v10 = vmul.f32 -1.442695, %v6370_v19 }
 0xb39   :  { %6685 = vpow2.f32 %v4683_v39 }
 0xb3a   :  { %6687 = vpow2.f32 %v4684_v5 }
 0xb3b   :  { %6689 = vpow2.f32 %v4685_v10 }
 0xb3c   :  { %6691 = vtanh.f32 %v6369_v44 }
 0xb43   :  { %v6686_v38 = vpop.eup %6685 }
 0xb44   :  { %v6688_v43 = vpop.eup %6687  ;;  %v4490_v11 = vadd.f32 1.0, %v6686_v38 }
 0xb45   :  { %v4496_v54 = vadd.f32 1.0, %v6688_v43  ;;  %v6690_v59 = vpop.eup %6689 }
 0xb46   :  { %6693 = vrcp.f32 %v4490_v11  ;;  %v6692_v42 = vpop.eup %6691  ;;  %v4503_v15 = vadd.f32 1.0, %v6690_v59 }
 0xb47   :  { %6695 = vrcp.f32 %v4496_v54 }
 0xb48   :  { %6697 = vrcp.f32 %v4503_v15 }
 0xb50   :  { %v6694_v58 = vpop.eup %6693 }
 0xb51   :  { %v6696_v24 = vpop.eup %6695  ;;  %v4507_v46 = vmul.f32 %v6694_v58, %v6692_v42 }
 0xb52   :  { %v4506_v17 = vmul.f32 %v6696_v24, %v8181_v34  ;;  %v6698_v45 = vpop.eup %6697 }
 0xb54   :  { %v4508_v18 = vadd.f32 %v4507_v46, %v4506_v17 }
 0xb56   :  { %6699 = vtanh.f32 %v4508_v18 }
 0xb60   :  { %v6700_v21 = vpop.eup %6699 }
 0xb61   :  { %v4510_v28 = vmul.f32 %v6700_v21, %v6698_v45 }
 0xb63   :  { %4737 = vmatmul.mubr.f32.vlgmr.msra.gmra.mrb[32].mxu0 %v4510_v28 }
 0xc36   :  { %v4600_v12 = vpop.f32.mrb[32].mxu0 }
 0xc37   :  { %v4601_v60 = vadd.f32 %v4686_v22, %v4600_v12  ;;  %v4738_v25 = vpop.f32.mrb[33].mxu0 }
 0xc39   :  { %4604 = vst [vmem:[#allocation11] sm:$0xff] %v4601_v60 }
 0xc3a   :  { %6800 = shalt.err (!%p6797_p8)
}
 0xc3b   :  { %s6801_s22 = scalar_lea.hbm %s8300_s9, 128 }
 0xc3c   :  { %p6802_p9 = scmp.ne.s32.totalorder %s8300_s9, %s6801_s22  ;;  %p6805_p10 = scmp.lt.u32.totalorder %s6801_s22, %s8300_s9 }
 0xc3e   :  { %p6807_p11 = pnand %p6805_p10, %p6802_p9 }
 0xc40   :  { %6810 = shalt.err (!%p6807_p11)
}
 0xc41   :  { %4614 = dma.vmem_to_hbm [thread:$0]  %s4612_s4, 128, %s8300_s9, [#allocation5]  }
 0xc42   :  { %6817 = dma.done.wait [#allocation5], 128  }
 0xc43   :  { %6818 = vsyncadd [#allocation5], 4294967168 }
 0xc44   :  { %4618 = vsyncpa [#allocation4], 1 }
 0xc45   :  { %4619 = vsyncpa [#allocation7], 1 }
 0xc46   :  { %4620 = vsyncpa [#allocation10], 1 }
 0xc47   :  { %4621 = vsyncpa [#allocation5], 1 }

</bundles_post_ra>
